<compile_context>
chip_gen: v7x
topology: tpu7x:2x2x1
jax: 0.10.0
libtpu: 0.0.40
codegen_flags: <defaults>
</compile_context>

<pallas_src>
import functools
import math

import jax
import jax.numpy as jnp
from jax import lax
from jax.experimental import pallas as pl
from jax.experimental.pallas import tpu as pltpu

NEG_INF = -1e9
LN_EPS = 1e-5


def _pick_tile(dim, prefs):
    """Largest preferred tile that divides dim, else the full dim (always legal)."""
    for p in prefs:
        if dim % p == 0:
            return p
    return dim


def _round_up(x, m):
    return (x + m - 1) // m * m


# ----------------------------- Pallas kernels ------------------------------ #

def _matmul_kernel(x_ref, w_ref, b_ref, o_ref, acc_ref, *, activation):
    """Tiled x @ w + b (optional GELU). Grid = (M/tm, N/tn, K/tk); K innermost."""
    @pl.when(pl.program_id(2) == 0)
    def _init():
        acc_ref[...] = jnp.zeros_like(acc_ref)

    acc_ref[...] += jnp.dot(x_ref[...], w_ref[...],
                            preferred_element_type=jnp.float32)

    @pl.when(pl.program_id(2) == pl.num_programs(2) - 1)
    def _finalize():
        y = acc_ref[...] + b_ref[...]
        if activation == "gelu":
            y = jax.nn.gelu(y, approximate=True)  # tanh form -> EUP, hides under MXU
        o_ref[...] = y.astype(o_ref.dtype)


def _matmul_res_ln_kernel(x_ref, w_ref, b_ref, r_ref, g_ref, bt_ref, o_ref,
                          acc_ref):
    """LayerNorm(residual + x @ w + b) fused into the matmul finalize.

    Requires the full N (= hidden) row in one tile. Grid = (M/tm, K/tk).
    """
    @pl.when(pl.program_id(1) == 0)
    def _init():
        acc_ref[...] = jnp.zeros_like(acc_ref)

    acc_ref[...] += jnp.dot(x_ref[...], w_ref[...],
                            preferred_element_type=jnp.float32)

    @pl.when(pl.program_id(1) == pl.num_programs(1) - 1)
    def _finalize():
        y = acc_ref[...] + b_ref[...] + r_ref[...].astype(jnp.float32)
        mean = jnp.mean(y, axis=-1, keepdims=True)
        var = jnp.mean(jnp.square(y - mean), axis=-1, keepdims=True)
        o_ref[...] = ((y - mean) * lax.rsqrt(var + LN_EPS) * g_ref[...]
                      + bt_ref[...]).astype(o_ref.dtype)


def _flash_attn_kernel(q_ref, k_ref, v_ref, mask_ref, o_ref,
                       qs_sc, m_sc, l_sc, acc_sc, *,
                       scale, causal, num_heads, head_dim, block_q, block_k):
    """Flash attention; grid = (batch, q-tiles, kv-tiles).

    q/k/v blocks are (1, tile, H); heads are split with *static* column slices
    inside the kernel (no XLA head transposes), output written in [tile, H]
    lane-dense layout. Online softmax state kept per head in VMEM scratch.
    """
    qi = pl.program_id(1)
    kv = pl.program_id(2)
    d = head_dim

    @pl.when(kv == 0)
    def _init():
        # Hoist the q scaling + bf16 cast out of the KV loop (once per q tile).
        for h in range(num_heads):
            qh = q_ref[0, :, h * d:(h + 1) * d].astype(jnp.float32) * scale
            qs_sc[h] = qh.astype(jnp.bfloat16)
        m_sc[...] = jnp.full_like(m_sc, -jnp.inf)
        l_sc[...] = jnp.zeros_like(l_sc)
        acc_sc[...] = jnp.zeros_like(acc_sc)

    def _compute():
        # Additive bias shared by all heads: key-padding (+ causal).
        bias = (1.0 - mask_ref[0]) * NEG_INF                         # [1, bk]
        if causal:
            row = lax.broadcasted_iota(jnp.int32, (block_q, block_k), 0) \
                + qi * block_q
            col = lax.broadcasted_iota(jnp.int32, (block_q, block_k), 1) \
                + kv * block_k
            bias = bias + jnp.where(col <= row, 0.0, NEG_INF)        # [bq, bk]

        for h in range(num_heads):
            k_h = k_ref[0, :, h * d:(h + 1) * d]                     # [bk, d] bf16
            v_h = v_ref[0, :, h * d:(h + 1) * d]                     # [bk, d] bf16
            s = lax.dot_general(qs_sc[h], k_h, (((1,), (1,)), ((), ())),
                                preferred_element_type=jnp.float32)  # [bq, bk]
            s = s + bias
            m_prev = m_sc[h]
            m_new = jnp.maximum(m_prev, jnp.max(s, axis=-1, keepdims=True))
            alpha = jnp.exp(m_prev - m_new)
            p = jnp.exp(s - m_new)
            l_sc[h] = alpha * l_sc[h] + jnp.sum(p, axis=-1, keepdims=True)
            acc_sc[h] = alpha * acc_sc[h] + jnp.dot(
                p.astype(jnp.bfloat16), v_h, preferred_element_type=jnp.float32)
            m_sc[h] = m_new

    if causal:
        # Skip KV tiles strictly above the diagonal of this query tile.
        @pl.when(kv * block_k <= qi * block_q + (block_q - 1))
        def _():
            _compute()
    else:
        _compute()

    @pl.when(kv == pl.num_programs(2) - 1)
    def _finalize():
        for h in range(num_heads):
            out_h = acc_sc[h] * pl.reciprocal(l_sc[h], approx=True)
            o_ref[0, :, h * d:(h + 1) * d] = out_h.astype(o_ref.dtype)


def _softmax_kernel(x_ref, o_ref):
    x = x_ref[...].astype(jnp.float32)
    m = jnp.max(x, axis=-1, keepdims=True)
    e = jnp.exp(x - m)
    denom = jnp.sum(e, axis=-1, keepdims=True)
    o_ref[...] = (e * pl.reciprocal(denom, approx=False)).astype(o_ref.dtype)


# ----------------------------- Pallas wrappers ----------------------------- #

def linear(x2d, w, b, *, activation=None, out_dtype=jnp.bfloat16):
    """y = x @ w + b (optional tanh-GELU); bf16 inputs, f32 accumulation."""
    x2d = x2d.astype(jnp.bfloat16)
    w = w.astype(jnp.bfloat16)
    M, K = x2d.shape
    Kw, N = w.shape
    assert K == Kw
    # Pad large, misaligned N / K to multiples of 128 so tile sizes never fall
    # back to the full dimension (VMEM hazard e.g. for odd vocab sizes on the
    # lm_head).  Pads are zero and sliced off the output below.
    Kp = K if (K <= 512 or K % 128 == 0) else _round_up(K, 128)
    Np = N if (N <= 512 or N % 128 == 0) else _round_up(N, 128)
    if Kp != K:
        x2d = jnp.pad(x2d, ((0, 0), (0, Kp - K)))
        w = jnp.pad(w, ((0, Kp - K), (0, 0)))
    if Np != N:
        w = jnp.pad(w, ((0, 0), (0, Np - N)))
        b = jnp.pad(b, (0, Np - N))
    # TODO(synk): M (= B*S) is assumed small or 8-aligned; no padding applied.

    tm = _pick_tile(M, (256, 128))
    tn = _pick_tile(Np, (512, 256, 128))  # larger tn cuts x re-streaming (M*K*Np/tn)
    tk = _pick_tile(Kp, (512, 256, 128))
    grid = (M // tm, Np // tn, Kp // tk)

    # Triple-buffer the K-streamed weight tile when there are enough K steps
    # (hides one extra tile of DMA latency; helps skinny-M matmuls on v5e).
    w_kwargs = {}
    if grid[2] >= 3:
        w_kwargs["pipeline_mode"] = pl.Buffered(3)

    out_itemsize = jnp.dtype(out_dtype).itemsize
    out = pl.pallas_call(
        functools.partial(_matmul_kernel, activation=activation),
        out_shape=jax.ShapeDtypeStruct((M, Np), out_dtype),
        grid_spec=pltpu.PrefetchScalarGridSpec(
            num_scalar_prefetch=0,
            grid=grid,
            in_specs=[
                pl.BlockSpec((tm, tk), lambda i, j, k: (i, k)),
                pl.BlockSpec((tk, tn), lambda i, j, k: (k, j), **w_kwargs),
                pl.BlockSpec((1, tn), lambda i, j, k: (0, j)),
            ],
            out_specs=pl.BlockSpec((tm, tn), lambda i, j, k: (i, j)),
            scratch_shapes=[pltpu.VMEM((tm, tn), jnp.float32)],
        ),
        compiler_params=pltpu.CompilerParams(
            dimension_semantics=("parallel", "parallel", "arbitrary")),
        cost_estimate=pl.CostEstimate(
            flops=2 * M * Np * Kp,
            transcendentals=M * Np if activation == "gelu" else 0,
            # include re-streaming factors: x read Np/tn times, w read M/tm times
            bytes_accessed=(M * Kp * (Np // tn) * 2 + Kp * Np * (M // tm) * 2
                            + M * Np * out_itemsize + Np * 4)),
    )(x2d, w, b.astype(jnp.float32).reshape(1, Np))
    if Np != N:
        out = out[:, :N]
    return out


def linear_residual_layernorm(x2d, w, b, res2d, gamma, beta):
    """LayerNorm(res + x @ w + b) with the add + LN fused into the matmul."""
    x2d = x2d.astype(jnp.bfloat16)
    w = w.astype(jnp.bfloat16)
    M, K = x2d.shape
    Kw, N = w.shape
    assert K == Kw
    Kp = K if (K <= 512 or K % 128 == 0) else _round_up(K, 128)
    if Kp != K:
        x2d = jnp.pad(x2d, ((0, 0), (0, Kp - K)))
        w = jnp.pad(w, ((0, Kp - K), (0, 0)))
    tm = _pick_tile(M, (256, 128))
    tk = _pick_tile(Kp, (512, 256, 128))
    grid = (M // tm, Kp // tk)
    return pl.pallas_call(
        _matmul_res_ln_kernel,
        out_shape=jax.ShapeDtypeStruct((M, N), jnp.bfloat16),
        grid_spec=pltpu.PrefetchScalarGridSpec(
            num_scalar_prefetch=0,
            grid=grid,
            in_specs=[
                pl.BlockSpec((tm, tk), lambda i, k: (i, k)),
                pl.BlockSpec((tk, N), lambda i, k: (k, 0)),
                pl.BlockSpec((1, N), lambda i, k: (0, 0)),
                pl.BlockSpec((tm, N), lambda i, k: (i, 0)),   # residual
                pl.BlockSpec((1, N), lambda i, k: (0, 0)),    # gamma
                pl.BlockSpec((1, N), lambda i, k: (0, 0)),    # beta
            ],
            out_specs=pl.BlockSpec((tm, N), lambda i, k: (i, 0)),
            scratch_shapes=[pltpu.VMEM((tm, N), jnp.float32)],
        ),
        compiler_params=pltpu.CompilerParams(
            dimension_semantics=("parallel", "arbitrary")),
        cost_estimate=pl.CostEstimate(
            flops=2 * M * N * Kp + 8 * M * N,
            transcendentals=M,
            bytes_accessed=(M * Kp * 2 + Kp * N * (M // tm) * 2
                            + 2 * M * N * 2 + 3 * N * 4)),
    )(x2d, w, b.astype(jnp.float32).reshape(1, N),
      res2d.astype(jnp.bfloat16),
      gamma.astype(jnp.float32).reshape(1, N),
      beta.astype(jnp.float32).reshape(1, N))


def flash_attention(q_src, k_src, v_src, mask, *, num_heads, causal, scale,
                    hidden, q_col=0, k_col=0, v_col=0):
    """q_src/k_src/v_src: [B, S, k*H] buffers; *_col selects which H-wide slab
    holds Q/K/V (lets the fused QKV / KV buffer be read in place when H%128==0).
    mask: [B, Sk] (1 = keep).  Returns [B, Sq, H] bf16."""
    B, Sq, _ = q_src.shape
    Sk = k_src.shape[1]
    H = hidden
    d = H // num_heads
    bq = _pick_tile(Sq, (256, 128))
    bk = _pick_tile(Sk, (512, 256, 128))
    mask3 = mask.reshape(B, 1, Sk).astype(jnp.float32)
    kernel = functools.partial(
        _flash_attn_kernel, scale=scale, causal=causal, num_heads=num_heads,
        head_dim=d, block_q=bq, block_k=bk)
    return pl.pallas_call(
        kernel,
        out_shape=jax.ShapeDtypeStruct((B, Sq, H), jnp.bfloat16),
        grid_spec=pltpu.PrefetchScalarGridSpec(
            num_scalar_prefetch=0,
            grid=(B, Sq // bq, Sk // bk),
            in_specs=[
                pl.BlockSpec((1, bq, H), lambda b, qi, ki: (b, qi, q_col)),
                pl.BlockSpec((1, bk, H), lambda b, qi, ki: (b, ki, k_col)),
                pl.BlockSpec((1, bk, H), lambda b, qi, ki: (b, ki, v_col)),
                pl.BlockSpec((1, 1, bk), lambda b, qi, ki: (b, 0, ki)),
            ],
            out_specs=pl.BlockSpec((1, bq, H), lambda b, qi, ki: (b, qi, 0)),
            scratch_shapes=[
                pltpu.VMEM((num_heads, bq, d), jnp.bfloat16),  # scaled q
                pltpu.VMEM((num_heads, bq, 1), jnp.float32),   # running max
                pltpu.VMEM((num_heads, bq, 1), jnp.float32),   # running denom
                pltpu.VMEM((num_heads, bq, d), jnp.float32),   # accumulator
            ],
        ),
        compiler_params=pltpu.CompilerParams(
            dimension_semantics=("parallel", "parallel", "arbitrary")),
    )(q_src, k_src, v_src, mask3)


def softmax_rows(x2d):
    M, N = x2d.shape
    tm = _pick_tile(M, (256, 128, 8))
    return pl.pallas_call(
        _softmax_kernel,
        out_shape=jax.ShapeDtypeStruct((M, N), jnp.float32),
        grid_spec=pltpu.PrefetchScalarGridSpec(
            num_scalar_prefetch=0,
            grid=(M // tm,),
            in_specs=[pl.BlockSpec((tm, N), lambda i: (i, 0))],
            out_specs=pl.BlockSpec((tm, N), lambda i: (i, 0)),
        ),
        compiler_params=pltpu.CompilerParams(dimension_semantics=("parallel",)),
    )(x2d)


# ------------------------------ Model pieces ------------------------------- #

def self_attention_block(x, p, mask_kv, *, causal, num_heads, ln_g, ln_b):
    """Returns LayerNorm(x + SelfAttn(x)); wo-projection + residual + LN fused."""
    B, S, H = x.shape
    d = H // num_heads
    qkv = linear(x.reshape(B * S, H), p['w_qkv'], p['b_qkv'])   # [B*S, 3H] bf16
    qkv3 = qkv.reshape(B, S, 3 * H)
    if H % 128 == 0:
        # Index q/k/v straight out of the fused buffer via the BlockSpec.
        q_src = k_src = v_src = qkv3
        qc, kc, vc = 0, 1, 2
    else:
        # Lane-misaligned H: split once (still no head transposes anywhere).
        q_src, k_src, v_src = jnp.split(qkv3, 3, axis=-1)
        qc = kc = vc = 0
    ctx = flash_attention(q_src, k_src, v_src, mask_kv,
                          num_heads=num_heads, causal=causal,
                          scale=1.0 / math.sqrt(d), hidden=H,
                          q_col=qc, k_col=kc, v_col=vc)          # [B, S, H]
    y = linear_residual_layernorm(ctx.reshape(B * S, H), p['wo'], p['bo'],
                                  x.reshape(B * S, H), ln_g, ln_b)
    return y.reshape(B, S, H)


def cross_attention_block(x_q, x_kv, p, mask_kv, *, num_heads, ln_g, ln_b):
    B, Sq, H = x_q.shape
    Sk = x_kv.shape[1]
    d = H // num_heads
    q = linear(x_q.reshape(B * Sq, H), p['wq'], p['bq']).reshape(B, Sq, H)
    kv = linear(x_kv.reshape(B * Sk, H), p['w_kv'], p['b_kv']).reshape(B, Sk, 2 * H)
    if H % 128 == 0:
        k_src = v_src = kv
        kc, vc = 0, 1
    else:
        k_src, v_src = jnp.split(kv, 2, axis=-1)
        kc = vc = 0
    ctx = flash_attention(q, k_src, v_src, mask_kv,
                          num_heads=num_heads, causal=False,
                          scale=1.0 / math.sqrt(d), hidden=H,
                          q_col=0, k_col=kc, v_col=vc)
    out = linear_residual_layernorm(ctx.reshape(B * Sq, H), p['wo'], p['bo'],
                                    x_q.reshape(B * Sq, H), ln_g, ln_b)
    return out.reshape(B, Sq, H)


def ffn_block(x2d, p, ln_g, ln_b):
    h1 = linear(x2d, p['w1'], p['b1'], activation='gelu')
    return linear_residual_layernorm(h1, p['w2'], p['b2'], x2d, ln_g, ln_b)


def encoder_layer(x, p, enc_mask, num_heads):
    B, S, H = x.shape
    x = self_attention_block(x, p['self_attn'], enc_mask, causal=False,
                             num_heads=num_heads,
                             ln_g=p['ln1_g'], ln_b=p['ln1_b'])
    x2d = ffn_block(x.reshape(B * S, H), p['ffn'], p['ln2_g'], p['ln2_b'])
    return x2d.reshape(B, S, H)


def decoder_layer(y, p, dec_mask, enc_h, enc_mask, num_heads):
    B, S, H = y.shape
    y = self_attention_block(y, p['self_attn'], dec_mask, causal=True,
                             num_heads=num_heads,
                             ln_g=p['ln1_g'], ln_b=p['ln1_b'])
    y = cross_attention_block(y, enc_h, p['cross_attn'], enc_mask,
                              num_heads=num_heads,
                              ln_g=p['lnc_g'], ln_b=p['lnc_b'])
    y2d = ffn_block(y.reshape(B * S, H), p['ffn'], p['ln2_g'], p['ln2_b'])
    return y2d.reshape(B, S, H)


def transformer_lm_head_forward(params, enc_ids, enc_mask, dec_ids, dec_mask,
                                *, num_heads):
    emb = params['embedding']                               # bf16

    # ---------------- encode ----------------
    x = jnp.take(emb, enc_ids, axis=0)                      # [B, Se, H] bf16
    for lp in params['encoder']:
        x = encoder_layer(x, lp, enc_mask, num_heads)
    enc_h = x

    # ---------------- decode ----------------
    y = jnp.take(emb, dec_ids, axis=0)                      # [B, Sd, H] bf16
    for lp in params['decoder']:
        y = decoder_layer(y, lp, dec_mask, enc_h, enc_mask, num_heads)

    # -------------- lm head + softmax on last position --------------
    h_last = y[:, -1, :]                                    # [B, H]
    logits = linear(h_last, params['lm_head_w'], params['lm_head_b'])
    return softmax_rows(logits)                             # [B, V] f32


# ------------------------------ Param init --------------------------------- #

def _winit(key, shape, dtype=jnp.bfloat16):
    return (0.02 * jax.random.normal(key, shape, jnp.float32)).astype(dtype)


def _init_self_attn(key, H):
    k1, k2 = jax.random.split(key)
    return {'w_qkv': _winit(k1, (H, 3 * H)),
            'b_qkv': jnp.zeros((3 * H,), jnp.float32),
            'wo': _winit(k2, (H, H)),
            'bo': jnp.zeros((H,), jnp.float32)}


def _init_cross_attn(key, H):
    k1, k2, k3 = jax.random.split(key, 3)
    return {'wq': _winit(k1, (H, H)), 'bq': jnp.zeros((H,), jnp.float32),
            'w_kv': _winit(k2, (H, 2 * H)), 'b_kv': jnp.zeros((2 * H,), jnp.float32),
            'wo': _winit(k3, (H, H)), 'bo': jnp.zeros((H,), jnp.float32)}


def _init_ffn(key, H, I):
    k1, k2 = jax.random.split(key)
    return {'w1': _winit(k1, (H, I)), 'b1': jnp.zeros((I,), jnp.float32),
            'w2': _winit(k2, (I, H)), 'b2': jnp.zeros((H,), jnp.float32)}


def init_params(key, *, vocab, max_pos, layers, H, I):
    keys = jax.random.split(key, 4 + 2 * layers)
    params = {
        'embedding': _winit(keys[0], (vocab, H), jnp.bfloat16),
        'pos_embedding': _winit(keys[1], (max_pos, H), jnp.bfloat16),  # unused (see TODO)
        'lm_head_w': _winit(keys[2], (H, vocab)),
        'lm_head_b': jnp.zeros((vocab,), jnp.float32),
        'encoder': [],
        'decoder': [],
    }
    for l in range(layers):
        ka, kf = jax.random.split(keys[4 + l])
        params['encoder'].append({
            'self_attn': _init_self_attn(ka, H), 'ffn': _init_ffn(kf, H, I),
            'ln1_g': jnp.ones((H,), jnp.float32), 'ln1_b': jnp.zeros((H,), jnp.float32),
            'ln2_g': jnp.ones((H,), jnp.float32), 'ln2_b': jnp.zeros((H,), jnp.float32),
        })
    for l in range(layers):
        ka, kc, kf = jax.random.split(keys[4 + layers + l], 3)
        params['decoder'].append({
            'self_attn': _init_self_attn(ka, H), 'cross_attn': _init_cross_attn(kc, H),
            'ffn': _init_ffn(kf, H, I),
            'ln1_g': jnp.ones((H,), jnp.float32), 'ln1_b': jnp.zeros((H,), jnp.float32),
            'lnc_g': jnp.ones((H,), jnp.float32), 'lnc_b': jnp.zeros((H,), jnp.float32),
            'ln2_g': jnp.ones((H,), jnp.float32), 'ln2_b': jnp.zeros((H,), jnp.float32),
        })
    return params


# --------------------------------- Main ------------------------------------ #

if __name__ == "__main__":
    # Small config consistent with the module's constructor.
    MAX_POS, VOCAB, LAYERS, HIDDEN, INTER, HEADS = 16, 128, 2, 32, 64, 4
    B, S_ENC, S_DEC = 2, 8, 8

    key = jax.random.PRNGKey(0)
    k_params, k_enc, k_dec = jax.random.split(key, 3)

    params = init_params(k_params, vocab=VOCAB, max_pos=MAX_POS,
                         layers=LAYERS, H=HIDDEN, I=INTER)

    enc_ids = jax.random.randint(k_enc, (B, S_ENC), 0, VOCAB, dtype=jnp.int32)
    dec_ids = jax.random.randint(k_dec, (B, S_DEC), 0, VOCAB, dtype=jnp.int32)
    enc_mask = jnp.ones((B, S_ENC), jnp.float32).at[1, -2:].set(0.0)
    dec_mask = jnp.ones((B, S_DEC), jnp.float32).at[1, -1:].set(0.0)

    fwd = jax.jit(functools.partial(transformer_lm_head_forward,
                                    num_heads=HEADS))
    probs = fwd(params, enc_ids, enc_mask, dec_ids, dec_mask)
    jax.block_until_ready(probs)

    assert probs.shape == (B, VOCAB)
    assert bool(jnp.allclose(jnp.sum(probs, axis=-1), 1.0, atol=1e-4))
    print("KERNEL_OK")
</pallas_src>

<mosaic_0001>
module attributes {stable_mosaic.version = 11 : i64} {
  func.func @_matmul_kernel(%arg0: i32, %arg1: i32, %arg2: i32, %arg3: memref<16x32xbf16, #tpu.memory_space<vmem>>, %arg4: memref<32x96xbf16, #tpu.memory_space<vmem>>, %arg5: memref<1x96xf32, #tpu.memory_space<vmem>>, %arg6: memref<16x96xbf16, #tpu.memory_space<vmem>>, %arg7: memref<16x96xf32, #tpu.memory_space<vmem>>) attributes {dimension_semantics = [#tpu.dimension_semantics<parallel>, #tpu.dimension_semantics<parallel>, #tpu.dimension_semantics<arbitrary>], iteration_bounds = array<i64: 1, 1, 1>, scalar_prefetch = 0 : i64, scratch_operands = 1 : i64, tpu.core_type = #tpu.core_type<tc>, window_params = [{transform_indices = @transform_0, window_bounds = array<i64: 16, 32>}, {transform_indices = @transform_1, window_bounds = array<i64: 32, 96>}, {transform_indices = @transform_2, window_bounds = array<i64: 1, 96>}, {transform_indices = @transform_3, window_bounds = array<i64: 16, 96>}]} {
    %c0_i32 = arith.constant 0 : i32
    %0 = arith.cmpi eq, %arg2, %c0_i32 : i32
    %1 = arith.extui %0 : i1 to i32
    %c0_i32_0 = arith.constant 0 : i32
    %2 = arith.cmpi ne, %1, %c0_i32_0 : i32
    scf.if %2 {
      %cst_10 = arith.constant 0.000000e+00 : f32
      %12 = vector.broadcast %cst_10 : f32 to vector<16x96xf32>
      %c0_11 = arith.constant 0 : index
      %c0_12 = arith.constant 0 : index
      %13 = vector.load %arg7[%c0_11, %c0_12] : memref<16x96xf32, #tpu.memory_space<vmem>>, vector<16x96xf32>
      tpu.vector_store %arg7[%c0_11, %c0_12], %12 {strides = array<i32>} : memref<16x96xf32, #tpu.memory_space<vmem>>, vector<16x96xf32>,
    } else {
    }
    %c0 = arith.constant 0 : index
    %c0_1 = arith.constant 0 : index
    %3 = vector.load %arg7[%c0, %c0_1] : memref<16x96xf32, #tpu.memory_space<vmem>>, vector<16x96xf32>
    %c0_2 = arith.constant 0 : index
    %c0_3 = arith.constant 0 : index
    %4 = vector.load %arg3[%c0_2, %c0_3] : memref<16x32xbf16, #tpu.memory_space<vmem>>, vector<16x32xbf16>
    %c0_4 = arith.constant 0 : index
    %c0_5 = arith.constant 0 : index
    %5 = vector.load %arg4[%c0_4, %c0_5] : memref<32x96xbf16, #tpu.memory_space<vmem>>, vector<32x96xbf16>
    %cst = arith.constant dense<0.000000e+00> : vector<16x96xf32>
    %6 = tpu.matmul %4, %5, %cst {dimension_numbers = #tpu.dot_dimension_numbers<[1], [0], [0], [1], [0, 0, 1, 1], [], []>} : vector<16x32xbf16>, vector<32x96xbf16>, vector<16x96xf32> -> vector<16x96xf32>
    %7 = arith.addf %3, %6 : vector<16x96xf32>
    %c0_6 = arith.constant 0 : index
    %c0_7 = arith.constant 0 : index
    %8 = vector.load %arg7[%c0_6, %c0_7] : memref<16x96xf32, #tpu.memory_space<vmem>>, vector<16x96xf32>
    tpu.vector_store %arg7[%c0_6, %c0_7], %7 {strides = array<i32>} : memref<16x96xf32, #tpu.memory_space<vmem>>, vector<16x96xf32>,
    %c0_i32_8 = arith.constant 0 : i32
    %9 = arith.cmpi eq, %arg2, %c0_i32_8 : i32
    %10 = arith.extui %9 : i1 to i32
    %c0_i32_9 = arith.constant 0 : i32
    %11 = arith.cmpi ne, %10, %c0_i32_9 : i32
    scf.if %11 {
      %c0_10 = arith.constant 0 : index
      %c0_11 = arith.constant 0 : index
      %12 = vector.load %arg7[%c0_10, %c0_11] : memref<16x96xf32, #tpu.memory_space<vmem>>, vector<16x96xf32>
      %c0_12 = arith.constant 0 : index
      %c0_13 = arith.constant 0 : index
      %13 = vector.load %arg5[%c0_12, %c0_13] : memref<1x96xf32, #tpu.memory_space<vmem>>, vector<1x96xf32>
      %14 = vector.broadcast %13 : vector<1x96xf32> to vector<16x96xf32>
      %15 = arith.addf %12, %14 : vector<16x96xf32>
      %16 = arith.truncf %15 : vector<16x96xf32> to vector<16x96xbf16>
      %c0_14 = arith.constant 0 : index
      %c0_15 = arith.constant 0 : index
      %17 = vector.load %arg6[%c0_14, %c0_15] : memref<16x96xbf16, #tpu.memory_space<vmem>>, vector<16x96xbf16>
      tpu.vector_store %arg6[%c0_14, %c0_15], %16 {strides = array<i32>} : memref<16x96xbf16, #tpu.memory_space<vmem>>, vector<16x96xbf16>,
    } else {
    }
    return
  }
  func.func @transform_0(%arg0: i32, %arg1: i32, %arg2: i32) -> (i32, i32) {
    %c0_i32 = arith.constant 0 : i32
    return %arg0, %arg2 : i32, i32
  }
  func.func @transform_1(%arg0: i32, %arg1: i32, %arg2: i32) -> (i32, i32) {
    %c0_i32 = arith.constant 0 : i32
    return %arg2, %arg1 : i32, i32
  }
  func.func @transform_2(%arg0: i32, %arg1: i32, %arg2: i32) -> (i32, i32) {
    %c0_i32 = arith.constant 0 : i32
    %c0_i32_0 = arith.constant 0 : i32
    return %c0_i32, %arg1 : i32, i32
  }
  func.func @transform_3(%arg0: i32, %arg1: i32, %arg2: i32) -> (i32, i32) {
    %c0_i32 = arith.constant 0 : i32
    return %arg0, %arg1 : i32, i32
  }
}

module attributes {stable_mosaic.version = 11 : i64} {
  func.func @_matmul_res_ln_kernel(%arg0: i32, %arg1: i32, %arg2: memref<16x32xbf16, #tpu.memory_space<vmem>>, %arg3: memref<32x32xbf16, #tpu.memory_space<vmem>>, %arg4: memref<1x32xf32, #tpu.memory_space<vmem>>, %arg5: memref<16x32xbf16, #tpu.memory_space<vmem>>, %arg6: memref<1x32xf32, #tpu.memory_space<vmem>>, %arg7: memref<1x32xf32, #tpu.memory_space<vmem>>, %arg8: memref<16x32xbf16, #tpu.memory_space<vmem>>, %arg9: memref<16x32xf32, #tpu.memory_space<vmem>>) attributes {dimension_semantics = [#tpu.dimension_semantics<parallel>, #tpu.dimension_semantics<arbitrary>], iteration_bounds = array<i64: 1, 1>, scalar_prefetch = 0 : i64, scratch_operands = 1 : i64, tpu.core_type = #tpu.core_type<tc>, window_params = [{transform_indices = @transform_0, window_bounds = array<i64: 16, 32>}, {transform_indices = @transform_1, window_bounds = array<i64: 32, 32>}, {pipeline_mode = #tpu.pipeline_mode<synchronous>, transform_indices = @transform_2, window_bounds = array<i64: 1, 32>}, {transform_indices = @transform_3, window_bounds = array<i64: 16, 32>}, {pipeline_mode = #tpu.pipeline_mode<synchronous>, transform_indices = @transform_4, window_bounds = array<i64: 1, 32>}, {pipeline_mode = #tpu.pipeline_mode<synchronous>, transform_indices = @transform_5, window_bounds = array<i64: 1, 32>}, {transform_indices = @transform_6, window_bounds = array<i64: 16, 32>}]} {
    %c0_i32 = arith.constant 0 : i32
    %0 = arith.cmpi eq, %arg1, %c0_i32 : i32
    %1 = arith.extui %0 : i1 to i32
    %c0_i32_0 = arith.constant 0 : i32
    %2 = arith.cmpi ne, %1, %c0_i32_0 : i32
    scf.if %2 {
      %cst_10 = arith.constant 0.000000e+00 : f32
      %12 = vector.broadcast %cst_10 : f32 to vector<16x32xf32>
      %c0_11 = arith.constant 0 : index
      %c0_12 = arith.constant 0 : index
      %13 = vector.load %arg9[%c0_11, %c0_12] : memref<16x32xf32, #tpu.memory_space<vmem>>, vector<16x32xf32>
      tpu.vector_store %arg9[%c0_11, %c0_12], %12 {strides = array<i32>} : memref<16x32xf32, #tpu.memory_space<vmem>>, vector<16x32xf32>,
    } else {
    }
    %c0 = arith.constant 0 : index
    %c0_1 = arith.constant 0 : index
    %3 = vector.load %arg9[%c0, %c0_1] : memref<16x32xf32, #tpu.memory_space<vmem>>, vector<16x32xf32>
    %c0_2 = arith.constant 0 : index
    %c0_3 = arith.constant 0 : index
    %4 = vector.load %arg2[%c0_2, %c0_3] : memref<16x32xbf16, #tpu.memory_space<vmem>>, vector<16x32xbf16>
    %c0_4 = arith.constant 0 : index
    %c0_5 = arith.constant 0 : index
    %5 = vector.load %arg3[%c0_4, %c0_5] : memref<32x32xbf16, #tpu.memory_space<vmem>>, vector<32x32xbf16>
    %cst = arith.constant dense<0.000000e+00> : vector<16x32xf32>
    %6 = tpu.matmul %4, %5, %cst {dimension_numbers = #tpu.dot_dimension_numbers<[1], [0], [0], [1], [0, 0, 1, 1], [], []>} : vector<16x32xbf16>, vector<32x32xbf16>, vector<16x32xf32> -> vector<16x32xf32>
    %7 = arith.addf %3, %6 : vector<16x32xf32>
    %c0_6 = arith.constant 0 : index
    %c0_7 = arith.constant 0 : index
    %8 = vector.load %arg9[%c0_6, %c0_7] : memref<16x32xf32, #tpu.memory_space<vmem>>, vector<16x32xf32>
    tpu.vector_store %arg9[%c0_6, %c0_7], %7 {strides = array<i32>} : memref<16x32xf32, #tpu.memory_space<vmem>>, vector<16x32xf32>,
    %c0_i32_8 = arith.constant 0 : i32
    %9 = arith.cmpi eq, %arg1, %c0_i32_8 : i32
    %10 = arith.extui %9 : i1 to i32
    %c0_i32_9 = arith.constant 0 : i32
    %11 = arith.cmpi ne, %10, %c0_i32_9 : i32
    scf.if %11 {
      %c0_10 = arith.constant 0 : index
      %c0_11 = arith.constant 0 : index
      %12 = vector.load %arg9[%c0_10, %c0_11] : memref<16x32xf32, #tpu.memory_space<vmem>>, vector<16x32xf32>
      %c0_12 = arith.constant 0 : index
      %c0_13 = arith.constant 0 : index
      %13 = vector.load %arg4[%c0_12, %c0_13] : memref<1x32xf32, #tpu.memory_space<vmem>>, vector<1x32xf32>
      %14 = vector.broadcast %13 : vector<1x32xf32> to vector<16x32xf32>
      %15 = arith.addf %12, %14 : vector<16x32xf32>
      %c0_14 = arith.constant 0 : index
      %c0_15 = arith.constant 0 : index
      %16 = vector.load %arg5[%c0_14, %c0_15] : memref<16x32xbf16, #tpu.memory_space<vmem>>, vector<16x32xbf16>
      %17 = arith.extf %16 : vector<16x32xbf16> to vector<16x32xf32>
      %18 = arith.addf %15, %17 : vector<16x32xf32>
      %cst_16 = arith.constant dense<0.000000e+00> : vector<16xf32>
      %19 = vector.multi_reduction <add>, %18, %cst_16 [1] : vector<16x32xf32> to vector<16xf32>
      %20 = vector.shape_cast %19 : vector<16xf32> to vector<16x1xf32>
      %cst_17 = arith.constant 3.200000e+01 : f32
      %21 = vector.broadcast %cst_17 : f32 to vector<16x1xf32>
      %22 = arith.divf %20, %21 : vector<16x1xf32>
      %23 = vector.broadcast %22 : vector<16x1xf32> to vector<16x32xf32>
      %24 = arith.subf %18, %23 : vector<16x32xf32>
      %25 = arith.mulf %24, %24 : vector<16x32xf32>
      %cst_18 = arith.constant dense<0.000000e+00> : vector<16xf32>
      %26 = vector.multi_reduction <add>, %25, %cst_18 [1] : vector<16x32xf32> to vector<16xf32>
      %27 = vector.shape_cast %26 : vector<16xf32> to vector<16x1xf32>
      %cst_19 = arith.constant 3.200000e+01 : f32
      %28 = vector.broadcast %cst_19 : f32 to vector<16x1xf32>
      %29 = arith.divf %27, %28 : vector<16x1xf32>
      %30 = vector.broadcast %22 : vector<16x1xf32> to vector<16x32xf32>
      %31 = arith.subf %18, %30 : vector<16x32xf32>
      %cst_20 = arith.constant 9.99999974E-6 : f32
      %32 = vector.broadcast %cst_20 : f32 to vector<16x1xf32>
      %33 = arith.addf %29, %32 : vector<16x1xf32>
      %34 = math.rsqrt %33 : vector<16x1xf32>
      %35 = vector.broadcast %34 : vector<16x1xf32> to vector<16x32xf32>
      %36 = arith.mulf %31, %35 : vector<16x32xf32>
      %c0_21 = arith.constant 0 : index
      %c0_22 = arith.constant 0 : index
      %37 = vector.load %arg6[%c0_21, %c0_22] : memref<1x32xf32, #tpu.memory_space<vmem>>, vector<1x32xf32>
      %38 = vector.broadcast %37 : vector<1x32xf32> to vector<16x32xf32>
      %39 = arith.mulf %36, %38 : vector<16x32xf32>
      %c0_23 = arith.constant 0 : index
      %c0_24 = arith.constant 0 : index
      %40 = vector.load %arg7[%c0_23, %c0_24] : memref<1x32xf32, #tpu.memory_space<vmem>>, vector<1x32xf32>
      %41 = vector.broadcast %40 : vector<1x32xf32> to vector<16x32xf32>
      %42 = arith.addf %39, %41 : vector<16x32xf32>
      %43 = arith.truncf %42 : vector<16x32xf32> to vector<16x32xbf16>
      %c0_25 = arith.constant 0 : index
      %c0_26 = arith.constant 0 : index
      %44 = vector.load %arg8[%c0_25, %c0_26] : memref<16x32xbf16, #tpu.memory_space<vmem>>, vector<16x32xbf16>
      tpu.vector_store %arg8[%c0_25, %c0_26], %43 {strides = array<i32>} : memref<16x32xbf16, #tpu.memory_space<vmem>>, vector<16x32xbf16>,
    } else {
    }
    return
  }
  func.func @transform_0(%arg0: i32, %arg1: i32) -> (i32, i32) {
    %c0_i32 = arith.constant 0 : i32
    return %arg0, %arg1 : i32, i32
  }
  func.func @transform_1(%arg0: i32, %arg1: i32) -> (i32, i32) {
    %c0_i32 = arith.constant 0 : i32
    %c0_i32_0 = arith.constant 0 : i32
    return %arg1, %c0_i32 : i32, i32
  }
  func.func @transform_2(%arg0: i32, %arg1: i32) -> (i32, i32) {
    %c0_i32 = arith.constant 0 : i32
    %c0_i32_0 = arith.constant 0 : i32
    %c0_i32_1 = arith.constant 0 : i32
    return %c0_i32, %c0_i32_0 : i32, i32
  }
  func.func @transform_3(%arg0: i32, %arg1: i32) -> (i32, i32) {
    %c0_i32 = arith.constant 0 : i32
    %c0_i32_0 = arith.constant 0 : i32
    return %arg0, %c0_i32 : i32, i32
  }
  func.func @transform_4(%arg0: i32, %arg1: i32) -> (i32, i32) {
    %c0_i32 = arith.constant 0 : i32
    %c0_i32_0 = arith.constant 0 : i32
    %c0_i32_1 = arith.constant 0 : i32
    return %c0_i32, %c0_i32_0 : i32, i32
  }
  func.func @transform_5(%arg0: i32, %arg1: i32) -> (i32, i32) {
    %c0_i32 = arith.constant 0 : i32
    %c0_i32_0 = arith.constant 0 : i32
    %c0_i32_1 = arith.constant 0 : i32
    return %c0_i32, %c0_i32_0 : i32, i32
  }
  func.func @transform_6(%arg0: i32, %arg1: i32) -> (i32, i32) {
    %c0_i32 = arith.constant 0 : i32
    %c0_i32_0 = arith.constant 0 : i32
    return %arg0, %c0_i32 : i32, i32
  }
}

module attributes {stable_mosaic.version = 11 : i64} {
  func.func @_matmul_kernel(%arg0: i32, %arg1: i32, %arg2: i32, %arg3: memref<16x32xbf16, #tpu.memory_space<vmem>>, %arg4: memref<32x32xbf16, #tpu.memory_space<vmem>>, %arg5: memref<1x32xf32, #tpu.memory_space<vmem>>, %arg6: memref<16x32xbf16, #tpu.memory_space<vmem>>, %arg7: memref<16x32xf32, #tpu.memory_space<vmem>>) attributes {dimension_semantics = [#tpu.dimension_semantics<parallel>, #tpu.dimension_semantics<parallel>, #tpu.dimension_semantics<arbitrary>], iteration_bounds = array<i64: 1, 1, 1>, scalar_prefetch = 0 : i64, scratch_operands = 1 : i64, tpu.core_type = #tpu.core_type<tc>, window_params = [{transform_indices = @transform_0, window_bounds = array<i64: 16, 32>}, {transform_indices = @transform_1, window_bounds = array<i64: 32, 32>}, {transform_indices = @transform_2, window_bounds = array<i64: 1, 32>}, {transform_indices = @transform_3, window_bounds = array<i64: 16, 32>}]} {
    %c0_i32 = arith.constant 0 : i32
    %0 = arith.cmpi eq, %arg2, %c0_i32 : i32
    %1 = arith.extui %0 : i1 to i32
    %c0_i32_0 = arith.constant 0 : i32
    %2 = arith.cmpi ne, %1, %c0_i32_0 : i32
    scf.if %2 {
      %cst_10 = arith.constant 0.000000e+00 : f32
      %12 = vector.broadcast %cst_10 : f32 to vector<16x32xf32>
      %c0_11 = arith.constant 0 : index
      %c0_12 = arith.constant 0 : index
      %13 = vector.load %arg7[%c0_11, %c0_12] : memref<16x32xf32, #tpu.memory_space<vmem>>, vector<16x32xf32>
      tpu.vector_store %arg7[%c0_11, %c0_12], %12 {strides = array<i32>} : memref<16x32xf32, #tpu.memory_space<vmem>>, vector<16x32xf32>,
    } else {
    }
    %c0 = arith.constant 0 : index
    %c0_1 = arith.constant 0 : index
    %3 = vector.load %arg7[%c0, %c0_1] : memref<16x32xf32, #tpu.memory_space<vmem>>, vector<16x32xf32>
    %c0_2 = arith.constant 0 : index
    %c0_3 = arith.constant 0 : index
    %4 = vector.load %arg3[%c0_2, %c0_3] : memref<16x32xbf16, #tpu.memory_space<vmem>>, vector<16x32xbf16>
    %c0_4 = arith.constant 0 : index
    %c0_5 = arith.constant 0 : index
    %5 = vector.load %arg4[%c0_4, %c0_5] : memref<32x32xbf16, #tpu.memory_space<vmem>>, vector<32x32xbf16>
    %cst = arith.constant dense<0.000000e+00> : vector<16x32xf32>
    %6 = tpu.matmul %4, %5, %cst {dimension_numbers = #tpu.dot_dimension_numbers<[1], [0], [0], [1], [0, 0, 1, 1], [], []>} : vector<16x32xbf16>, vector<32x32xbf16>, vector<16x32xf32> -> vector<16x32xf32>
    %7 = arith.addf %3, %6 : vector<16x32xf32>
    %c0_6 = arith.constant 0 : index
    %c0_7 = arith.constant 0 : index
    %8 = vector.load %arg7[%c0_6, %c0_7] : memref<16x32xf32, #tpu.memory_space<vmem>>, vector<16x32xf32>
    tpu.vector_store %arg7[%c0_6, %c0_7], %7 {strides = array<i32>} : memref<16x32xf32, #tpu.memory_space<vmem>>, vector<16x32xf32>,
    %c0_i32_8 = arith.constant 0 : i32
    %9 = arith.cmpi eq, %arg2, %c0_i32_8 : i32
    %10 = arith.extui %9 : i1 to i32
    %c0_i32_9 = arith.constant 0 : i32
    %11 = arith.cmpi ne, %10, %c0_i32_9 : i32
    scf.if %11 {
      %c0_10 = arith.constant 0 : index
      %c0_11 = arith.constant 0 : index
      %12 = vector.load %arg7[%c0_10, %c0_11] : memref<16x32xf32, #tpu.memory_space<vmem>>, vector<16x32xf32>
      %c0_12 = arith.constant 0 : index
      %c0_13 = arith.constant 0 : index
      %13 = vector.load %arg5[%c0_12, %c0_13] : memref<1x32xf32, #tpu.memory_space<vmem>>, vector<1x32xf32>
      %14 = vector.broadcast %13 : vector<1x32xf32> to vector<16x32xf32>
      %15 = arith.addf %12, %14 : vector<16x32xf32>
      %16 = arith.truncf %15 : vector<16x32xf32> to vector<16x32xbf16>
      %c0_14 = arith.constant 0 : index
      %c0_15 = arith.constant 0 : index
      %17 = vector.load %arg6[%c0_14, %c0_15] : memref<16x32xbf16, #tpu.memory_space<vmem>>, vector<16x32xbf16>
      tpu.vector_store %arg6[%c0_14, %c0_15], %16 {strides = array<i32>} : memref<16x32xbf16, #tpu.memory_space<vmem>>, vector<16x32xbf16>,
    } else {
    }
    return
  }
  func.func @transform_0(%arg0: i32, %arg1: i32, %arg2: i32) -> (i32, i32) {
    %c0_i32 = arith.constant 0 : i32
    return %arg0, %arg2 : i32, i32
  }
  func.func @transform_1(%arg0: i32, %arg1: i32, %arg2: i32) -> (i32, i32) {
    %c0_i32 = arith.constant 0 : i32
    return %arg2, %arg1 : i32, i32
  }
  func.func @transform_2(%arg0: i32, %arg1: i32, %arg2: i32) -> (i32, i32) {
    %c0_i32 = arith.constant 0 : i32
    %c0_i32_0 = arith.constant 0 : i32
    return %c0_i32, %arg1 : i32, i32
  }
  func.func @transform_3(%arg0: i32, %arg1: i32, %arg2: i32) -> (i32, i32) {
    %c0_i32 = arith.constant 0 : i32
    return %arg0, %arg1 : i32, i32
  }
}

module attributes {stable_mosaic.version = 11 : i64} {
  func.func @_flash_attn_kernel(%arg0: i32, %arg1: i32, %arg2: i32, %arg3: memref<1x8x32xbf16, #tpu.memory_space<vmem>>, %arg4: memref<1x8x32xbf16, #tpu.memory_space<vmem>>, %arg5: memref<1x8x32xbf16, #tpu.memory_space<vmem>>, %arg6: memref<1x1x8xf32, #tpu.memory_space<vmem>>, %arg7: memref<1x8x32xbf16, #tpu.memory_space<vmem>>, %arg8: memref<4x8x8xbf16, #tpu.memory_space<vmem>>, %arg9: memref<4x8x1xf32, #tpu.memory_space<vmem>>, %arg10: memref<4x8x1xf32, #tpu.memory_space<vmem>>, %arg11: memref<4x8x8xf32, #tpu.memory_space<vmem>>) attributes {dimension_semantics = [#tpu.dimension_semantics<parallel>, #tpu.dimension_semantics<parallel>, #tpu.dimension_semantics<arbitrary>], iteration_bounds = array<i64: 2, 1, 1>, scalar_prefetch = 0 : i64, scratch_operands = 4 : i64, tpu.core_type = #tpu.core_type<tc>, window_params = [{transform_indices = @transform_0, window_bounds = array<i64: 1, 8, 32>}, {transform_indices = @transform_1, window_bounds = array<i64: 1, 8, 32>}, {transform_indices = @transform_2, window_bounds = array<i64: 1, 8, 32>}, {transform_indices = @transform_3, window_bounds = array<i64: 1, 1, 8>}, {transform_indices = @transform_4, window_bounds = array<i64: 1, 8, 32>}]} {
    %c0_i32 = arith.constant 0 : i32
    %0 = arith.cmpi eq, %arg2, %c0_i32 : i32
    %1 = arith.extui %0 : i1 to i32
    %c0_i32_0 = arith.constant 0 : i32
    %2 = arith.cmpi ne, %1, %c0_i32_0 : i32
    scf.if %2 {
      %c0 = arith.constant 0 : index
      %c0_5 = arith.constant 0 : index
      %c0_6 = arith.constant 0 : index
      %12 = vector.load %arg3[%c0, %c0_5, %c0_6] : memref<1x8x32xbf16, #tpu.memory_space<vmem>>, vector<1x8x8xbf16>
      %13 = vector.shape_cast %12 : vector<1x8x8xbf16> to vector<8x8xbf16>
      %14 = arith.extf %13 : vector<8x8xbf16> to vector<8x8xf32>
      %cst = arith.constant 0.353553385 : f32
      %15 = vector.broadcast %cst : f32 to vector<8x8xf32>
      %16 = arith.mulf %14, %15 : vector<8x8xf32>
      %17 = arith.truncf %16 : vector<8x8xf32> to vector<8x8xbf16>
      %c0_7 = arith.constant 0 : index
      %c0_8 = arith.constant 0 : index
      %c0_9 = arith.constant 0 : index
      %18 = vector.load %arg8[%c0_7, %c0_8, %c0_9] : memref<4x8x8xbf16, #tpu.memory_space<vmem>>, vector<1x8x8xbf16>
      %19 = vector.shape_cast %18 : vector<1x8x8xbf16> to vector<8x8xbf16>
      %20 = vector.shape_cast %17 : vector<8x8xbf16> to vector<1x8x8xbf16>
      tpu.vector_store %arg8[%c0_7, %c0_8, %c0_9], %20 {strides = array<i32>} : memref<4x8x8xbf16, #tpu.memory_space<vmem>>, vector<1x8x8xbf16>,
      %c0_10 = arith.constant 0 : index
      %c0_11 = arith.constant 0 : index
      %c8 = arith.constant 8 : index
      %21 = vector.load %arg3[%c0_10, %c0_11, %c8] : memref<1x8x32xbf16, #tpu.memory_space<vmem>>, vector<1x8x8xbf16>
      %22 = vector.shape_cast %21 : vector<1x8x8xbf16> to vector<8x8xbf16>
      %23 = arith.extf %22 : vector<8x8xbf16> to vector<8x8xf32>
      %cst_12 = arith.constant 0.353553385 : f32
      %24 = vector.broadcast %cst_12 : f32 to vector<8x8xf32>
      %25 = arith.mulf %23, %24 : vector<8x8xf32>
      %26 = arith.truncf %25 : vector<8x8xf32> to vector<8x8xbf16>
      %c1 = arith.constant 1 : index
      %c0_13 = arith.constant 0 : index
      %c0_14 = arith.constant 0 : index
      %27 = vector.load %arg8[%c1, %c0_13, %c0_14] : memref<4x8x8xbf16, #tpu.memory_space<vmem>>, vector<1x8x8xbf16>
      %28 = vector.shape_cast %27 : vector<1x8x8xbf16> to vector<8x8xbf16>
      %29 = vector.shape_cast %26 : vector<8x8xbf16> to vector<1x8x8xbf16>
      tpu.vector_store %arg8[%c1, %c0_13, %c0_14], %29 {strides = array<i32>} : memref<4x8x8xbf16, #tpu.memory_space<vmem>>, vector<1x8x8xbf16>,
      %c0_15 = arith.constant 0 : index
      %c0_16 = arith.constant 0 : index
      %c16 = arith.constant 16 : index
      %30 = vector.load %arg3[%c0_15, %c0_16, %c16] : memref<1x8x32xbf16, #tpu.memory_space<vmem>>, vector<1x8x8xbf16>
      %31 = vector.shape_cast %30 : vector<1x8x8xbf16> to vector<8x8xbf16>
      %32 = arith.extf %31 : vector<8x8xbf16> to vector<8x8xf32>
      %cst_17 = arith.constant 0.353553385 : f32
      %33 = vector.broadcast %cst_17 : f32 to vector<8x8xf32>
      %34 = arith.mulf %32, %33 : vector<8x8xf32>
      %35 = arith.truncf %34 : vector<8x8xf32> to vector<8x8xbf16>
      %c2 = arith.constant 2 : index
      %c0_18 = arith.constant 0 : index
      %c0_19 = arith.constant 0 : index
      %36 = vector.load %arg8[%c2, %c0_18, %c0_19] : memref<4x8x8xbf16, #tpu.memory_space<vmem>>, vector<1x8x8xbf16>
      %37 = vector.shape_cast %36 : vector<1x8x8xbf16> to vector<8x8xbf16>
      %38 = vector.shape_cast %35 : vector<8x8xbf16> to vector<1x8x8xbf16>
      tpu.vector_store %arg8[%c2, %c0_18, %c0_19], %38 {strides = array<i32>} : memref<4x8x8xbf16, #tpu.memory_space<vmem>>, vector<1x8x8xbf16>,
      %c0_20 = arith.constant 0 : index
      %c0_21 = arith.constant 0 : index
      %c24 = arith.constant 24 : index
      %39 = vector.load %arg3[%c0_20, %c0_21, %c24] : memref<1x8x32xbf16, #tpu.memory_space<vmem>>, vector<1x8x8xbf16>
      %40 = vector.shape_cast %39 : vector<1x8x8xbf16> to vector<8x8xbf16>
      %41 = arith.extf %40 : vector<8x8xbf16> to vector<8x8xf32>
      %cst_22 = arith.constant 0.353553385 : f32
      %42 = vector.broadcast %cst_22 : f32 to vector<8x8xf32>
      %43 = arith.mulf %41, %42 : vector<8x8xf32>
      %44 = arith.truncf %43 : vector<8x8xf32> to vector<8x8xbf16>
      %c3 = arith.constant 3 : index
      %c0_23 = arith.constant 0 : index
      %c0_24 = arith.constant 0 : index
      %45 = vector.load %arg8[%c3, %c0_23, %c0_24] : memref<4x8x8xbf16, #tpu.memory_space<vmem>>, vector<1x8x8xbf16>
      %46 = vector.shape_cast %45 : vector<1x8x8xbf16> to vector<8x8xbf16>
      %47 = vector.shape_cast %44 : vector<8x8xbf16> to vector<1x8x8xbf16>
      tpu.vector_store %arg8[%c3, %c0_23, %c0_24], %47 {strides = array<i32>} : memref<4x8x8xbf16, #tpu.memory_space<vmem>>, vector<1x8x8xbf16>,
      %cst_25 = arith.constant 0xFF800000 : f32
      %48 = vector.broadcast %cst_25 : f32 to vector<4x8x1xf32>
      %c0_26 = arith.constant 0 : index
      %c0_27 = arith.constant 0 : index
      %c0_28 = arith.constant 0 : index
      %49 = vector.load %arg9[%c0_26, %c0_27, %c0_28] : memref<4x8x1xf32, #tpu.memory_space<vmem>>, vector<4x8x1xf32>
      tpu.vector_store %arg9[%c0_26, %c0_27, %c0_28], %48 {strides = array<i32>} : memref<4x8x1xf32, #tpu.memory_space<vmem>>, vector<4x8x1xf32>,
      %cst_29 = arith.constant 0.000000e+00 : f32
      %50 = vector.broadcast %cst_29 : f32 to vector<4x8x1xf32>
      %c0_30 = arith.constant 0 : index
      %c0_31 = arith.constant 0 : index
      %c0_32 = arith.constant 0 : index
      %51 = vector.load %arg10[%c0_30, %c0_31, %c0_32] : memref<4x8x1xf32, #tpu.memory_space<vmem>>, vector<4x8x1xf32>
      tpu.vector_store %arg10[%c0_30, %c0_31, %c0_32], %50 {strides = array<i32>} : memref<4x8x1xf32, #tpu.memory_space<vmem>>, vector<4x8x1xf32>,
      %cst_33 = arith.constant 0.000000e+00 : f32
      %52 = vector.broadcast %cst_33 : f32 to vector<4x8x8xf32>
      %c0_34 = arith.constant 0 : index
      %c0_35 = arith.constant 0 : index
      %c0_36 = arith.constant 0 : index
      %53 = vector.load %arg11[%c0_34, %c0_35, %c0_36] : memref<4x8x8xf32, #tpu.memory_space<vmem>>, vector<4x8x8xf32>
      tpu.vector_store %arg11[%c0_34, %c0_35, %c0_36], %52 {strides = array<i32>} : memref<4x8x8xf32, #tpu.memory_space<vmem>>, vector<4x8x8xf32>,
    } else {
    }
    %c8_i32 = arith.constant 8 : i32
    %3 = arith.muli %arg2, %c8_i32 : i32
    %c8_i32_1 = arith.constant 8 : i32
    %4 = arith.muli %arg1, %c8_i32_1 : i32
    %c7_i32 = arith.constant 7 : i32
    %5 = arith.addi %4, %c7_i32 : i32
    %6 = arith.cmpi sle, %3, %5 : i32
    %7 = arith.extui %6 : i1 to i32
    %c0_i32_2 = arith.constant 0 : i32
    %8 = arith.cmpi ne, %7, %c0_i32_2 : i32
    scf.if %8 {
      %c0 = arith.constant 0 : index
      %c0_5 = arith.constant 0 : index
      %c0_6 = arith.constant 0 : index
      %12 = vector.load %arg6[%c0, %c0_5, %c0_6] : memref<1x1x8xf32, #tpu.memory_space<vmem>>, vector<1x1x8xf32>
      %13 = vector.shape_cast %12 : vector<1x1x8xf32> to vector<1x8xf32>
      %cst = arith.constant 1.000000e+00 : f32
      %14 = vector.broadcast %cst : f32 to vector<1x8xf32>
      %15 = arith.subf %14, %13 : vector<1x8xf32>
      %cst_7 = arith.constant -1.000000e+09 : f32
      %16 = vector.broadcast %cst_7 : f32 to vector<1x8xf32>
      %17 = arith.mulf %15, %16 : vector<1x8xf32>
      %18 = tpu.iota {dimensions = array<i32: 0>} : vector<8x8xi32>
      %c8_i32_8 = arith.constant 8 : i32
      %19 = arith.muli %arg1, %c8_i32_8 : i32
      %20 = vector.broadcast %19 : i32 to vector<8x8xi32>
      %21 = arith.addi %18, %20 : vector<8x8xi32>
      %22 = tpu.iota {dimensions = array<i32: 1>} : vector<8x8xi32>
      %c8_i32_9 = arith.constant 8 : i32
      %23 = arith.muli %arg2, %c8_i32_9 : i32
      %24 = vector.broadcast %23 : i32 to vector<8x8xi32>
      %25 = arith.addi %22, %24 : vector<8x8xi32>
      %26 = arith.cmpi sle, %25, %21 : vector<8x8xi32>
      %cst_10 = arith.constant 0.000000e+00 : f32
      %cst_11 = arith.constant -1.000000e+09 : f32
      %27 = vector.broadcast %cst_10 : f32 to vector<8x8xf32>
      %28 = vector.broadcast %cst_11 : f32 to vector<8x8xf32>
      %29 = arith.select %26, %27, %28 : vector<8x8xi1>, vector<8x8xf32>
      %30 = vector.broadcast %17 : vector<1x8xf32> to vector<8x8xf32>
      %31 = arith.addf %30, %29 : vector<8x8xf32>
      %c0_12 = arith.constant 0 : index
      %c0_13 = arith.constant 0 : index
      %c0_14 = arith.constant 0 : index
      %32 = vector.load %arg4[%c0_12, %c0_13, %c0_14] : memref<1x8x32xbf16, #tpu.memory_space<vmem>>, vector<1x8x8xbf16>
      %33 = vector.shape_cast %32 : vector<1x8x8xbf16> to vector<8x8xbf16>
      %c0_15 = arith.constant 0 : index
      %c0_16 = arith.constant 0 : index
      %c0_17 = arith.constant 0 : index
      %34 = vector.load %arg5[%c0_15, %c0_16, %c0_17] : memref<1x8x32xbf16, #tpu.memory_space<vmem>>, vector<1x8x8xbf16>
      %35 = vector.shape_cast %34 : vector<1x8x8xbf16> to vector<8x8xbf16>
      %c0_18 = arith.constant 0 : index
      %c0_19 = arith.constant 0 : index
      %c0_20 = arith.constant 0 : index
      %36 = vector.load %arg8[%c0_18, %c0_19, %c0_20] : memref<4x8x8xbf16, #tpu.memory_space<vmem>>, vector<1x8x8xbf16>
      %37 = vector.shape_cast %36 : vector<1x8x8xbf16> to vector<8x8xbf16>
      %cst_21 = arith.constant dense<0.000000e+00> : vector<8x8xf32>
      %38 = tpu.matmul %37, %33, %cst_21 {dimension_numbers = #tpu.dot_dimension_numbers<[1], [1], [0], [0], [0, 0, 1, 0], [], []>} : vector<8x8xbf16>, vector<8x8xbf16>, vector<8x8xf32> -> vector<8x8xf32>
      %39 = arith.addf %38, %31 : vector<8x8xf32>
      %c0_22 = arith.constant 0 : index
      %c0_23 = arith.constant 0 : index
      %c0_24 = arith.constant 0 : index
      %40 = vector.load %arg9[%c0_22, %c0_23, %c0_24] : memref<4x8x1xf32, #tpu.memory_space<vmem>>, vector<1x8x1xf32>
      %41 = vector.shape_cast %40 : vector<1x8x1xf32> to vector<8x1xf32>
      %cst_25 = arith.constant dense<0xFF800000> : vector<8xf32>
      %42 = vector.multi_reduction <maximumf>, %39, %cst_25 [1] : vector<8x8xf32> to vector<8xf32>
      %43 = vector.shape_cast %42 : vector<8xf32> to vector<8x1xf32>
      %44 = arith.maximumf %41, %43 : vector<8x1xf32>
      %45 = arith.subf %41, %44 : vector<8x1xf32>
      %46 = math.exp %45 : vector<8x1xf32>
      %47 = vector.broadcast %44 : vector<8x1xf32> to vector<8x8xf32>
      %48 = arith.subf %39, %47 : vector<8x8xf32>
      %49 = math.exp %48 : vector<8x8xf32>
      %c0_26 = arith.constant 0 : index
      %c0_27 = arith.constant 0 : index
      %c0_28 = arith.constant 0 : index
      %50 = vector.load %arg10[%c0_26, %c0_27, %c0_28] : memref<4x8x1xf32, #tpu.memory_space<vmem>>, vector<1x8x1xf32>
      %51 = vector.shape_cast %50 : vector<1x8x1xf32> to vector<8x1xf32>
      %52 = arith.mulf %46, %51 : vector<8x1xf32>
      %cst_29 = arith.constant dense<0.000000e+00> : vector<8xf32>
      %53 = vector.multi_reduction <add>, %49, %cst_29 [1] : vector<8x8xf32> to vector<8xf32>
      %54 = vector.shape_cast %53 : vector<8xf32> to vector<8x1xf32>
      %55 = arith.addf %52, %54 : vector<8x1xf32>
      %c0_30 = arith.constant 0 : index
      %c0_31 = arith.constant 0 : index
      %c0_32 = arith.constant 0 : index
      %56 = vector.load %arg10[%c0_30, %c0_31, %c0_32] : memref<4x8x1xf32, #tpu.memory_space<vmem>>, vector<1x8x1xf32>
      %57 = vector.shape_cast %56 : vector<1x8x1xf32> to vector<8x1xf32>
      %58 = vector.shape_cast %55 : vector<8x1xf32> to vector<1x8x1xf32>
      tpu.vector_store %arg10[%c0_30, %c0_31, %c0_32], %58 {strides = array<i32>} : memref<4x8x1xf32, #tpu.memory_space<vmem>>, vector<1x8x1xf32>,
      %c0_33 = arith.constant 0 : index
      %c0_34 = arith.constant 0 : index
      %c0_35 = arith.constant 0 : index
      %59 = vector.load %arg11[%c0_33, %c0_34, %c0_35] : memref<4x8x8xf32, #tpu.memory_space<vmem>>, vector<1x8x8xf32>
      %60 = vector.shape_cast %59 : vector<1x8x8xf32> to vector<8x8xf32>
      %61 = vector.broadcast %46 : vector<8x1xf32> to vector<8x8xf32>
      %62 = arith.mulf %61, %60 : vector<8x8xf32>
      %63 = arith.truncf %49 : vector<8x8xf32> to vector<8x8xbf16>
      %cst_36 = arith.constant dense<0.000000e+00> : vector<8x8xf32>
      %64 = tpu.matmul %63, %35, %cst_36 {dimension_numbers = #tpu.dot_dimension_numbers<[1], [0], [0], [1], [0, 0, 1, 1], [], []>} : vector<8x8xbf16>, vector<8x8xbf16>, vector<8x8xf32> -> vector<8x8xf32>
      %65 = arith.addf %62, %64 : vector<8x8xf32>
      %c0_37 = arith.constant 0 : index
      %c0_38 = arith.constant 0 : index
      %c0_39 = arith.constant 0 : index
      %66 = vector.load %arg11[%c0_37, %c0_38, %c0_39] : memref<4x8x8xf32, #tpu.memory_space<vmem>>, vector<1x8x8xf32>
      %67 = vector.shape_cast %66 : vector<1x8x8xf32> to vector<8x8xf32>
      %68 = vector.shape_cast %65 : vector<8x8xf32> to vector<1x8x8xf32>
      tpu.vector_store %arg11[%c0_37, %c0_38, %c0_39], %68 {strides = array<i32>} : memref<4x8x8xf32, #tpu.memory_space<vmem>>, vector<1x8x8xf32>,
      %c0_40 = arith.constant 0 : index
      %c0_41 = arith.constant 0 : index
      %c0_42 = arith.constant 0 : index
      %69 = vector.load %arg9[%c0_40, %c0_41, %c0_42] : memref<4x8x1xf32, #tpu.memory_space<vmem>>, vector<1x8x1xf32>
      %70 = vector.shape_cast %69 : vector<1x8x1xf32> to vector<8x1xf32>
      %71 = vector.shape_cast %44 : vector<8x1xf32> to vector<1x8x1xf32>
      tpu.vector_store %arg9[%c0_40, %c0_41, %c0_42], %71 {strides = array<i32>} : memref<4x8x1xf32, #tpu.memory_space<vmem>>, vector<1x8x1xf32>,
      %c0_43 = arith.constant 0 : index
      %c0_44 = arith.constant 0 : index
      %c8 = arith.constant 8 : index
      %72 = vector.load %arg4[%c0_43, %c0_44, %c8] : memref<1x8x32xbf16, #tpu.memory_space<vmem>>, vector<1x8x8xbf16>
      %73 = vector.shape_cast %72 : vector<1x8x8xbf16> to vector<8x8xbf16>
      %c0_45 = arith.constant 0 : index
      %c0_46 = arith.constant 0 : index
      %c8_47 = arith.constant 8 : index
      %74 = vector.load %arg5[%c0_45, %c0_46, %c8_47] : memref<1x8x32xbf16, #tpu.memory_space<vmem>>, vector<1x8x8xbf16>
      %75 = vector.shape_cast %74 : vector<1x8x8xbf16> to vector<8x8xbf16>
      %c1 = arith.constant 1 : index
      %c0_48 = arith.constant 0 : index
      %c0_49 = arith.constant 0 : index
      %76 = vector.load %arg8[%c1, %c0_48, %c0_49] : memref<4x8x8xbf16, #tpu.memory_space<vmem>>, vector<1x8x8xbf16>
      %77 = vector.shape_cast %76 : vector<1x8x8xbf16> to vector<8x8xbf16>
      %cst_50 = arith.constant dense<0.000000e+00> : vector<8x8xf32>
      %78 = tpu.matmul %77, %73, %cst_50 {dimension_numbers = #tpu.dot_dimension_numbers<[1], [1], [0], [0], [0, 0, 1, 0], [], []>} : vector<8x8xbf16>, vector<8x8xbf16>, vector<8x8xf32> -> vector<8x8xf32>
      %79 = arith.addf %78, %31 : vector<8x8xf32>
      %c1_51 = arith.constant 1 : index
      %c0_52 = arith.constant 0 : index
      %c0_53 = arith.constant 0 : index
      %80 = vector.load %arg9[%c1_51, %c0_52, %c0_53] : memref<4x8x1xf32, #tpu.memory_space<vmem>>, vector<1x8x1xf32>
      %81 = vector.shape_cast %80 : vector<1x8x1xf32> to vector<8x1xf32>
      %cst_54 = arith.constant dense<0xFF800000> : vector<8xf32>
      %82 = vector.multi_reduction <maximumf>, %79, %cst_54 [1] : vector<8x8xf32> to vector<8xf32>
      %83 = vector.shape_cast %82 : vector<8xf32> to vector<8x1xf32>
      %84 = arith.maximumf %81, %83 : vector<8x1xf32>
      %85 = arith.subf %81, %84 : vector<8x1xf32>
      %86 = math.exp %85 : vector<8x1xf32>
      %87 = vector.broadcast %84 : vector<8x1xf32> to vector<8x8xf32>
      %88 = arith.subf %79, %87 : vector<8x8xf32>
      %89 = math.exp %88 : vector<8x8xf32>
      %c1_55 = arith.constant 1 : index
      %c0_56 = arith.constant 0 : index
      %c0_57 = arith.constant 0 : index
      %90 = vector.load %arg10[%c1_55, %c0_56, %c0_57] : memref<4x8x1xf32, #tpu.memory_space<vmem>>, vector<1x8x1xf32>
      %91 = vector.shape_cast %90 : vector<1x8x1xf32> to vector<8x1xf32>
      %92 = arith.mulf %86, %91 : vector<8x1xf32>
      %cst_58 = arith.constant dense<0.000000e+00> : vector<8xf32>
      %93 = vector.multi_reduction <add>, %89, %cst_58 [1] : vector<8x8xf32> to vector<8xf32>
      %94 = vector.shape_cast %93 : vector<8xf32> to vector<8x1xf32>
      %95 = arith.addf %92, %94 : vector<8x1xf32>
      %c1_59 = arith.constant 1 : index
      %c0_60 = arith.constant 0 : index
      %c0_61 = arith.constant 0 : index
      %96 = vector.load %arg10[%c1_59, %c0_60, %c0_61] : memref<4x8x1xf32, #tpu.memory_space<vmem>>, vector<1x8x1xf32>
      %97 = vector.shape_cast %96 : vector<1x8x1xf32> to vector<8x1xf32>
      %98 = vector.shape_cast %95 : vector<8x1xf32> to vector<1x8x1xf32>
      tpu.vector_store %arg10[%c1_59, %c0_60, %c0_61], %98 {strides = array<i32>} : memref<4x8x1xf32, #tpu.memory_space<vmem>>, vector<1x8x1xf32>,
      %c1_62 = arith.constant 1 : index
      %c0_63 = arith.constant 0 : index
      %c0_64 = arith.constant 0 : index
      %99 = vector.load %arg11[%c1_62, %c0_63, %c0_64] : memref<4x8x8xf32, #tpu.memory_space<vmem>>, vector<1x8x8xf32>
      %100 = vector.shape_cast %99 : vector<1x8x8xf32> to vector<8x8xf32>
      %101 = vector.broadcast %86 : vector<8x1xf32> to vector<8x8xf32>
      %102 = arith.mulf %101, %100 : vector<8x8xf32>
      %103 = arith.truncf %89 : vector<8x8xf32> to vector<8x8xbf16>
      %cst_65 = arith.constant dense<0.000000e+00> : vector<8x8xf32>
      %104 = tpu.matmul %103, %75, %cst_65 {dimension_numbers = #tpu.dot_dimension_numbers<[1], [0], [0], [1], [0, 0, 1, 1], [], []>} : vector<8x8xbf16>, vector<8x8xbf16>, vector<8x8xf32> -> vector<8x8xf32>
      %105 = arith.addf %102, %104 : vector<8x8xf32>
      %c1_66 = arith.constant 1 : index
      %c0_67 = arith.constant 0 : index
      %c0_68 = arith.constant 0 : index
      %106 = vector.load %arg11[%c1_66, %c0_67, %c0_68] : memref<4x8x8xf32, #tpu.memory_space<vmem>>, vector<1x8x8xf32>
      %107 = vector.shape_cast %106 : vector<1x8x8xf32> to vector<8x8xf32>
      %108 = vector.shape_cast %105 : vector<8x8xf32> to vector<1x8x8xf32>
      tpu.vector_store %arg11[%c1_66, %c0_67, %c0_68], %108 {strides = array<i32>} : memref<4x8x8xf32, #tpu.memory_space<vmem>>, vector<1x8x8xf32>,
      %c1_69 = arith.constant 1 : index
      %c0_70 = arith.constant 0 : index
      %c0_71 = arith.constant 0 : index
      %109 = vector.load %arg9[%c1_69, %c0_70, %c0_71] : memref<4x8x1xf32, #tpu.memory_space<vmem>>, vector<1x8x1xf32>
      %110 = vector.shape_cast %109 : vector<1x8x1xf32> to vector<8x1xf32>
      %111 = vector.shape_cast %84 : vector<8x1xf32> to vector<1x8x1xf32>
      tpu.vector_store %arg9[%c1_69, %c0_70, %c0_71], %111 {strides = array<i32>} : memref<4x8x1xf32, #tpu.memory_space<vmem>>, vector<1x8x1xf32>,
      %c0_72 = arith.constant 0 : index
      %c0_73 = arith.constant 0 : index
      %c16 = arith.constant 16 : index
      %112 = vector.load %arg4[%c0_72, %c0_73, %c16] : memref<1x8x32xbf16, #tpu.memory_space<vmem>>, vector<1x8x8xbf16>
      %113 = vector.shape_cast %112 : vector<1x8x8xbf16> to vector<8x8xbf16>
      %c0_74 = arith.constant 0 : index
      %c0_75 = arith.constant 0 : index
      %c16_76 = arith.constant 16 : index
      %114 = vector.load %arg5[%c0_74, %c0_75, %c16_76] : memref<1x8x32xbf16, #tpu.memory_space<vmem>>, vector<1x8x8xbf16>
      %115 = vector.shape_cast %114 : vector<1x8x8xbf16> to vector<8x8xbf16>
      %c2 = arith.constant 2 : index
      %c0_77 = arith.constant 0 : index
      %c0_78 = arith.constant 0 : index
      %116 = vector.load %arg8[%c2, %c0_77, %c0_78] : memref<4x8x8xbf16, #tpu.memory_space<vmem>>, vector<1x8x8xbf16>
      %117 = vector.shape_cast %116 : vector<1x8x8xbf16> to vector<8x8xbf16>
      %cst_79 = arith.constant dense<0.000000e+00> : vector<8x8xf32>
      %118 = tpu.matmul %117, %113, %cst_79 {dimension_numbers = #tpu.dot_dimension_numbers<[1], [1], [0], [0], [0, 0, 1, 0], [], []>} : vector<8x8xbf16>, vector<8x8xbf16>, vector<8x8xf32> -> vector<8x8xf32>
      %119 = arith.addf %118, %31 : vector<8x8xf32>
      %c2_80 = arith.constant 2 : index
      %c0_81 = arith.constant 0 : index
      %c0_82 = arith.constant 0 : index
      %120 = vector.load %arg9[%c2_80, %c0_81, %c0_82] : memref<4x8x1xf32, #tpu.memory_space<vmem>>, vector<1x8x1xf32>
      %121 = vector.shape_cast %120 : vector<1x8x1xf32> to vector<8x1xf32>
      %cst_83 = arith.constant dense<0xFF800000> : vector<8xf32>
      %122 = vector.multi_reduction <maximumf>, %119, %cst_83 [1] : vector<8x8xf32> to vector<8xf32>
      %123 = vector.shape_cast %122 : vector<8xf32> to vector<8x1xf32>
      %124 = arith.maximumf %121, %123 : vector<8x1xf32>
      %125 = arith.subf %121, %124 : vector<8x1xf32>
      %126 = math.exp %125 : vector<8x1xf32>
      %127 = vector.broadcast %124 : vector<8x1xf32> to vector<8x8xf32>
      %128 = arith.subf %119, %127 : vector<8x8xf32>
      %129 = math.exp %128 : vector<8x8xf32>
      %c2_84 = arith.constant 2 : index
      %c0_85 = arith.constant 0 : index
      %c0_86 = arith.constant 0 : index
      %130 = vector.load %arg10[%c2_84, %c0_85, %c0_86] : memref<4x8x1xf32, #tpu.memory_space<vmem>>, vector<1x8x1xf32>
      %131 = vector.shape_cast %130 : vector<1x8x1xf32> to vector<8x1xf32>
      %132 = arith.mulf %126, %131 : vector<8x1xf32>
      %cst_87 = arith.constant dense<0.000000e+00> : vector<8xf32>
      %133 = vector.multi_reduction <add>, %129, %cst_87 [1] : vector<8x8xf32> to vector<8xf32>
      %134 = vector.shape_cast %133 : vector<8xf32> to vector<8x1xf32>
      %135 = arith.addf %132, %134 : vector<8x1xf32>
      %c2_88 = arith.constant 2 : index
      %c0_89 = arith.constant 0 : index
      %c0_90 = arith.constant 0 : index
      %136 = vector.load %arg10[%c2_88, %c0_89, %c0_90] : memref<4x8x1xf32, #tpu.memory_space<vmem>>, vector<1x8x1xf32>
      %137 = vector.shape_cast %136 : vector<1x8x1xf32> to vector<8x1xf32>
      %138 = vector.shape_cast %135 : vector<8x1xf32> to vector<1x8x1xf32>
      tpu.vector_store %arg10[%c2_88, %c0_89, %c0_90], %138 {strides = array<i32>} : memref<4x8x1xf32, #tpu.memory_space<vmem>>, vector<1x8x1xf32>,
      %c2_91 = arith.constant 2 : index
      %c0_92 = arith.constant 0 : index
      %c0_93 = arith.constant 0 : index
      %139 = vector.load %arg11[%c2_91, %c0_92, %c0_93] : memref<4x8x8xf32, #tpu.memory_space<vmem>>, vector<1x8x8xf32>
      %140 = vector.shape_cast %139 : vector<1x8x8xf32> to vector<8x8xf32>
      %141 = vector.broadcast %126 : vector<8x1xf32> to vector<8x8xf32>
      %142 = arith.mulf %141, %140 : vector<8x8xf32>
      %143 = arith.truncf %129 : vector<8x8xf32> to vector<8x8xbf16>
      %cst_94 = arith.constant dense<0.000000e+00> : vector<8x8xf32>
      %144 = tpu.matmul %143, %115, %cst_94 {dimension_numbers = #tpu.dot_dimension_numbers<[1], [0], [0], [1], [0, 0, 1, 1], [], []>} : vector<8x8xbf16>, vector<8x8xbf16>, vector<8x8xf32> -> vector<8x8xf32>
      %145 = arith.addf %142, %144 : vector<8x8xf32>
      %c2_95 = arith.constant 2 : index
      %c0_96 = arith.constant 0 : index
      %c0_97 = arith.constant 0 : index
      %146 = vector.load %arg11[%c2_95, %c0_96, %c0_97] : memref<4x8x8xf32, #tpu.memory_space<vmem>>, vector<1x8x8xf32>
      %147 = vector.shape_cast %146 : vector<1x8x8xf32> to vector<8x8xf32>
      %148 = vector.shape_cast %145 : vector<8x8xf32> to vector<1x8x8xf32>
      tpu.vector_store %arg11[%c2_95, %c0_96, %c0_97], %148 {strides = array<i32>} : memref<4x8x8xf32, #tpu.memory_space<vmem>>, vector<1x8x8xf32>,
      %c2_98 = arith.constant 2 : index
      %c0_99 = arith.constant 0 : index
      %c0_100 = arith.constant 0 : index
      %149 = vector.load %arg9[%c2_98, %c0_99, %c0_100] : memref<4x8x1xf32, #tpu.memory_space<vmem>>, vector<1x8x1xf32>
      %150 = vector.shape_cast %149 : vector<1x8x1xf32> to vector<8x1xf32>
      %151 = vector.shape_cast %124 : vector<8x1xf32> to vector<1x8x1xf32>
      tpu.vector_store %arg9[%c2_98, %c0_99, %c0_100], %151 {strides = array<i32>} : memref<4x8x1xf32, #tpu.memory_space<vmem>>, vector<1x8x1xf32>,
      %c0_101 = arith.constant 0 : index
      %c0_102 = arith.constant 0 : index
      %c24 = arith.constant 24 : index
      %152 = vector.load %arg4[%c0_101, %c0_102, %c24] : memref<1x8x32xbf16, #tpu.memory_space<vmem>>, vector<1x8x8xbf16>
      %153 = vector.shape_cast %152 : vector<1x8x8xbf16> to vector<8x8xbf16>
      %c0_103 = arith.constant 0 : index
      %c0_104 = arith.constant 0 : index
      %c24_105 = arith.constant 24 : index
      %154 = vector.load %arg5[%c0_103, %c0_104, %c24_105] : memref<1x8x32xbf16, #tpu.memory_space<vmem>>, vector<1x8x8xbf16>
      %155 = vector.shape_cast %154 : vector<1x8x8xbf16> to vector<8x8xbf16>
      %c3 = arith.constant 3 : index
      %c0_106 = arith.constant 0 : index
      %c0_107 = arith.constant 0 : index
      %156 = vector.load %arg8[%c3, %c0_106, %c0_107] : memref<4x8x8xbf16, #tpu.memory_space<vmem>>, vector<1x8x8xbf16>
      %157 = vector.shape_cast %156 : vector<1x8x8xbf16> to vector<8x8xbf16>
      %cst_108 = arith.constant dense<0.000000e+00> : vector<8x8xf32>
      %158 = tpu.matmul %157, %153, %cst_108 {dimension_numbers = #tpu.dot_dimension_numbers<[1], [1], [0], [0], [0, 0, 1, 0], [], []>} : vector<8x8xbf16>, vector<8x8xbf16>, vector<8x8xf32> -> vector<8x8xf32>
      %159 = arith.addf %158, %31 : vector<8x8xf32>
      %c3_109 = arith.constant 3 : index
      %c0_110 = arith.constant 0 : index
      %c0_111 = arith.constant 0 : index
      %160 = vector.load %arg9[%c3_109, %c0_110, %c0_111] : memref<4x8x1xf32, #tpu.memory_space<vmem>>, vector<1x8x1xf32>
      %161 = vector.shape_cast %160 : vector<1x8x1xf32> to vector<8x1xf32>
      %cst_112 = arith.constant dense<0xFF800000> : vector<8xf32>
      %162 = vector.multi_reduction <maximumf>, %159, %cst_112 [1] : vector<8x8xf32> to vector<8xf32>
      %163 = vector.shape_cast %162 : vector<8xf32> to vector<8x1xf32>
      %164 = arith.maximumf %161, %163 : vector<8x1xf32>
      %165 = arith.subf %161, %164 : vector<8x1xf32>
      %166 = math.exp %165 : vector<8x1xf32>
      %167 = vector.broadcast %164 : vector<8x1xf32> to vector<8x8xf32>
      %168 = arith.subf %159, %167 : vector<8x8xf32>
      %169 = math.exp %168 : vector<8x8xf32>
      %c3_113 = arith.constant 3 : index
      %c0_114 = arith.constant 0 : index
      %c0_115 = arith.constant 0 : index
      %170 = vector.load %arg10[%c3_113, %c0_114, %c0_115] : memref<4x8x1xf32, #tpu.memory_space<vmem>>, vector<1x8x1xf32>
      %171 = vector.shape_cast %170 : vector<1x8x1xf32> to vector<8x1xf32>
      %172 = arith.mulf %166, %171 : vector<8x1xf32>
      %cst_116 = arith.constant dense<0.000000e+00> : vector<8xf32>
      %173 = vector.multi_reduction <add>, %169, %cst_116 [1] : vector<8x8xf32> to vector<8xf32>
      %174 = vector.shape_cast %173 : vector<8xf32> to vector<8x1xf32>
      %175 = arith.addf %172, %174 : vector<8x1xf32>
      %c3_117 = arith.constant 3 : index
      %c0_118 = arith.constant 0 : index
      %c0_119 = arith.constant 0 : index
      %176 = vector.load %arg10[%c3_117, %c0_118, %c0_119] : memref<4x8x1xf32, #tpu.memory_space<vmem>>, vector<1x8x1xf32>
      %177 = vector.shape_cast %176 : vector<1x8x1xf32> to vector<8x1xf32>
      %178 = vector.shape_cast %175 : vector<8x1xf32> to vector<1x8x1xf32>
      tpu.vector_store %arg10[%c3_117, %c0_118, %c0_119], %178 {strides = array<i32>} : memref<4x8x1xf32, #tpu.memory_space<vmem>>, vector<1x8x1xf32>,
      %c3_120 = arith.constant 3 : index
      %c0_121 = arith.constant 0 : index
      %c0_122 = arith.constant 0 : index
      %179 = vector.load %arg11[%c3_120, %c0_121, %c0_122] : memref<4x8x8xf32, #tpu.memory_space<vmem>>, vector<1x8x8xf32>
      %180 = vector.shape_cast %179 : vector<1x8x8xf32> to vector<8x8xf32>
      %181 = vector.broadcast %166 : vector<8x1xf32> to vector<8x8xf32>
      %182 = arith.mulf %181, %180 : vector<8x8xf32>
      %183 = arith.truncf %169 : vector<8x8xf32> to vector<8x8xbf16>
      %cst_123 = arith.constant dense<0.000000e+00> : vector<8x8xf32>
      %184 = tpu.matmul %183, %155, %cst_123 {dimension_numbers = #tpu.dot_dimension_numbers<[1], [0], [0], [1], [0, 0, 1, 1], [], []>} : vector<8x8xbf16>, vector<8x8xbf16>, vector<8x8xf32> -> vector<8x8xf32>
      %185 = arith.addf %182, %184 : vector<8x8xf32>
      %c3_124 = arith.constant 3 : index
      %c0_125 = arith.constant 0 : index
      %c0_126 = arith.constant 0 : index
      %186 = vector.load %arg11[%c3_124, %c0_125, %c0_126] : memref<4x8x8xf32, #tpu.memory_space<vmem>>, vector<1x8x8xf32>
      %187 = vector.shape_cast %186 : vector<1x8x8xf32> to vector<8x8xf32>
      %188 = vector.shape_cast %185 : vector<8x8xf32> to vector<1x8x8xf32>
      tpu.vector_store %arg11[%c3_124, %c0_125, %c0_126], %188 {strides = array<i32>} : memref<4x8x8xf32, #tpu.memory_space<vmem>>, vector<1x8x8xf32>,
      %c3_127 = arith.constant 3 : index
      %c0_128 = arith.constant 0 : index
      %c0_129 = arith.constant 0 : index
      %189 = vector.load %arg9[%c3_127, %c0_128, %c0_129] : memref<4x8x1xf32, #tpu.memory_space<vmem>>, vector<1x8x1xf32>
      %190 = vector.shape_cast %189 : vector<1x8x1xf32> to vector<8x1xf32>
      %191 = vector.shape_cast %164 : vector<8x1xf32> to vector<1x8x1xf32>
      tpu.vector_store %arg9[%c3_127, %c0_128, %c0_129], %191 {strides = array<i32>} : memref<4x8x1xf32, #tpu.memory_space<vmem>>, vector<1x8x1xf32>,
    } else {
    }
    %c0_i32_3 = arith.constant 0 : i32
    %9 = arith.cmpi eq, %arg2, %c0_i32_3 : i32
    %10 = arith.extui %9 : i1 to i32
    %c0_i32_4 = arith.constant 0 : i32
    %11 = arith.cmpi ne, %10, %c0_i32_4 : i32
    scf.if %11 {
      %c0 = arith.constant 0 : index
      %c0_5 = arith.constant 0 : index
      %c0_6 = arith.constant 0 : index
      %12 = vector.load %arg11[%c0, %c0_5, %c0_6] : memref<4x8x8xf32, #tpu.memory_space<vmem>>, vector<1x8x8xf32>
      %13 = vector.shape_cast %12 : vector<1x8x8xf32> to vector<8x8xf32>
      %c0_7 = arith.constant 0 : index
      %c0_8 = arith.constant 0 : index
      %c0_9 = arith.constant 0 : index
      %14 = vector.load %arg10[%c0_7, %c0_8, %c0_9] : memref<4x8x1xf32, #tpu.memory_space<vmem>>, vector<1x8x1xf32>
      %15 = vector.shape_cast %14 : vector<1x8x1xf32> to vector<8x1xf32>
      %16 = tpu.reciprocal %15 {approx = true} : vector<8x1xf32> -> vector<8x1xf32>
      %17 = vector.broadcast %16 : vector<8x1xf32> to vector<8x8xf32>
      %18 = arith.mulf %13, %17 : vector<8x8xf32>
      %19 = arith.truncf %18 : vector<8x8xf32> to vector<8x8xbf16>
      %c0_10 = arith.constant 0 : index
      %c0_11 = arith.constant 0 : index
      %c0_12 = arith.constant 0 : index
      %20 = vector.load %arg7[%c0_10, %c0_11, %c0_12] : memref<1x8x32xbf16, #tpu.memory_space<vmem>>, vector<1x8x8xbf16>
      %21 = vector.shape_cast %20 : vector<1x8x8xbf16> to vector<8x8xbf16>
      %22 = vector.shape_cast %19 : vector<8x8xbf16> to vector<1x8x8xbf16>
      tpu.vector_store %arg7[%c0_10, %c0_11, %c0_12], %22 {strides = array<i32>} : memref<1x8x32xbf16, #tpu.memory_space<vmem>>, vector<1x8x8xbf16>,
      %c1 = arith.constant 1 : index
      %c0_13 = arith.constant 0 : index
      %c0_14 = arith.constant 0 : index
      %23 = vector.load %arg11[%c1, %c0_13, %c0_14] : memref<4x8x8xf32, #tpu.memory_space<vmem>>, vector<1x8x8xf32>
      %24 = vector.shape_cast %23 : vector<1x8x8xf32> to vector<8x8xf32>
      %c1_15 = arith.constant 1 : index
      %c0_16 = arith.constant 0 : index
      %c0_17 = arith.constant 0 : index
      %25 = vector.load %arg10[%c1_15, %c0_16, %c0_17] : memref<4x8x1xf32, #tpu.memory_space<vmem>>, vector<1x8x1xf32>
      %26 = vector.shape_cast %25 : vector<1x8x1xf32> to vector<8x1xf32>
      %27 = tpu.reciprocal %26 {approx = true} : vector<8x1xf32> -> vector<8x1xf32>
      %28 = vector.broadcast %27 : vector<8x1xf32> to vector<8x8xf32>
      %29 = arith.mulf %24, %28 : vector<8x8xf32>
      %30 = arith.truncf %29 : vector<8x8xf32> to vector<8x8xbf16>
      %c0_18 = arith.constant 0 : index
      %c0_19 = arith.constant 0 : index
      %c8 = arith.constant 8 : index
      %31 = vector.load %arg7[%c0_18, %c0_19, %c8] : memref<1x8x32xbf16, #tpu.memory_space<vmem>>, vector<1x8x8xbf16>
      %32 = vector.shape_cast %31 : vector<1x8x8xbf16> to vector<8x8xbf16>
      %33 = vector.shape_cast %30 : vector<8x8xbf16> to vector<1x8x8xbf16>
      tpu.vector_store %arg7[%c0_18, %c0_19, %c8], %33 {strides = array<i32>} : memref<1x8x32xbf16, #tpu.memory_space<vmem>>, vector<1x8x8xbf16>,
      %c2 = arith.constant 2 : index
      %c0_20 = arith.constant 0 : index
      %c0_21 = arith.constant 0 : index
      %34 = vector.load %arg11[%c2, %c0_20, %c0_21] : memref<4x8x8xf32, #tpu.memory_space<vmem>>, vector<1x8x8xf32>
      %35 = vector.shape_cast %34 : vector<1x8x8xf32> to vector<8x8xf32>
      %c2_22 = arith.constant 2 : index
      %c0_23 = arith.constant 0 : index
      %c0_24 = arith.constant 0 : index
      %36 = vector.load %arg10[%c2_22, %c0_23, %c0_24] : memref<4x8x1xf32, #tpu.memory_space<vmem>>, vector<1x8x1xf32>
      %37 = vector.shape_cast %36 : vector<1x8x1xf32> to vector<8x1xf32>
      %38 = tpu.reciprocal %37 {approx = true} : vector<8x1xf32> -> vector<8x1xf32>
      %39 = vector.broadcast %38 : vector<8x1xf32> to vector<8x8xf32>
      %40 = arith.mulf %35, %39 : vector<8x8xf32>
      %41 = arith.truncf %40 : vector<8x8xf32> to vector<8x8xbf16>
      %c0_25 = arith.constant 0 : index
      %c0_26 = arith.constant 0 : index
      %c16 = arith.constant 16 : index
      %42 = vector.load %arg7[%c0_25, %c0_26, %c16] : memref<1x8x32xbf16, #tpu.memory_space<vmem>>, vector<1x8x8xbf16>
      %43 = vector.shape_cast %42 : vector<1x8x8xbf16> to vector<8x8xbf16>
      %44 = vector.shape_cast %41 : vector<8x8xbf16> to vector<1x8x8xbf16>
      tpu.vector_store %arg7[%c0_25, %c0_26, %c16], %44 {strides = array<i32>} : memref<1x8x32xbf16, #tpu.memory_space<vmem>>, vector<1x8x8xbf16>,
      %c3 = arith.constant 3 : index
      %c0_27 = arith.constant 0 : index
      %c0_28 = arith.constant 0 : index
      %45 = vector.load %arg11[%c3, %c0_27, %c0_28] : memref<4x8x8xf32, #tpu.memory_space<vmem>>, vector<1x8x8xf32>
      %46 = vector.shape_cast %45 : vector<1x8x8xf32> to vector<8x8xf32>
      %c3_29 = arith.constant 3 : index
      %c0_30 = arith.constant 0 : index
      %c0_31 = arith.constant 0 : index
      %47 = vector.load %arg10[%c3_29, %c0_30, %c0_31] : memref<4x8x1xf32, #tpu.memory_space<vmem>>, vector<1x8x1xf32>
      %48 = vector.shape_cast %47 : vector<1x8x1xf32> to vector<8x1xf32>
      %49 = tpu.reciprocal %48 {approx = true} : vector<8x1xf32> -> vector<8x1xf32>
      %50 = vector.broadcast %49 : vector<8x1xf32> to vector<8x8xf32>
      %51 = arith.mulf %46, %50 : vector<8x8xf32>
      %52 = arith.truncf %51 : vector<8x8xf32> to vector<8x8xbf16>
      %c0_32 = arith.constant 0 : index
      %c0_33 = arith.constant 0 : index
      %c24 = arith.constant 24 : index
      %53 = vector.load %arg7[%c0_32, %c0_33, %c24] : memref<1x8x32xbf16, #tpu.memory_space<vmem>>, vector<1x8x8xbf16>
      %54 = vector.shape_cast %53 : vector<1x8x8xbf16> to vector<8x8xbf16>
      %55 = vector.shape_cast %52 : vector<8x8xbf16> to vector<1x8x8xbf16>
      tpu.vector_store %arg7[%c0_32, %c0_33, %c24], %55 {strides = array<i32>} : memref<1x8x32xbf16, #tpu.memory_space<vmem>>, vector<1x8x8xbf16>,
    } else {
    }
    return
  }
  func.func @transform_0(%arg0: i32, %arg1: i32, %arg2: i32) -> (i32, i32, i32) {
    %c0_i32 = arith.constant 0 : i32
    %c0_i32_0 = arith.constant 0 : i32
    return %arg0, %arg1, %c0_i32 : i32, i32, i32
  }
  func.func @transform_1(%arg0: i32, %arg1: i32, %arg2: i32) -> (i32, i32, i32) {
    %c0_i32 = arith.constant 0 : i32
    %c0_i32_0 = arith.constant 0 : i32
    return %arg0, %arg2, %c0_i32 : i32, i32, i32
  }
  func.func @transform_2(%arg0: i32, %arg1: i32, %arg2: i32) -> (i32, i32, i32) {
    %c0_i32 = arith.constant 0 : i32
    %c0_i32_0 = arith.constant 0 : i32
    return %arg0, %arg2, %c0_i32 : i32, i32, i32
  }
  func.func @transform_3(%arg0: i32, %arg1: i32, %arg2: i32) -> (i32, i32, i32) {
    %c0_i32 = arith.constant 0 : i32
    %c0_i32_0 = arith.constant 0 : i32
    return %arg0, %c0_i32, %arg2 : i32, i32, i32
  }
  func.func @transform_4(%arg0: i32, %arg1: i32, %arg2: i32) -> (i32, i32, i32) {
    %c0_i32 = arith.constant 0 : i32
    %c0_i32_0 = arith.constant 0 : i32
    return %arg0, %arg1, %c0_i32 : i32, i32, i32
  }
}

module attributes {stable_mosaic.version = 11 : i64} {
  func.func @_flash_attn_kernel(%arg0: i32, %arg1: i32, %arg2: i32, %arg3: memref<1x8x32xbf16, #tpu.memory_space<vmem>>, %arg4: memref<1x8x32xbf16, #tpu.memory_space<vmem>>, %arg5: memref<1x8x32xbf16, #tpu.memory_space<vmem>>, %arg6: memref<1x1x8xf32, #tpu.memory_space<vmem>>, %arg7: memref<1x8x32xbf16, #tpu.memory_space<vmem>>, %arg8: memref<4x8x8xbf16, #tpu.memory_space<vmem>>, %arg9: memref<4x8x1xf32, #tpu.memory_space<vmem>>, %arg10: memref<4x8x1xf32, #tpu.memory_space<vmem>>, %arg11: memref<4x8x8xf32, #tpu.memory_space<vmem>>) attributes {dimension_semantics = [#tpu.dimension_semantics<parallel>, #tpu.dimension_semantics<parallel>, #tpu.dimension_semantics<arbitrary>], iteration_bounds = array<i64: 2, 1, 1>, scalar_prefetch = 0 : i64, scratch_operands = 4 : i64, tpu.core_type = #tpu.core_type<tc>, window_params = [{transform_indices = @transform_0, window_bounds = array<i64: 1, 8, 32>}, {transform_indices = @transform_1, window_bounds = array<i64: 1, 8, 32>}, {transform_indices = @transform_2, window_bounds = array<i64: 1, 8, 32>}, {transform_indices = @transform_3, window_bounds = array<i64: 1, 1, 8>}, {transform_indices = @transform_4, window_bounds = array<i64: 1, 8, 32>}]} {
    %c0_i32 = arith.constant 0 : i32
    %0 = arith.cmpi eq, %arg2, %c0_i32 : i32
    %1 = arith.extui %0 : i1 to i32
    %c0_i32_0 = arith.constant 0 : i32
    %2 = arith.cmpi ne, %1, %c0_i32_0 : i32
    scf.if %2 {
      %c0_124 = arith.constant 0 : index
      %c0_125 = arith.constant 0 : index
      %c0_126 = arith.constant 0 : index
      %176 = vector.load %arg3[%c0_124, %c0_125, %c0_126] : memref<1x8x32xbf16, #tpu.memory_space<vmem>>, vector<1x8x8xbf16>
      %177 = vector.shape_cast %176 : vector<1x8x8xbf16> to vector<8x8xbf16>
      %178 = arith.extf %177 : vector<8x8xbf16> to vector<8x8xf32>
      %cst_127 = arith.constant 0.353553385 : f32
      %179 = vector.broadcast %cst_127 : f32 to vector<8x8xf32>
      %180 = arith.mulf %178, %179 : vector<8x8xf32>
      %181 = arith.truncf %180 : vector<8x8xf32> to vector<8x8xbf16>
      %c0_128 = arith.constant 0 : index
      %c0_129 = arith.constant 0 : index
      %c0_130 = arith.constant 0 : index
      %182 = vector.load %arg8[%c0_128, %c0_129, %c0_130] : memref<4x8x8xbf16, #tpu.memory_space<vmem>>, vector<1x8x8xbf16>
      %183 = vector.shape_cast %182 : vector<1x8x8xbf16> to vector<8x8xbf16>
      %184 = vector.shape_cast %181 : vector<8x8xbf16> to vector<1x8x8xbf16>
      tpu.vector_store %arg8[%c0_128, %c0_129, %c0_130], %184 {strides = array<i32>} : memref<4x8x8xbf16, #tpu.memory_space<vmem>>, vector<1x8x8xbf16>,
      %c0_131 = arith.constant 0 : index
      %c0_132 = arith.constant 0 : index
      %c8_133 = arith.constant 8 : index
      %185 = vector.load %arg3[%c0_131, %c0_132, %c8_133] : memref<1x8x32xbf16, #tpu.memory_space<vmem>>, vector<1x8x8xbf16>
      %186 = vector.shape_cast %185 : vector<1x8x8xbf16> to vector<8x8xbf16>
      %187 = arith.extf %186 : vector<8x8xbf16> to vector<8x8xf32>
      %cst_134 = arith.constant 0.353553385 : f32
      %188 = vector.broadcast %cst_134 : f32 to vector<8x8xf32>
      %189 = arith.mulf %187, %188 : vector<8x8xf32>
      %190 = arith.truncf %189 : vector<8x8xf32> to vector<8x8xbf16>
      %c1_135 = arith.constant 1 : index
      %c0_136 = arith.constant 0 : index
      %c0_137 = arith.constant 0 : index
      %191 = vector.load %arg8[%c1_135, %c0_136, %c0_137] : memref<4x8x8xbf16, #tpu.memory_space<vmem>>, vector<1x8x8xbf16>
      %192 = vector.shape_cast %191 : vector<1x8x8xbf16> to vector<8x8xbf16>
      %193 = vector.shape_cast %190 : vector<8x8xbf16> to vector<1x8x8xbf16>
      tpu.vector_store %arg8[%c1_135, %c0_136, %c0_137], %193 {strides = array<i32>} : memref<4x8x8xbf16, #tpu.memory_space<vmem>>, vector<1x8x8xbf16>,
      %c0_138 = arith.constant 0 : index
      %c0_139 = arith.constant 0 : index
      %c16_140 = arith.constant 16 : index
      %194 = vector.load %arg3[%c0_138, %c0_139, %c16_140] : memref<1x8x32xbf16, #tpu.memory_space<vmem>>, vector<1x8x8xbf16>
      %195 = vector.shape_cast %194 : vector<1x8x8xbf16> to vector<8x8xbf16>
      %196 = arith.extf %195 : vector<8x8xbf16> to vector<8x8xf32>
      %cst_141 = arith.constant 0.353553385 : f32
      %197 = vector.broadcast %cst_141 : f32 to vector<8x8xf32>
      %198 = arith.mulf %196, %197 : vector<8x8xf32>
      %199 = arith.truncf %198 : vector<8x8xf32> to vector<8x8xbf16>
      %c2_142 = arith.constant 2 : index
      %c0_143 = arith.constant 0 : index
      %c0_144 = arith.constant 0 : index
      %200 = vector.load %arg8[%c2_142, %c0_143, %c0_144] : memref<4x8x8xbf16, #tpu.memory_space<vmem>>, vector<1x8x8xbf16>
      %201 = vector.shape_cast %200 : vector<1x8x8xbf16> to vector<8x8xbf16>
      %202 = vector.shape_cast %199 : vector<8x8xbf16> to vector<1x8x8xbf16>
      tpu.vector_store %arg8[%c2_142, %c0_143, %c0_144], %202 {strides = array<i32>} : memref<4x8x8xbf16, #tpu.memory_space<vmem>>, vector<1x8x8xbf16>,
      %c0_145 = arith.constant 0 : index
      %c0_146 = arith.constant 0 : index
      %c24_147 = arith.constant 24 : index
      %203 = vector.load %arg3[%c0_145, %c0_146, %c24_147] : memref<1x8x32xbf16, #tpu.memory_space<vmem>>, vector<1x8x8xbf16>
      %204 = vector.shape_cast %203 : vector<1x8x8xbf16> to vector<8x8xbf16>
      %205 = arith.extf %204 : vector<8x8xbf16> to vector<8x8xf32>
      %cst_148 = arith.constant 0.353553385 : f32
      %206 = vector.broadcast %cst_148 : f32 to vector<8x8xf32>
      %207 = arith.mulf %205, %206 : vector<8x8xf32>
      %208 = arith.truncf %207 : vector<8x8xf32> to vector<8x8xbf16>
      %c3_149 = arith.constant 3 : index
      %c0_150 = arith.constant 0 : index
      %c0_151 = arith.constant 0 : index
      %209 = vector.load %arg8[%c3_149, %c0_150, %c0_151] : memref<4x8x8xbf16, #tpu.memory_space<vmem>>, vector<1x8x8xbf16>
      %210 = vector.shape_cast %209 : vector<1x8x8xbf16> to vector<8x8xbf16>
      %211 = vector.shape_cast %208 : vector<8x8xbf16> to vector<1x8x8xbf16>
      tpu.vector_store %arg8[%c3_149, %c0_150, %c0_151], %211 {strides = array<i32>} : memref<4x8x8xbf16, #tpu.memory_space<vmem>>, vector<1x8x8xbf16>,
      %cst_152 = arith.constant 0xFF800000 : f32
      %212 = vector.broadcast %cst_152 : f32 to vector<4x8x1xf32>
      %c0_153 = arith.constant 0 : index
      %c0_154 = arith.constant 0 : index
      %c0_155 = arith.constant 0 : index
      %213 = vector.load %arg9[%c0_153, %c0_154, %c0_155] : memref<4x8x1xf32, #tpu.memory_space<vmem>>, vector<4x8x1xf32>
      tpu.vector_store %arg9[%c0_153, %c0_154, %c0_155], %212 {strides = array<i32>} : memref<4x8x1xf32, #tpu.memory_space<vmem>>, vector<4x8x1xf32>,
      %cst_156 = arith.constant 0.000000e+00 : f32
      %214 = vector.broadcast %cst_156 : f32 to vector<4x8x1xf32>
      %c0_157 = arith.constant 0 : index
      %c0_158 = arith.constant 0 : index
      %c0_159 = arith.constant 0 : index
      %215 = vector.load %arg10[%c0_157, %c0_158, %c0_159] : memref<4x8x1xf32, #tpu.memory_space<vmem>>, vector<4x8x1xf32>
      tpu.vector_store %arg10[%c0_157, %c0_158, %c0_159], %214 {strides = array<i32>} : memref<4x8x1xf32, #tpu.memory_space<vmem>>, vector<4x8x1xf32>,
      %cst_160 = arith.constant 0.000000e+00 : f32
      %216 = vector.broadcast %cst_160 : f32 to vector<4x8x8xf32>
      %c0_161 = arith.constant 0 : index
      %c0_162 = arith.constant 0 : index
      %c0_163 = arith.constant 0 : index
      %217 = vector.load %arg11[%c0_161, %c0_162, %c0_163] : memref<4x8x8xf32, #tpu.memory_space<vmem>>, vector<4x8x8xf32>
      tpu.vector_store %arg11[%c0_161, %c0_162, %c0_163], %216 {strides = array<i32>} : memref<4x8x8xf32, #tpu.memory_space<vmem>>, vector<4x8x8xf32>,
    } else {
    }
    %c0 = arith.constant 0 : index
    %c0_1 = arith.constant 0 : index
    %c0_2 = arith.constant 0 : index
    %3 = vector.load %arg6[%c0, %c0_1, %c0_2] : memref<1x1x8xf32, #tpu.memory_space<vmem>>, vector<1x1x8xf32>
    %4 = vector.shape_cast %3 : vector<1x1x8xf32> to vector<1x8xf32>
    %cst = arith.constant 1.000000e+00 : f32
    %5 = vector.broadcast %cst : f32 to vector<1x8xf32>
    %6 = arith.subf %5, %4 : vector<1x8xf32>
    %cst_3 = arith.constant -1.000000e+09 : f32
    %7 = vector.broadcast %cst_3 : f32 to vector<1x8xf32>
    %8 = arith.mulf %6, %7 : vector<1x8xf32>
    %c0_4 = arith.constant 0 : index
    %c0_5 = arith.constant 0 : index
    %c0_6 = arith.constant 0 : index
    %9 = vector.load %arg4[%c0_4, %c0_5, %c0_6] : memref<1x8x32xbf16, #tpu.memory_space<vmem>>, vector<1x8x8xbf16>
    %10 = vector.shape_cast %9 : vector<1x8x8xbf16> to vector<8x8xbf16>
    %c0_7 = arith.constant 0 : index
    %c0_8 = arith.constant 0 : index
    %c0_9 = arith.constant 0 : index
    %11 = vector.load %arg5[%c0_7, %c0_8, %c0_9] : memref<1x8x32xbf16, #tpu.memory_space<vmem>>, vector<1x8x8xbf16>
    %12 = vector.shape_cast %11 : vector<1x8x8xbf16> to vector<8x8xbf16>
    %c0_10 = arith.constant 0 : index
    %c0_11 = arith.constant 0 : index
    %c0_12 = arith.constant 0 : index
    %13 = vector.load %arg8[%c0_10, %c0_11, %c0_12] : memref<4x8x8xbf16, #tpu.memory_space<vmem>>, vector<1x8x8xbf16>
    %14 = vector.shape_cast %13 : vector<1x8x8xbf16> to vector<8x8xbf16>
    %cst_13 = arith.constant dense<0.000000e+00> : vector<8x8xf32>
    %15 = tpu.matmul %14, %10, %cst_13 {dimension_numbers = #tpu.dot_dimension_numbers<[1], [1], [0], [0], [0, 0, 1, 0], [], []>} : vector<8x8xbf16>, vector<8x8xbf16>, vector<8x8xf32> -> vector<8x8xf32>
    %16 = vector.broadcast %8 : vector<1x8xf32> to vector<8x8xf32>
    %17 = arith.addf %15, %16 : vector<8x8xf32>
    %c0_14 = arith.constant 0 : index
    %c0_15 = arith.constant 0 : index
    %c0_16 = arith.constant 0 : index
    %18 = vector.load %arg9[%c0_14, %c0_15, %c0_16] : memref<4x8x1xf32, #tpu.memory_space<vmem>>, vector<1x8x1xf32>
    %19 = vector.shape_cast %18 : vector<1x8x1xf32> to vector<8x1xf32>
    %cst_17 = arith.constant dense<0xFF800000> : vector<8xf32>
    %20 = vector.multi_reduction <maximumf>, %17, %cst_17 [1] : vector<8x8xf32> to vector<8xf32>
    %21 = vector.shape_cast %20 : vector<8xf32> to vector<8x1xf32>
    %22 = arith.maximumf %19, %21 : vector<8x1xf32>
    %23 = arith.subf %19, %22 : vector<8x1xf32>
    %24 = math.exp %23 : vector<8x1xf32>
    %25 = vector.broadcast %22 : vector<8x1xf32> to vector<8x8xf32>
    %26 = arith.subf %17, %25 : vector<8x8xf32>
    %27 = math.exp %26 : vector<8x8xf32>
    %c0_18 = arith.constant 0 : index
    %c0_19 = arith.constant 0 : index
    %c0_20 = arith.constant 0 : index
    %28 = vector.load %arg10[%c0_18, %c0_19, %c0_20] : memref<4x8x1xf32, #tpu.memory_space<vmem>>, vector<1x8x1xf32>
    %29 = vector.shape_cast %28 : vector<1x8x1xf32> to vector<8x1xf32>
    %30 = arith.mulf %24, %29 : vector<8x1xf32>
    %cst_21 = arith.constant dense<0.000000e+00> : vector<8xf32>
    %31 = vector.multi_reduction <add>, %27, %cst_21 [1] : vector<8x8xf32> to vector<8xf32>
    %32 = vector.shape_cast %31 : vector<8xf32> to vector<8x1xf32>
    %33 = arith.addf %30, %32 : vector<8x1xf32>
    %c0_22 = arith.constant 0 : index
    %c0_23 = arith.constant 0 : index
    %c0_24 = arith.constant 0 : index
    %34 = vector.load %arg10[%c0_22, %c0_23, %c0_24] : memref<4x8x1xf32, #tpu.memory_space<vmem>>, vector<1x8x1xf32>
    %35 = vector.shape_cast %34 : vector<1x8x1xf32> to vector<8x1xf32>
    %36 = vector.shape_cast %33 : vector<8x1xf32> to vector<1x8x1xf32>
    tpu.vector_store %arg10[%c0_22, %c0_23, %c0_24], %36 {strides = array<i32>} : memref<4x8x1xf32, #tpu.memory_space<vmem>>, vector<1x8x1xf32>,
    %c0_25 = arith.constant 0 : index
    %c0_26 = arith.constant 0 : index
    %c0_27 = arith.constant 0 : index
    %37 = vector.load %arg11[%c0_25, %c0_26, %c0_27] : memref<4x8x8xf32, #tpu.memory_space<vmem>>, vector<1x8x8xf32>
    %38 = vector.shape_cast %37 : vector<1x8x8xf32> to vector<8x8xf32>
    %39 = vector.broadcast %24 : vector<8x1xf32> to vector<8x8xf32>
    %40 = arith.mulf %39, %38 : vector<8x8xf32>
    %41 = arith.truncf %27 : vector<8x8xf32> to vector<8x8xbf16>
    %cst_28 = arith.constant dense<0.000000e+00> : vector<8x8xf32>
    %42 = tpu.matmul %41, %12, %cst_28 {dimension_numbers = #tpu.dot_dimension_numbers<[1], [0], [0], [1], [0, 0, 1, 1], [], []>} : vector<8x8xbf16>, vector<8x8xbf16>, vector<8x8xf32> -> vector<8x8xf32>
    %43 = arith.addf %40, %42 : vector<8x8xf32>
    %c0_29 = arith.constant 0 : index
    %c0_30 = arith.constant 0 : index
    %c0_31 = arith.constant 0 : index
    %44 = vector.load %arg11[%c0_29, %c0_30, %c0_31] : memref<4x8x8xf32, #tpu.memory_space<vmem>>, vector<1x8x8xf32>
    %45 = vector.shape_cast %44 : vector<1x8x8xf32> to vector<8x8xf32>
    %46 = vector.shape_cast %43 : vector<8x8xf32> to vector<1x8x8xf32>
    tpu.vector_store %arg11[%c0_29, %c0_30, %c0_31], %46 {strides = array<i32>} : memref<4x8x8xf32, #tpu.memory_space<vmem>>, vector<1x8x8xf32>,
    %c0_32 = arith.constant 0 : index
    %c0_33 = arith.constant 0 : index
    %c0_34 = arith.constant 0 : index
    %47 = vector.load %arg9[%c0_32, %c0_33, %c0_34] : memref<4x8x1xf32, #tpu.memory_space<vmem>>, vector<1x8x1xf32>
    %48 = vector.shape_cast %47 : vector<1x8x1xf32> to vector<8x1xf32>
    %49 = vector.shape_cast %22 : vector<8x1xf32> to vector<1x8x1xf32>
    tpu.vector_store %arg9[%c0_32, %c0_33, %c0_34], %49 {strides = array<i32>} : memref<4x8x1xf32, #tpu.memory_space<vmem>>, vector<1x8x1xf32>,
    %c0_35 = arith.constant 0 : index
    %c0_36 = arith.constant 0 : index
    %c8 = arith.constant 8 : index
    %50 = vector.load %arg4[%c0_35, %c0_36, %c8] : memref<1x8x32xbf16, #tpu.memory_space<vmem>>, vector<1x8x8xbf16>
    %51 = vector.shape_cast %50 : vector<1x8x8xbf16> to vector<8x8xbf16>
    %c0_37 = arith.constant 0 : index
    %c0_38 = arith.constant 0 : index
    %c8_39 = arith.constant 8 : index
    %52 = vector.load %arg5[%c0_37, %c0_38, %c8_39] : memref<1x8x32xbf16, #tpu.memory_space<vmem>>, vector<1x8x8xbf16>
    %53 = vector.shape_cast %52 : vector<1x8x8xbf16> to vector<8x8xbf16>
    %c1 = arith.constant 1 : index
    %c0_40 = arith.constant 0 : index
    %c0_41 = arith.constant 0 : index
    %54 = vector.load %arg8[%c1, %c0_40, %c0_41] : memref<4x8x8xbf16, #tpu.memory_space<vmem>>, vector<1x8x8xbf16>
    %55 = vector.shape_cast %54 : vector<1x8x8xbf16> to vector<8x8xbf16>
    %cst_42 = arith.constant dense<0.000000e+00> : vector<8x8xf32>
    %56 = tpu.matmul %55, %51, %cst_42 {dimension_numbers = #tpu.dot_dimension_numbers<[1], [1], [0], [0], [0, 0, 1, 0], [], []>} : vector<8x8xbf16>, vector<8x8xbf16>, vector<8x8xf32> -> vector<8x8xf32>
    %57 = vector.broadcast %8 : vector<1x8xf32> to vector<8x8xf32>
    %58 = arith.addf %56, %57 : vector<8x8xf32>
    %c1_43 = arith.constant 1 : index
    %c0_44 = arith.constant 0 : index
    %c0_45 = arith.constant 0 : index
    %59 = vector.load %arg9[%c1_43, %c0_44, %c0_45] : memref<4x8x1xf32, #tpu.memory_space<vmem>>, vector<1x8x1xf32>
    %60 = vector.shape_cast %59 : vector<1x8x1xf32> to vector<8x1xf32>
    %cst_46 = arith.constant dense<0xFF800000> : vector<8xf32>
    %61 = vector.multi_reduction <maximumf>, %58, %cst_46 [1] : vector<8x8xf32> to vector<8xf32>
    %62 = vector.shape_cast %61 : vector<8xf32> to vector<8x1xf32>
    %63 = arith.maximumf %60, %62 : vector<8x1xf32>
    %64 = arith.subf %60, %63 : vector<8x1xf32>
    %65 = math.exp %64 : vector<8x1xf32>
    %66 = vector.broadcast %63 : vector<8x1xf32> to vector<8x8xf32>
    %67 = arith.subf %58, %66 : vector<8x8xf32>
    %68 = math.exp %67 : vector<8x8xf32>
    %c1_47 = arith.constant 1 : index
    %c0_48 = arith.constant 0 : index
    %c0_49 = arith.constant 0 : index
    %69 = vector.load %arg10[%c1_47, %c0_48, %c0_49] : memref<4x8x1xf32, #tpu.memory_space<vmem>>, vector<1x8x1xf32>
    %70 = vector.shape_cast %69 : vector<1x8x1xf32> to vector<8x1xf32>
    %71 = arith.mulf %65, %70 : vector<8x1xf32>
    %cst_50 = arith.constant dense<0.000000e+00> : vector<8xf32>
    %72 = vector.multi_reduction <add>, %68, %cst_50 [1] : vector<8x8xf32> to vector<8xf32>
    %73 = vector.shape_cast %72 : vector<8xf32> to vector<8x1xf32>
    %74 = arith.addf %71, %73 : vector<8x1xf32>
    %c1_51 = arith.constant 1 : index
    %c0_52 = arith.constant 0 : index
    %c0_53 = arith.constant 0 : index
    %75 = vector.load %arg10[%c1_51, %c0_52, %c0_53] : memref<4x8x1xf32, #tpu.memory_space<vmem>>, vector<1x8x1xf32>
    %76 = vector.shape_cast %75 : vector<1x8x1xf32> to vector<8x1xf32>
    %77 = vector.shape_cast %74 : vector<8x1xf32> to vector<1x8x1xf32>
    tpu.vector_store %arg10[%c1_51, %c0_52, %c0_53], %77 {strides = array<i32>} : memref<4x8x1xf32, #tpu.memory_space<vmem>>, vector<1x8x1xf32>,
    %c1_54 = arith.constant 1 : index
    %c0_55 = arith.constant 0 : index
    %c0_56 = arith.constant 0 : index
    %78 = vector.load %arg11[%c1_54, %c0_55, %c0_56] : memref<4x8x8xf32, #tpu.memory_space<vmem>>, vector<1x8x8xf32>
    %79 = vector.shape_cast %78 : vector<1x8x8xf32> to vector<8x8xf32>
    %80 = vector.broadcast %65 : vector<8x1xf32> to vector<8x8xf32>
    %81 = arith.mulf %80, %79 : vector<8x8xf32>
    %82 = arith.truncf %68 : vector<8x8xf32> to vector<8x8xbf16>
    %cst_57 = arith.constant dense<0.000000e+00> : vector<8x8xf32>
    %83 = tpu.matmul %82, %53, %cst_57 {dimension_numbers = #tpu.dot_dimension_numbers<[1], [0], [0], [1], [0, 0, 1, 1], [], []>} : vector<8x8xbf16>, vector<8x8xbf16>, vector<8x8xf32> -> vector<8x8xf32>
    %84 = arith.addf %81, %83 : vector<8x8xf32>
    %c1_58 = arith.constant 1 : index
    %c0_59 = arith.constant 0 : index
    %c0_60 = arith.constant 0 : index
    %85 = vector.load %arg11[%c1_58, %c0_59, %c0_60] : memref<4x8x8xf32, #tpu.memory_space<vmem>>, vector<1x8x8xf32>
    %86 = vector.shape_cast %85 : vector<1x8x8xf32> to vector<8x8xf32>
    %87 = vector.shape_cast %84 : vector<8x8xf32> to vector<1x8x8xf32>
    tpu.vector_store %arg11[%c1_58, %c0_59, %c0_60], %87 {strides = array<i32>} : memref<4x8x8xf32, #tpu.memory_space<vmem>>, vector<1x8x8xf32>,
    %c1_61 = arith.constant 1 : index
    %c0_62 = arith.constant 0 : index
    %c0_63 = arith.constant 0 : index
    %88 = vector.load %arg9[%c1_61, %c0_62, %c0_63] : memref<4x8x1xf32, #tpu.memory_space<vmem>>, vector<1x8x1xf32>
    %89 = vector.shape_cast %88 : vector<1x8x1xf32> to vector<8x1xf32>
    %90 = vector.shape_cast %63 : vector<8x1xf32> to vector<1x8x1xf32>
    tpu.vector_store %arg9[%c1_61, %c0_62, %c0_63], %90 {strides = array<i32>} : memref<4x8x1xf32, #tpu.memory_space<vmem>>, vector<1x8x1xf32>,
    %c0_64 = arith.constant 0 : index
    %c0_65 = arith.constant 0 : index
    %c16 = arith.constant 16 : index
    %91 = vector.load %arg4[%c0_64, %c0_65, %c16] : memref<1x8x32xbf16, #tpu.memory_space<vmem>>, vector<1x8x8xbf16>
    %92 = vector.shape_cast %91 : vector<1x8x8xbf16> to vector<8x8xbf16>
    %c0_66 = arith.constant 0 : index
    %c0_67 = arith.constant 0 : index
    %c16_68 = arith.constant 16 : index
    %93 = vector.load %arg5[%c0_66, %c0_67, %c16_68] : memref<1x8x32xbf16, #tpu.memory_space<vmem>>, vector<1x8x8xbf16>
    %94 = vector.shape_cast %93 : vector<1x8x8xbf16> to vector<8x8xbf16>
    %c2 = arith.constant 2 : index
    %c0_69 = arith.constant 0 : index
    %c0_70 = arith.constant 0 : index
    %95 = vector.load %arg8[%c2, %c0_69, %c0_70] : memref<4x8x8xbf16, #tpu.memory_space<vmem>>, vector<1x8x8xbf16>
    %96 = vector.shape_cast %95 : vector<1x8x8xbf16> to vector<8x8xbf16>
    %cst_71 = arith.constant dense<0.000000e+00> : vector<8x8xf32>
    %97 = tpu.matmul %96, %92, %cst_71 {dimension_numbers = #tpu.dot_dimension_numbers<[1], [1], [0], [0], [0, 0, 1, 0], [], []>} : vector<8x8xbf16>, vector<8x8xbf16>, vector<8x8xf32> -> vector<8x8xf32>
    %98 = vector.broadcast %8 : vector<1x8xf32> to vector<8x8xf32>
    %99 = arith.addf %97, %98 : vector<8x8xf32>
    %c2_72 = arith.constant 2 : index
    %c0_73 = arith.constant 0 : index
    %c0_74 = arith.constant 0 : index
    %100 = vector.load %arg9[%c2_72, %c0_73, %c0_74] : memref<4x8x1xf32, #tpu.memory_space<vmem>>, vector<1x8x1xf32>
    %101 = vector.shape_cast %100 : vector<1x8x1xf32> to vector<8x1xf32>
    %cst_75 = arith.constant dense<0xFF800000> : vector<8xf32>
    %102 = vector.multi_reduction <maximumf>, %99, %cst_75 [1] : vector<8x8xf32> to vector<8xf32>
    %103 = vector.shape_cast %102 : vector<8xf32> to vector<8x1xf32>
    %104 = arith.maximumf %101, %103 : vector<8x1xf32>
    %105 = arith.subf %101, %104 : vector<8x1xf32>
    %106 = math.exp %105 : vector<8x1xf32>
    %107 = vector.broadcast %104 : vector<8x1xf32> to vector<8x8xf32>
    %108 = arith.subf %99, %107 : vector<8x8xf32>
    %109 = math.exp %108 : vector<8x8xf32>
    %c2_76 = arith.constant 2 : index
    %c0_77 = arith.constant 0 : index
    %c0_78 = arith.constant 0 : index
    %110 = vector.load %arg10[%c2_76, %c0_77, %c0_78] : memref<4x8x1xf32, #tpu.memory_space<vmem>>, vector<1x8x1xf32>
    %111 = vector.shape_cast %110 : vector<1x8x1xf32> to vector<8x1xf32>
    %112 = arith.mulf %106, %111 : vector<8x1xf32>
    %cst_79 = arith.constant dense<0.000000e+00> : vector<8xf32>
    %113 = vector.multi_reduction <add>, %109, %cst_79 [1] : vector<8x8xf32> to vector<8xf32>
    %114 = vector.shape_cast %113 : vector<8xf32> to vector<8x1xf32>
    %115 = arith.addf %112, %114 : vector<8x1xf32>
    %c2_80 = arith.constant 2 : index
    %c0_81 = arith.constant 0 : index
    %c0_82 = arith.constant 0 : index
    %116 = vector.load %arg10[%c2_80, %c0_81, %c0_82] : memref<4x8x1xf32, #tpu.memory_space<vmem>>, vector<1x8x1xf32>
    %117 = vector.shape_cast %116 : vector<1x8x1xf32> to vector<8x1xf32>
    %118 = vector.shape_cast %115 : vector<8x1xf32> to vector<1x8x1xf32>
    tpu.vector_store %arg10[%c2_80, %c0_81, %c0_82], %118 {strides = array<i32>} : memref<4x8x1xf32, #tpu.memory_space<vmem>>, vector<1x8x1xf32>,
    %c2_83 = arith.constant 2 : index
    %c0_84 = arith.constant 0 : index
    %c0_85 = arith.constant 0 : index
    %119 = vector.load %arg11[%c2_83, %c0_84, %c0_85] : memref<4x8x8xf32, #tpu.memory_space<vmem>>, vector<1x8x8xf32>
    %120 = vector.shape_cast %119 : vector<1x8x8xf32> to vector<8x8xf32>
    %121 = vector.broadcast %106 : vector<8x1xf32> to vector<8x8xf32>
    %122 = arith.mulf %121, %120 : vector<8x8xf32>
    %123 = arith.truncf %109 : vector<8x8xf32> to vector<8x8xbf16>
    %cst_86 = arith.constant dense<0.000000e+00> : vector<8x8xf32>
    %124 = tpu.matmul %123, %94, %cst_86 {dimension_numbers = #tpu.dot_dimension_numbers<[1], [0], [0], [1], [0, 0, 1, 1], [], []>} : vector<8x8xbf16>, vector<8x8xbf16>, vector<8x8xf32> -> vector<8x8xf32>
    %125 = arith.addf %122, %124 : vector<8x8xf32>
    %c2_87 = arith.constant 2 : index
    %c0_88 = arith.constant 0 : index
    %c0_89 = arith.constant 0 : index
    %126 = vector.load %arg11[%c2_87, %c0_88, %c0_89] : memref<4x8x8xf32, #tpu.memory_space<vmem>>, vector<1x8x8xf32>
    %127 = vector.shape_cast %126 : vector<1x8x8xf32> to vector<8x8xf32>
    %128 = vector.shape_cast %125 : vector<8x8xf32> to vector<1x8x8xf32>
    tpu.vector_store %arg11[%c2_87, %c0_88, %c0_89], %128 {strides = array<i32>} : memref<4x8x8xf32, #tpu.memory_space<vmem>>, vector<1x8x8xf32>,
    %c2_90 = arith.constant 2 : index
    %c0_91 = arith.constant 0 : index
    %c0_92 = arith.constant 0 : index
    %129 = vector.load %arg9[%c2_90, %c0_91, %c0_92] : memref<4x8x1xf32, #tpu.memory_space<vmem>>, vector<1x8x1xf32>
    %130 = vector.shape_cast %129 : vector<1x8x1xf32> to vector<8x1xf32>
    %131 = vector.shape_cast %104 : vector<8x1xf32> to vector<1x8x1xf32>
    tpu.vector_store %arg9[%c2_90, %c0_91, %c0_92], %131 {strides = array<i32>} : memref<4x8x1xf32, #tpu.memory_space<vmem>>, vector<1x8x1xf32>,
    %c0_93 = arith.constant 0 : index
    %c0_94 = arith.constant 0 : index
    %c24 = arith.constant 24 : index
    %132 = vector.load %arg4[%c0_93, %c0_94, %c24] : memref<1x8x32xbf16, #tpu.memory_space<vmem>>, vector<1x8x8xbf16>
    %133 = vector.shape_cast %132 : vector<1x8x8xbf16> to vector<8x8xbf16>
    %c0_95 = arith.constant 0 : index
    %c0_96 = arith.constant 0 : index
    %c24_97 = arith.constant 24 : index
    %134 = vector.load %arg5[%c0_95, %c0_96, %c24_97] : memref<1x8x32xbf16, #tpu.memory_space<vmem>>, vector<1x8x8xbf16>
    %135 = vector.shape_cast %134 : vector<1x8x8xbf16> to vector<8x8xbf16>
    %c3 = arith.constant 3 : index
    %c0_98 = arith.constant 0 : index
    %c0_99 = arith.constant 0 : index
    %136 = vector.load %arg8[%c3, %c0_98, %c0_99] : memref<4x8x8xbf16, #tpu.memory_space<vmem>>, vector<1x8x8xbf16>
    %137 = vector.shape_cast %136 : vector<1x8x8xbf16> to vector<8x8xbf16>
    %cst_100 = arith.constant dense<0.000000e+00> : vector<8x8xf32>
    %138 = tpu.matmul %137, %133, %cst_100 {dimension_numbers = #tpu.dot_dimension_numbers<[1], [1], [0], [0], [0, 0, 1, 0], [], []>} : vector<8x8xbf16>, vector<8x8xbf16>, vector<8x8xf32> -> vector<8x8xf32>
    %139 = vector.broadcast %8 : vector<1x8xf32> to vector<8x8xf32>
    %140 = arith.addf %138, %139 : vector<8x8xf32>
    %c3_101 = arith.constant 3 : index
    %c0_102 = arith.constant 0 : index
    %c0_103 = arith.constant 0 : index
    %141 = vector.load %arg9[%c3_101, %c0_102, %c0_103] : memref<4x8x1xf32, #tpu.memory_space<vmem>>, vector<1x8x1xf32>
    %142 = vector.shape_cast %141 : vector<1x8x1xf32> to vector<8x1xf32>
    %cst_104 = arith.constant dense<0xFF800000> : vector<8xf32>
    %143 = vector.multi_reduction <maximumf>, %140, %cst_104 [1] : vector<8x8xf32> to vector<8xf32>
    %144 = vector.shape_cast %143 : vector<8xf32> to vector<8x1xf32>
    %145 = arith.maximumf %142, %144 : vector<8x1xf32>
    %146 = arith.subf %142, %145 : vector<8x1xf32>
    %147 = math.exp %146 : vector<8x1xf32>
    %148 = vector.broadcast %145 : vector<8x1xf32> to vector<8x8xf32>
    %149 = arith.subf %140, %148 : vector<8x8xf32>
    %150 = math.exp %149 : vector<8x8xf32>
    %c3_105 = arith.constant 3 : index
    %c0_106 = arith.constant 0 : index
    %c0_107 = arith.constant 0 : index
    %151 = vector.load %arg10[%c3_105, %c0_106, %c0_107] : memref<4x8x1xf32, #tpu.memory_space<vmem>>, vector<1x8x1xf32>
    %152 = vector.shape_cast %151 : vector<1x8x1xf32> to vector<8x1xf32>
    %153 = arith.mulf %147, %152 : vector<8x1xf32>
    %cst_108 = arith.constant dense<0.000000e+00> : vector<8xf32>
    %154 = vector.multi_reduction <add>, %150, %cst_108 [1] : vector<8x8xf32> to vector<8xf32>
    %155 = vector.shape_cast %154 : vector<8xf32> to vector<8x1xf32>
    %156 = arith.addf %153, %155 : vector<8x1xf32>
    %c3_109 = arith.constant 3 : index
    %c0_110 = arith.constant 0 : index
    %c0_111 = arith.constant 0 : index
    %157 = vector.load %arg10[%c3_109, %c0_110, %c0_111] : memref<4x8x1xf32, #tpu.memory_space<vmem>>, vector<1x8x1xf32>
    %158 = vector.shape_cast %157 : vector<1x8x1xf32> to vector<8x1xf32>
    %159 = vector.shape_cast %156 : vector<8x1xf32> to vector<1x8x1xf32>
    tpu.vector_store %arg10[%c3_109, %c0_110, %c0_111], %159 {strides = array<i32>} : memref<4x8x1xf32, #tpu.memory_space<vmem>>, vector<1x8x1xf32>,
    %c3_112 = arith.constant 3 : index
    %c0_113 = arith.constant 0 : index
    %c0_114 = arith.constant 0 : index
    %160 = vector.load %arg11[%c3_112, %c0_113, %c0_114] : memref<4x8x8xf32, #tpu.memory_space<vmem>>, vector<1x8x8xf32>
    %161 = vector.shape_cast %160 : vector<1x8x8xf32> to vector<8x8xf32>
    %162 = vector.broadcast %147 : vector<8x1xf32> to vector<8x8xf32>
    %163 = arith.mulf %162, %161 : vector<8x8xf32>
    %164 = arith.truncf %150 : vector<8x8xf32> to vector<8x8xbf16>
    %cst_115 = arith.constant dense<0.000000e+00> : vector<8x8xf32>
    %165 = tpu.matmul %164, %135, %cst_115 {dimension_numbers = #tpu.dot_dimension_numbers<[1], [0], [0], [1], [0, 0, 1, 1], [], []>} : vector<8x8xbf16>, vector<8x8xbf16>, vector<8x8xf32> -> vector<8x8xf32>
    %166 = arith.addf %163, %165 : vector<8x8xf32>
    %c3_116 = arith.constant 3 : index
    %c0_117 = arith.constant 0 : index
    %c0_118 = arith.constant 0 : index
    %167 = vector.load %arg11[%c3_116, %c0_117, %c0_118] : memref<4x8x8xf32, #tpu.memory_space<vmem>>, vector<1x8x8xf32>
    %168 = vector.shape_cast %167 : vector<1x8x8xf32> to vector<8x8xf32>
    %169 = vector.shape_cast %166 : vector<8x8xf32> to vector<1x8x8xf32>
    tpu.vector_store %arg11[%c3_116, %c0_117, %c0_118], %169 {strides = array<i32>} : memref<4x8x8xf32, #tpu.memory_space<vmem>>, vector<1x8x8xf32>,
    %c3_119 = arith.constant 3 : index
    %c0_120 = arith.constant 0 : index
    %c0_121 = arith.constant 0 : index
    %170 = vector.load %arg9[%c3_119, %c0_120, %c0_121] : memref<4x8x1xf32, #tpu.memory_space<vmem>>, vector<1x8x1xf32>
    %171 = vector.shape_cast %170 : vector<1x8x1xf32> to vector<8x1xf32>
    %172 = vector.shape_cast %145 : vector<8x1xf32> to vector<1x8x1xf32>
    tpu.vector_store %arg9[%c3_119, %c0_120, %c0_121], %172 {strides = array<i32>} : memref<4x8x1xf32, #tpu.memory_space<vmem>>, vector<1x8x1xf32>,
    %c0_i32_122 = arith.constant 0 : i32
    %173 = arith.cmpi eq, %arg2, %c0_i32_122 : i32
    %174 = arith.extui %173 : i1 to i32
    %c0_i32_123 = arith.constant 0 : i32
    %175 = arith.cmpi ne, %174, %c0_i32_123 : i32
    scf.if %175 {
      %c0_124 = arith.constant 0 : index
      %c0_125 = arith.constant 0 : index
      %c0_126 = arith.constant 0 : index
      %176 = vector.load %arg11[%c0_124, %c0_125, %c0_126] : memref<4x8x8xf32, #tpu.memory_space<vmem>>, vector<1x8x8xf32>
      %177 = vector.shape_cast %176 : vector<1x8x8xf32> to vector<8x8xf32>
      %c0_127 = arith.constant 0 : index
      %c0_128 = arith.constant 0 : index
      %c0_129 = arith.constant 0 : index
      %178 = vector.load %arg10[%c0_127, %c0_128, %c0_129] : memref<4x8x1xf32, #tpu.memory_space<vmem>>, vector<1x8x1xf32>
      %179 = vector.shape_cast %178 : vector<1x8x1xf32> to vector<8x1xf32>
      %180 = tpu.reciprocal %179 {approx = true} : vector<8x1xf32> -> vector<8x1xf32>
      %181 = vector.broadcast %180 : vector<8x1xf32> to vector<8x8xf32>
      %182 = arith.mulf %177, %181 : vector<8x8xf32>
      %183 = arith.truncf %182 : vector<8x8xf32> to vector<8x8xbf16>
      %c0_130 = arith.constant 0 : index
      %c0_131 = arith.constant 0 : index
      %c0_132 = arith.constant 0 : index
      %184 = vector.load %arg7[%c0_130, %c0_131, %c0_132] : memref<1x8x32xbf16, #tpu.memory_space<vmem>>, vector<1x8x8xbf16>
      %185 = vector.shape_cast %184 : vector<1x8x8xbf16> to vector<8x8xbf16>
      %186 = vector.shape_cast %183 : vector<8x8xbf16> to vector<1x8x8xbf16>
      tpu.vector_store %arg7[%c0_130, %c0_131, %c0_132], %186 {strides = array<i32>} : memref<1x8x32xbf16, #tpu.memory_space<vmem>>, vector<1x8x8xbf16>,
      %c1_133 = arith.constant 1 : index
      %c0_134 = arith.constant 0 : index
      %c0_135 = arith.constant 0 : index
      %187 = vector.load %arg11[%c1_133, %c0_134, %c0_135] : memref<4x8x8xf32, #tpu.memory_space<vmem>>, vector<1x8x8xf32>
      %188 = vector.shape_cast %187 : vector<1x8x8xf32> to vector<8x8xf32>
      %c1_136 = arith.constant 1 : index
      %c0_137 = arith.constant 0 : index
      %c0_138 = arith.constant 0 : index
      %189 = vector.load %arg10[%c1_136, %c0_137, %c0_138] : memref<4x8x1xf32, #tpu.memory_space<vmem>>, vector<1x8x1xf32>
      %190 = vector.shape_cast %189 : vector<1x8x1xf32> to vector<8x1xf32>
      %191 = tpu.reciprocal %190 {approx = true} : vector<8x1xf32> -> vector<8x1xf32>
      %192 = vector.broadcast %191 : vector<8x1xf32> to vector<8x8xf32>
      %193 = arith.mulf %188, %192 : vector<8x8xf32>
      %194 = arith.truncf %193 : vector<8x8xf32> to vector<8x8xbf16>
      %c0_139 = arith.constant 0 : index
      %c0_140 = arith.constant 0 : index
      %c8_141 = arith.constant 8 : index
      %195 = vector.load %arg7[%c0_139, %c0_140, %c8_141] : memref<1x8x32xbf16, #tpu.memory_space<vmem>>, vector<1x8x8xbf16>
      %196 = vector.shape_cast %195 : vector<1x8x8xbf16> to vector<8x8xbf16>
      %197 = vector.shape_cast %194 : vector<8x8xbf16> to vector<1x8x8xbf16>
      tpu.vector_store %arg7[%c0_139, %c0_140, %c8_141], %197 {strides = array<i32>} : memref<1x8x32xbf16, #tpu.memory_space<vmem>>, vector<1x8x8xbf16>,
      %c2_142 = arith.constant 2 : index
      %c0_143 = arith.constant 0 : index
      %c0_144 = arith.constant 0 : index
      %198 = vector.load %arg11[%c2_142, %c0_143, %c0_144] : memref<4x8x8xf32, #tpu.memory_space<vmem>>, vector<1x8x8xf32>
      %199 = vector.shape_cast %198 : vector<1x8x8xf32> to vector<8x8xf32>
      %c2_145 = arith.constant 2 : index
      %c0_146 = arith.constant 0 : index
      %c0_147 = arith.constant 0 : index
      %200 = vector.load %arg10[%c2_145, %c0_146, %c0_147] : memref<4x8x1xf32, #tpu.memory_space<vmem>>, vector<1x8x1xf32>
      %201 = vector.shape_cast %200 : vector<1x8x1xf32> to vector<8x1xf32>
      %202 = tpu.reciprocal %201 {approx = true} : vector<8x1xf32> -> vector<8x1xf32>
      %203 = vector.broadcast %202 : vector<8x1xf32> to vector<8x8xf32>
      %204 = arith.mulf %199, %203 : vector<8x8xf32>
      %205 = arith.truncf %204 : vector<8x8xf32> to vector<8x8xbf16>
      %c0_148 = arith.constant 0 : index
      %c0_149 = arith.constant 0 : index
      %c16_150 = arith.constant 16 : index
      %206 = vector.load %arg7[%c0_148, %c0_149, %c16_150] : memref<1x8x32xbf16, #tpu.memory_space<vmem>>, vector<1x8x8xbf16>
      %207 = vector.shape_cast %206 : vector<1x8x8xbf16> to vector<8x8xbf16>
      %208 = vector.shape_cast %205 : vector<8x8xbf16> to vector<1x8x8xbf16>
      tpu.vector_store %arg7[%c0_148, %c0_149, %c16_150], %208 {strides = array<i32>} : memref<1x8x32xbf16, #tpu.memory_space<vmem>>, vector<1x8x8xbf16>,
      %c3_151 = arith.constant 3 : index
      %c0_152 = arith.constant 0 : index
      %c0_153 = arith.constant 0 : index
      %209 = vector.load %arg11[%c3_151, %c0_152, %c0_153] : memref<4x8x8xf32, #tpu.memory_space<vmem>>, vector<1x8x8xf32>
      %210 = vector.shape_cast %209 : vector<1x8x8xf32> to vector<8x8xf32>
      %c3_154 = arith.constant 3 : index
      %c0_155 = arith.constant 0 : index
      %c0_156 = arith.constant 0 : index
      %211 = vector.load %arg10[%c3_154, %c0_155, %c0_156] : memref<4x8x1xf32, #tpu.memory_space<vmem>>, vector<1x8x1xf32>
      %212 = vector.shape_cast %211 : vector<1x8x1xf32> to vector<8x1xf32>
      %213 = tpu.reciprocal %212 {approx = true} : vector<8x1xf32> -> vector<8x1xf32>
      %214 = vector.broadcast %213 : vector<8x1xf32> to vector<8x8xf32>
      %215 = arith.mulf %210, %214 : vector<8x8xf32>
      %216 = arith.truncf %215 : vector<8x8xf32> to vector<8x8xbf16>
      %c0_157 = arith.constant 0 : index
      %c0_158 = arith.constant 0 : index
      %c24_159 = arith.constant 24 : index
      %217 = vector.load %arg7[%c0_157, %c0_158, %c24_159] : memref<1x8x32xbf16, #tpu.memory_space<vmem>>, vector<1x8x8xbf16>
      %218 = vector.shape_cast %217 : vector<1x8x8xbf16> to vector<8x8xbf16>
      %219 = vector.shape_cast %216 : vector<8x8xbf16> to vector<1x8x8xbf16>
      tpu.vector_store %arg7[%c0_157, %c0_158, %c24_159], %219 {strides = array<i32>} : memref<1x8x32xbf16, #tpu.memory_space<vmem>>, vector<1x8x8xbf16>,
    } else {
    }
    return
  }
  func.func @transform_0(%arg0: i32, %arg1: i32, %arg2: i32) -> (i32, i32, i32) {
    %c0_i32 = arith.constant 0 : i32
    %c0_i32_0 = arith.constant 0 : i32
    return %arg0, %arg1, %c0_i32 : i32, i32, i32
  }
  func.func @transform_1(%arg0: i32, %arg1: i32, %arg2: i32) -> (i32, i32, i32) {
    %c0_i32 = arith.constant 0 : i32
    %c0_i32_0 = arith.constant 0 : i32
    return %arg0, %arg2, %c0_i32 : i32, i32, i32
  }
  func.func @transform_2(%arg0: i32, %arg1: i32, %arg2: i32) -> (i32, i32, i32) {
    %c0_i32 = arith.constant 0 : i32
    %c0_i32_0 = arith.constant 0 : i32
    return %arg0, %arg2, %c0_i32 : i32, i32, i32
  }
  func.func @transform_3(%arg0: i32, %arg1: i32, %arg2: i32) -> (i32, i32, i32) {
    %c0_i32 = arith.constant 0 : i32
    %c0_i32_0 = arith.constant 0 : i32
    return %arg0, %c0_i32, %arg2 : i32, i32, i32
  }
  func.func @transform_4(%arg0: i32, %arg1: i32, %arg2: i32) -> (i32, i32, i32) {
    %c0_i32 = arith.constant 0 : i32
    %c0_i32_0 = arith.constant 0 : i32
    return %arg0, %arg1, %c0_i32 : i32, i32, i32
  }
}

module attributes {stable_mosaic.version = 11 : i64} {
  func.func @_matmul_kernel(%arg0: i32, %arg1: i32, %arg2: i32, %arg3: memref<16x32xbf16, #tpu.memory_space<vmem>>, %arg4: memref<32x64xbf16, #tpu.memory_space<vmem>>, %arg5: memref<1x64xf32, #tpu.memory_space<vmem>>, %arg6: memref<16x64xbf16, #tpu.memory_space<vmem>>, %arg7: memref<16x64xf32, #tpu.memory_space<vmem>>) attributes {dimension_semantics = [#tpu.dimension_semantics<parallel>, #tpu.dimension_semantics<parallel>, #tpu.dimension_semantics<arbitrary>], iteration_bounds = array<i64: 1, 1, 1>, scalar_prefetch = 0 : i64, scratch_operands = 1 : i64, tpu.core_type = #tpu.core_type<tc>, window_params = [{transform_indices = @transform_0, window_bounds = array<i64: 16, 32>}, {transform_indices = @transform_1, window_bounds = array<i64: 32, 64>}, {transform_indices = @transform_2, window_bounds = array<i64: 1, 64>}, {transform_indices = @transform_3, window_bounds = array<i64: 16, 64>}]} {
    %c0_i32 = arith.constant 0 : i32
    %0 = arith.cmpi eq, %arg2, %c0_i32 : i32
    %1 = arith.extui %0 : i1 to i32
    %c0_i32_0 = arith.constant 0 : i32
    %2 = arith.cmpi ne, %1, %c0_i32_0 : i32
    scf.if %2 {
      %cst_10 = arith.constant 0.000000e+00 : f32
      %12 = vector.broadcast %cst_10 : f32 to vector<16x64xf32>
      %c0_11 = arith.constant 0 : index
      %c0_12 = arith.constant 0 : index
      %13 = vector.load %arg7[%c0_11, %c0_12] : memref<16x64xf32, #tpu.memory_space<vmem>>, vector<16x64xf32>
      tpu.vector_store %arg7[%c0_11, %c0_12], %12 {strides = array<i32>} : memref<16x64xf32, #tpu.memory_space<vmem>>, vector<16x64xf32>,
    } else {
    }
    %c0 = arith.constant 0 : index
    %c0_1 = arith.constant 0 : index
    %3 = vector.load %arg7[%c0, %c0_1] : memref<16x64xf32, #tpu.memory_space<vmem>>, vector<16x64xf32>
    %c0_2 = arith.constant 0 : index
    %c0_3 = arith.constant 0 : index
    %4 = vector.load %arg3[%c0_2, %c0_3] : memref<16x32xbf16, #tpu.memory_space<vmem>>, vector<16x32xbf16>
    %c0_4 = arith.constant 0 : index
    %c0_5 = arith.constant 0 : index
    %5 = vector.load %arg4[%c0_4, %c0_5] : memref<32x64xbf16, #tpu.memory_space<vmem>>, vector<32x64xbf16>
    %cst = arith.constant dense<0.000000e+00> : vector<16x64xf32>
    %6 = tpu.matmul %4, %5, %cst {dimension_numbers = #tpu.dot_dimension_numbers<[1], [0], [0], [1], [0, 0, 1, 1], [], []>} : vector<16x32xbf16>, vector<32x64xbf16>, vector<16x64xf32> -> vector<16x64xf32>
    %7 = arith.addf %3, %6 : vector<16x64xf32>
    %c0_6 = arith.constant 0 : index
    %c0_7 = arith.constant 0 : index
    %8 = vector.load %arg7[%c0_6, %c0_7] : memref<16x64xf32, #tpu.memory_space<vmem>>, vector<16x64xf32>
    tpu.vector_store %arg7[%c0_6, %c0_7], %7 {strides = array<i32>} : memref<16x64xf32, #tpu.memory_space<vmem>>, vector<16x64xf32>,
    %c0_i32_8 = arith.constant 0 : i32
    %9 = arith.cmpi eq, %arg2, %c0_i32_8 : i32
    %10 = arith.extui %9 : i1 to i32
    %c0_i32_9 = arith.constant 0 : i32
    %11 = arith.cmpi ne, %10, %c0_i32_9 : i32
    scf.if %11 {
      %c0_10 = arith.constant 0 : index
      %c0_11 = arith.constant 0 : index
      %12 = vector.load %arg7[%c0_10, %c0_11] : memref<16x64xf32, #tpu.memory_space<vmem>>, vector<16x64xf32>
      %c0_12 = arith.constant 0 : index
      %c0_13 = arith.constant 0 : index
      %13 = vector.load %arg5[%c0_12, %c0_13] : memref<1x64xf32, #tpu.memory_space<vmem>>, vector<1x64xf32>
      %14 = vector.broadcast %13 : vector<1x64xf32> to vector<16x64xf32>
      %15 = arith.addf %12, %14 : vector<16x64xf32>
      %16 = arith.truncf %15 : vector<16x64xf32> to vector<16x64xbf16>
      %c0_14 = arith.constant 0 : index
      %c0_15 = arith.constant 0 : index
      %17 = vector.load %arg6[%c0_14, %c0_15] : memref<16x64xbf16, #tpu.memory_space<vmem>>, vector<16x64xbf16>
      tpu.vector_store %arg6[%c0_14, %c0_15], %16 {strides = array<i32>} : memref<16x64xbf16, #tpu.memory_space<vmem>>, vector<16x64xbf16>,
    } else {
    }
    return
  }
  func.func @transform_0(%arg0: i32, %arg1: i32, %arg2: i32) -> (i32, i32) {
    %c0_i32 = arith.constant 0 : i32
    return %arg0, %arg2 : i32, i32
  }
  func.func @transform_1(%arg0: i32, %arg1: i32, %arg2: i32) -> (i32, i32) {
    %c0_i32 = arith.constant 0 : i32
    return %arg2, %arg1 : i32, i32
  }
  func.func @transform_2(%arg0: i32, %arg1: i32, %arg2: i32) -> (i32, i32) {
    %c0_i32 = arith.constant 0 : i32
    %c0_i32_0 = arith.constant 0 : i32
    return %c0_i32, %arg1 : i32, i32
  }
  func.func @transform_3(%arg0: i32, %arg1: i32, %arg2: i32) -> (i32, i32) {
    %c0_i32 = arith.constant 0 : i32
    return %arg0, %arg1 : i32, i32
  }
}

module attributes {stable_mosaic.version = 11 : i64} {
  func.func @_matmul_res_ln_kernel(%arg0: i32, %arg1: i32, %arg2: memref<16x64xbf16, #tpu.memory_space<vmem>>, %arg3: memref<64x32xbf16, #tpu.memory_space<vmem>>, %arg4: memref<1x32xf32, #tpu.memory_space<vmem>>, %arg5: memref<16x32xbf16, #tpu.memory_space<vmem>>, %arg6: memref<1x32xf32, #tpu.memory_space<vmem>>, %arg7: memref<1x32xf32, #tpu.memory_space<vmem>>, %arg8: memref<16x32xbf16, #tpu.memory_space<vmem>>, %arg9: memref<16x32xf32, #tpu.memory_space<vmem>>) attributes {dimension_semantics = [#tpu.dimension_semantics<parallel>, #tpu.dimension_semantics<arbitrary>], iteration_bounds = array<i64: 1, 1>, scalar_prefetch = 0 : i64, scratch_operands = 1 : i64, tpu.core_type = #tpu.core_type<tc>, window_params = [{transform_indices = @transform_0, window_bounds = array<i64: 16, 64>}, {transform_indices = @transform_1, window_bounds = array<i64: 64, 32>}, {pipeline_mode = #tpu.pipeline_mode<synchronous>, transform_indices = @transform_2, window_bounds = array<i64: 1, 32>}, {transform_indices = @transform_3, window_bounds = array<i64: 16, 32>}, {pipeline_mode = #tpu.pipeline_mode<synchronous>, transform_indices = @transform_4, window_bounds = array<i64: 1, 32>}, {pipeline_mode = #tpu.pipeline_mode<synchronous>, transform_indices = @transform_5, window_bounds = array<i64: 1, 32>}, {transform_indices = @transform_6, window_bounds = array<i64: 16, 32>}]} {
    %c0_i32 = arith.constant 0 : i32
    %0 = arith.cmpi eq, %arg1, %c0_i32 : i32
    %1 = arith.extui %0 : i1 to i32
    %c0_i32_0 = arith.constant 0 : i32
    %2 = arith.cmpi ne, %1, %c0_i32_0 : i32
    scf.if %2 {
      %cst_10 = arith.constant 0.000000e+00 : f32
      %12 = vector.broadcast %cst_10 : f32 to vector<16x32xf32>
      %c0_11 = arith.constant 0 : index
      %c0_12 = arith.constant 0 : index
      %13 = vector.load %arg9[%c0_11, %c0_12] : memref<16x32xf32, #tpu.memory_space<vmem>>, vector<16x32xf32>
      tpu.vector_store %arg9[%c0_11, %c0_12], %12 {strides = array<i32>} : memref<16x32xf32, #tpu.memory_space<vmem>>, vector<16x32xf32>,
    } else {
    }
    %c0 = arith.constant 0 : index
    %c0_1 = arith.constant 0 : index
    %3 = vector.load %arg9[%c0, %c0_1] : memref<16x32xf32, #tpu.memory_space<vmem>>, vector<16x32xf32>
    %c0_2 = arith.constant 0 : index
    %c0_3 = arith.constant 0 : index
    %4 = vector.load %arg2[%c0_2, %c0_3] : memref<16x64xbf16, #tpu.memory_space<vmem>>, vector<16x64xbf16>
    %c0_4 = arith.constant 0 : index
    %c0_5 = arith.constant 0 : index
    %5 = vector.load %arg3[%c0_4, %c0_5] : memref<64x32xbf16, #tpu.memory_space<vmem>>, vector<64x32xbf16>
    %cst = arith.constant dense<0.000000e+00> : vector<16x32xf32>
    %6 = tpu.matmul %4, %5, %cst {dimension_numbers = #tpu.dot_dimension_numbers<[1], [0], [0], [1], [0, 0, 1, 1], [], []>} : vector<16x64xbf16>, vector<64x32xbf16>, vector<16x32xf32> -> vector<16x32xf32>
    %7 = arith.addf %3, %6 : vector<16x32xf32>
    %c0_6 = arith.constant 0 : index
    %c0_7 = arith.constant 0 : index
    %8 = vector.load %arg9[%c0_6, %c0_7] : memref<16x32xf32, #tpu.memory_space<vmem>>, vector<16x32xf32>
    tpu.vector_store %arg9[%c0_6, %c0_7], %7 {strides = array<i32>} : memref<16x32xf32, #tpu.memory_space<vmem>>, vector<16x32xf32>,
    %c0_i32_8 = arith.constant 0 : i32
    %9 = arith.cmpi eq, %arg1, %c0_i32_8 : i32
    %10 = arith.extui %9 : i1 to i32
    %c0_i32_9 = arith.constant 0 : i32
    %11 = arith.cmpi ne, %10, %c0_i32_9 : i32
    scf.if %11 {
      %c0_10 = arith.constant 0 : index
      %c0_11 = arith.constant 0 : index
      %12 = vector.load %arg9[%c0_10, %c0_11] : memref<16x32xf32, #tpu.memory_space<vmem>>, vector<16x32xf32>
      %c0_12 = arith.constant 0 : index
      %c0_13 = arith.constant 0 : index
      %13 = vector.load %arg4[%c0_12, %c0_13] : memref<1x32xf32, #tpu.memory_space<vmem>>, vector<1x32xf32>
      %14 = vector.broadcast %13 : vector<1x32xf32> to vector<16x32xf32>
      %15 = arith.addf %12, %14 : vector<16x32xf32>
      %c0_14 = arith.constant 0 : index
      %c0_15 = arith.constant 0 : index
      %16 = vector.load %arg5[%c0_14, %c0_15] : memref<16x32xbf16, #tpu.memory_space<vmem>>, vector<16x32xbf16>
      %17 = arith.extf %16 : vector<16x32xbf16> to vector<16x32xf32>
      %18 = arith.addf %15, %17 : vector<16x32xf32>
      %cst_16 = arith.constant dense<0.000000e+00> : vector<16xf32>
      %19 = vector.multi_reduction <add>, %18, %cst_16 [1] : vector<16x32xf32> to vector<16xf32>
      %20 = vector.shape_cast %19 : vector<16xf32> to vector<16x1xf32>
      %cst_17 = arith.constant 3.200000e+01 : f32
      %21 = vector.broadcast %cst_17 : f32 to vector<16x1xf32>
      %22 = arith.divf %20, %21 : vector<16x1xf32>
      %23 = vector.broadcast %22 : vector<16x1xf32> to vector<16x32xf32>
      %24 = arith.subf %18, %23 : vector<16x32xf32>
      %25 = arith.mulf %24, %24 : vector<16x32xf32>
      %cst_18 = arith.constant dense<0.000000e+00> : vector<16xf32>
      %26 = vector.multi_reduction <add>, %25, %cst_18 [1] : vector<16x32xf32> to vector<16xf32>
      %27 = vector.shape_cast %26 : vector<16xf32> to vector<16x1xf32>
      %cst_19 = arith.constant 3.200000e+01 : f32
      %28 = vector.broadcast %cst_19 : f32 to vector<16x1xf32>
      %29 = arith.divf %27, %28 : vector<16x1xf32>
      %30 = vector.broadcast %22 : vector<16x1xf32> to vector<16x32xf32>
      %31 = arith.subf %18, %30 : vector<16x32xf32>
      %cst_20 = arith.constant 9.99999974E-6 : f32
      %32 = vector.broadcast %cst_20 : f32 to vector<16x1xf32>
      %33 = arith.addf %29, %32 : vector<16x1xf32>
      %34 = math.rsqrt %33 : vector<16x1xf32>
      %35 = vector.broadcast %34 : vector<16x1xf32> to vector<16x32xf32>
      %36 = arith.mulf %31, %35 : vector<16x32xf32>
      %c0_21 = arith.constant 0 : index
      %c0_22 = arith.constant 0 : index
      %37 = vector.load %arg6[%c0_21, %c0_22] : memref<1x32xf32, #tpu.memory_space<vmem>>, vector<1x32xf32>
      %38 = vector.broadcast %37 : vector<1x32xf32> to vector<16x32xf32>
      %39 = arith.mulf %36, %38 : vector<16x32xf32>
      %c0_23 = arith.constant 0 : index
      %c0_24 = arith.constant 0 : index
      %40 = vector.load %arg7[%c0_23, %c0_24] : memref<1x32xf32, #tpu.memory_space<vmem>>, vector<1x32xf32>
      %41 = vector.broadcast %40 : vector<1x32xf32> to vector<16x32xf32>
      %42 = arith.addf %39, %41 : vector<16x32xf32>
      %43 = arith.truncf %42 : vector<16x32xf32> to vector<16x32xbf16>
      %c0_25 = arith.constant 0 : index
      %c0_26 = arith.constant 0 : index
      %44 = vector.load %arg8[%c0_25, %c0_26] : memref<16x32xbf16, #tpu.memory_space<vmem>>, vector<16x32xbf16>
      tpu.vector_store %arg8[%c0_25, %c0_26], %43 {strides = array<i32>} : memref<16x32xbf16, #tpu.memory_space<vmem>>, vector<16x32xbf16>,
    } else {
    }
    return
  }
  func.func @transform_0(%arg0: i32, %arg1: i32) -> (i32, i32) {
    %c0_i32 = arith.constant 0 : i32
    return %arg0, %arg1 : i32, i32
  }
  func.func @transform_1(%arg0: i32, %arg1: i32) -> (i32, i32) {
    %c0_i32 = arith.constant 0 : i32
    %c0_i32_0 = arith.constant 0 : i32
    return %arg1, %c0_i32 : i32, i32
  }
  func.func @transform_2(%arg0: i32, %arg1: i32) -> (i32, i32) {
    %c0_i32 = arith.constant 0 : i32
    %c0_i32_0 = arith.constant 0 : i32
    %c0_i32_1 = arith.constant 0 : i32
    return %c0_i32, %c0_i32_0 : i32, i32
  }
  func.func @transform_3(%arg0: i32, %arg1: i32) -> (i32, i32) {
    %c0_i32 = arith.constant 0 : i32
    %c0_i32_0 = arith.constant 0 : i32
    return %arg0, %c0_i32 : i32, i32
  }
  func.func @transform_4(%arg0: i32, %arg1: i32) -> (i32, i32) {
    %c0_i32 = arith.constant 0 : i32
    %c0_i32_0 = arith.constant 0 : i32
    %c0_i32_1 = arith.constant 0 : i32
    return %c0_i32, %c0_i32_0 : i32, i32
  }
  func.func @transform_5(%arg0: i32, %arg1: i32) -> (i32, i32) {
    %c0_i32 = arith.constant 0 : i32
    %c0_i32_0 = arith.constant 0 : i32
    %c0_i32_1 = arith.constant 0 : i32
    return %c0_i32, %c0_i32_0 : i32, i32
  }
  func.func @transform_6(%arg0: i32, %arg1: i32) -> (i32, i32) {
    %c0_i32 = arith.constant 0 : i32
    %c0_i32_0 = arith.constant 0 : i32
    return %arg0, %c0_i32 : i32, i32
  }
}

module attributes {stable_mosaic.version = 11 : i64} {
  func.func @_matmul_kernel(%arg0: i32, %arg1: i32, %arg2: i32, %arg3: memref<16x32xbf16, #tpu.memory_space<vmem>>, %arg4: memref<32x64xbf16, #tpu.memory_space<vmem>>, %arg5: memref<1x64xf32, #tpu.memory_space<vmem>>, %arg6: memref<16x64xbf16, #tpu.memory_space<vmem>>, %arg7: memref<16x64xf32, #tpu.memory_space<vmem>>) attributes {dimension_semantics = [#tpu.dimension_semantics<parallel>, #tpu.dimension_semantics<parallel>, #tpu.dimension_semantics<arbitrary>], iteration_bounds = array<i64: 1, 1, 1>, scalar_prefetch = 0 : i64, scratch_operands = 1 : i64, tpu.core_type = #tpu.core_type<tc>, window_params = [{transform_indices = @transform_0, window_bounds = array<i64: 16, 32>}, {transform_indices = @transform_1, window_bounds = array<i64: 32, 64>}, {transform_indices = @transform_2, window_bounds = array<i64: 1, 64>}, {transform_indices = @transform_3, window_bounds = array<i64: 16, 64>}]} {
    %c0_i32 = arith.constant 0 : i32
    %0 = arith.cmpi eq, %arg2, %c0_i32 : i32
    %1 = arith.extui %0 : i1 to i32
    %c0_i32_0 = arith.constant 0 : i32
    %2 = arith.cmpi ne, %1, %c0_i32_0 : i32
    scf.if %2 {
      %cst_10 = arith.constant 0.000000e+00 : f32
      %12 = vector.broadcast %cst_10 : f32 to vector<16x64xf32>
      %c0_11 = arith.constant 0 : index
      %c0_12 = arith.constant 0 : index
      %13 = vector.load %arg7[%c0_11, %c0_12] : memref<16x64xf32, #tpu.memory_space<vmem>>, vector<16x64xf32>
      tpu.vector_store %arg7[%c0_11, %c0_12], %12 {strides = array<i32>} : memref<16x64xf32, #tpu.memory_space<vmem>>, vector<16x64xf32>,
    } else {
    }
    %c0 = arith.constant 0 : index
    %c0_1 = arith.constant 0 : index
    %3 = vector.load %arg7[%c0, %c0_1] : memref<16x64xf32, #tpu.memory_space<vmem>>, vector<16x64xf32>
    %c0_2 = arith.constant 0 : index
    %c0_3 = arith.constant 0 : index
    %4 = vector.load %arg3[%c0_2, %c0_3] : memref<16x32xbf16, #tpu.memory_space<vmem>>, vector<16x32xbf16>
    %c0_4 = arith.constant 0 : index
    %c0_5 = arith.constant 0 : index
    %5 = vector.load %arg4[%c0_4, %c0_5] : memref<32x64xbf16, #tpu.memory_space<vmem>>, vector<32x64xbf16>
    %cst = arith.constant dense<0.000000e+00> : vector<16x64xf32>
    %6 = tpu.matmul %4, %5, %cst {dimension_numbers = #tpu.dot_dimension_numbers<[1], [0], [0], [1], [0, 0, 1, 1], [], []>} : vector<16x32xbf16>, vector<32x64xbf16>, vector<16x64xf32> -> vector<16x64xf32>
    %7 = arith.addf %3, %6 : vector<16x64xf32>
    %c0_6 = arith.constant 0 : index
    %c0_7 = arith.constant 0 : index
    %8 = vector.load %arg7[%c0_6, %c0_7] : memref<16x64xf32, #tpu.memory_space<vmem>>, vector<16x64xf32>
    tpu.vector_store %arg7[%c0_6, %c0_7], %7 {strides = array<i32>} : memref<16x64xf32, #tpu.memory_space<vmem>>, vector<16x64xf32>,
    %c0_i32_8 = arith.constant 0 : i32
    %9 = arith.cmpi eq, %arg2, %c0_i32_8 : i32
    %10 = arith.extui %9 : i1 to i32
    %c0_i32_9 = arith.constant 0 : i32
    %11 = arith.cmpi ne, %10, %c0_i32_9 : i32
    scf.if %11 {
      %c0_10 = arith.constant 0 : index
      %c0_11 = arith.constant 0 : index
      %12 = vector.load %arg7[%c0_10, %c0_11] : memref<16x64xf32, #tpu.memory_space<vmem>>, vector<16x64xf32>
      %c0_12 = arith.constant 0 : index
      %c0_13 = arith.constant 0 : index
      %13 = vector.load %arg5[%c0_12, %c0_13] : memref<1x64xf32, #tpu.memory_space<vmem>>, vector<1x64xf32>
      %14 = vector.broadcast %13 : vector<1x64xf32> to vector<16x64xf32>
      %15 = arith.addf %12, %14 : vector<16x64xf32>
      %16 = arith.mulf %15, %15 : vector<16x64xf32>
      %17 = arith.mulf %15, %16 : vector<16x64xf32>
      %cst_14 = arith.constant 4.471500e-02 : f32
      %18 = vector.broadcast %cst_14 : f32 to vector<16x64xf32>
      %19 = arith.mulf %18, %17 : vector<16x64xf32>
      %20 = arith.addf %15, %19 : vector<16x64xf32>
      %cst_15 = arith.constant 0.797884583 : f32
      %21 = vector.broadcast %cst_15 : f32 to vector<16x64xf32>
      %22 = arith.mulf %21, %20 : vector<16x64xf32>
      %23 = math.tanh %22 : vector<16x64xf32>
      %cst_16 = arith.constant 1.000000e+00 : f32
      %24 = vector.broadcast %cst_16 : f32 to vector<16x64xf32>
      %25 = arith.addf %24, %23 : vector<16x64xf32>
      %cst_17 = arith.constant 5.000000e-01 : f32
      %26 = vector.broadcast %cst_17 : f32 to vector<16x64xf32>
      %27 = arith.mulf %26, %25 : vector<16x64xf32>
      %28 = arith.mulf %15, %27 : vector<16x64xf32>
      %29 = arith.truncf %28 : vector<16x64xf32> to vector<16x64xbf16>
      %c0_18 = arith.constant 0 : index
      %c0_19 = arith.constant 0 : index
      %30 = vector.load %arg6[%c0_18, %c0_19] : memref<16x64xbf16, #tpu.memory_space<vmem>>, vector<16x64xbf16>
      tpu.vector_store %arg6[%c0_18, %c0_19], %29 {strides = array<i32>} : memref<16x64xbf16, #tpu.memory_space<vmem>>, vector<16x64xbf16>,
    } else {
    }
    return
  }
  func.func @transform_0(%arg0: i32, %arg1: i32, %arg2: i32) -> (i32, i32) {
    %c0_i32 = arith.constant 0 : i32
    return %arg0, %arg2 : i32, i32
  }
  func.func @transform_1(%arg0: i32, %arg1: i32, %arg2: i32) -> (i32, i32) {
    %c0_i32 = arith.constant 0 : i32
    return %arg2, %arg1 : i32, i32
  }
  func.func @transform_2(%arg0: i32, %arg1: i32, %arg2: i32) -> (i32, i32) {
    %c0_i32 = arith.constant 0 : i32
    %c0_i32_0 = arith.constant 0 : i32
    return %c0_i32, %arg1 : i32, i32
  }
  func.func @transform_3(%arg0: i32, %arg1: i32, %arg2: i32) -> (i32, i32) {
    %c0_i32 = arith.constant 0 : i32
    return %arg0, %arg1 : i32, i32
  }
}

module attributes {stable_mosaic.version = 11 : i64} {
  func.func @_matmul_kernel(%arg0: i32, %arg1: i32, %arg2: i32, %arg3: memref<2x32xbf16, #tpu.memory_space<vmem>>, %arg4: memref<32x128xbf16, #tpu.memory_space<vmem>>, %arg5: memref<1x128xf32, #tpu.memory_space<vmem>>, %arg6: memref<2x128xbf16, #tpu.memory_space<vmem>>, %arg7: memref<2x128xf32, #tpu.memory_space<vmem>>) attributes {dimension_semantics = [#tpu.dimension_semantics<parallel>, #tpu.dimension_semantics<parallel>, #tpu.dimension_semantics<arbitrary>], iteration_bounds = array<i64: 1, 1, 1>, scalar_prefetch = 0 : i64, scratch_operands = 1 : i64, tpu.core_type = #tpu.core_type<tc>, window_params = [{transform_indices = @transform_0, window_bounds = array<i64: 2, 32>}, {transform_indices = @transform_1, window_bounds = array<i64: 32, 128>}, {transform_indices = @transform_2, window_bounds = array<i64: 1, 128>}, {transform_indices = @transform_3, window_bounds = array<i64: 2, 128>}]} {
    %c0_i32 = arith.constant 0 : i32
    %0 = arith.cmpi eq, %arg2, %c0_i32 : i32
    %1 = arith.extui %0 : i1 to i32
    %c0_i32_0 = arith.constant 0 : i32
    %2 = arith.cmpi ne, %1, %c0_i32_0 : i32
    scf.if %2 {
      %cst_10 = arith.constant 0.000000e+00 : f32
      %12 = vector.broadcast %cst_10 : f32 to vector<2x128xf32>
      %c0_11 = arith.constant 0 : index
      %c0_12 = arith.constant 0 : index
      %13 = vector.load %arg7[%c0_11, %c0_12] : memref<2x128xf32, #tpu.memory_space<vmem>>, vector<2x128xf32>
      tpu.vector_store %arg7[%c0_11, %c0_12], %12 {strides = array<i32>} : memref<2x128xf32, #tpu.memory_space<vmem>>, vector<2x128xf32>,
    } else {
    }
    %c0 = arith.constant 0 : index
    %c0_1 = arith.constant 0 : index
    %3 = vector.load %arg7[%c0, %c0_1] : memref<2x128xf32, #tpu.memory_space<vmem>>, vector<2x128xf32>
    %c0_2 = arith.constant 0 : index
    %c0_3 = arith.constant 0 : index
    %4 = vector.load %arg3[%c0_2, %c0_3] : memref<2x32xbf16, #tpu.memory_space<vmem>>, vector<2x32xbf16>
    %c0_4 = arith.constant 0 : index
    %c0_5 = arith.constant 0 : index
    %5 = vector.load %arg4[%c0_4, %c0_5] : memref<32x128xbf16, #tpu.memory_space<vmem>>, vector<32x128xbf16>
    %cst = arith.constant dense<0.000000e+00> : vector<2x128xf32>
    %6 = tpu.matmul %4, %5, %cst {dimension_numbers = #tpu.dot_dimension_numbers<[1], [0], [0], [1], [0, 0, 1, 1], [], []>} : vector<2x32xbf16>, vector<32x128xbf16>, vector<2x128xf32> -> vector<2x128xf32>
    %7 = arith.addf %3, %6 : vector<2x128xf32>
    %c0_6 = arith.constant 0 : index
    %c0_7 = arith.constant 0 : index
    %8 = vector.load %arg7[%c0_6, %c0_7] : memref<2x128xf32, #tpu.memory_space<vmem>>, vector<2x128xf32>
    tpu.vector_store %arg7[%c0_6, %c0_7], %7 {strides = array<i32>} : memref<2x128xf32, #tpu.memory_space<vmem>>, vector<2x128xf32>,
    %c0_i32_8 = arith.constant 0 : i32
    %9 = arith.cmpi eq, %arg2, %c0_i32_8 : i32
    %10 = arith.extui %9 : i1 to i32
    %c0_i32_9 = arith.constant 0 : i32
    %11 = arith.cmpi ne, %10, %c0_i32_9 : i32
    scf.if %11 {
      %c0_10 = arith.constant 0 : index
      %c0_11 = arith.constant 0 : index
      %12 = vector.load %arg7[%c0_10, %c0_11] : memref<2x128xf32, #tpu.memory_space<vmem>>, vector<2x128xf32>
      %c0_12 = arith.constant 0 : index
      %c0_13 = arith.constant 0 : index
      %13 = vector.load %arg5[%c0_12, %c0_13] : memref<1x128xf32, #tpu.memory_space<vmem>>, vector<1x128xf32>
      %14 = vector.broadcast %13 : vector<1x128xf32> to vector<2x128xf32>
      %15 = arith.addf %12, %14 : vector<2x128xf32>
      %16 = arith.truncf %15 : vector<2x128xf32> to vector<2x128xbf16>
      %c0_14 = arith.constant 0 : index
      %c0_15 = arith.constant 0 : index
      %17 = vector.load %arg6[%c0_14, %c0_15] : memref<2x128xbf16, #tpu.memory_space<vmem>>, vector<2x128xbf16>
      tpu.vector_store %arg6[%c0_14, %c0_15], %16 {strides = array<i32>} : memref<2x128xbf16, #tpu.memory_space<vmem>>, vector<2x128xbf16>,
    } else {
    }
    return
  }
  func.func @transform_0(%arg0: i32, %arg1: i32, %arg2: i32) -> (i32, i32) {
    %c0_i32 = arith.constant 0 : i32
    return %arg0, %arg2 : i32, i32
  }
  func.func @transform_1(%arg0: i32, %arg1: i32, %arg2: i32) -> (i32, i32) {
    %c0_i32 = arith.constant 0 : i32
    return %arg2, %arg1 : i32, i32
  }
  func.func @transform_2(%arg0: i32, %arg1: i32, %arg2: i32) -> (i32, i32) {
    %c0_i32 = arith.constant 0 : i32
    %c0_i32_0 = arith.constant 0 : i32
    return %c0_i32, %arg1 : i32, i32
  }
  func.func @transform_3(%arg0: i32, %arg1: i32, %arg2: i32) -> (i32, i32) {
    %c0_i32 = arith.constant 0 : i32
    return %arg0, %arg1 : i32, i32
  }
}

module attributes {stable_mosaic.version = 11 : i64} {
  func.func @_softmax_kernel(%arg0: i32, %arg1: memref<2x128xbf16, #tpu.memory_space<vmem>>, %arg2: memref<2x128xf32, #tpu.memory_space<vmem>>) attributes {dimension_semantics = [#tpu.dimension_semantics<parallel>], iteration_bounds = array<i64: 1>, scalar_prefetch = 0 : i64, scratch_operands = 0 : i64, tpu.core_type = #tpu.core_type<tc>, window_params = [{transform_indices = @transform_0, window_bounds = array<i64: 2, 128>}, {transform_indices = @transform_1, window_bounds = array<i64: 2, 128>}]} {
    %c0 = arith.constant 0 : index
    %c0_0 = arith.constant 0 : index
    %0 = vector.load %arg1[%c0, %c0_0] : memref<2x128xbf16, #tpu.memory_space<vmem>>, vector<2x128xbf16>
    %1 = arith.extf %0 : vector<2x128xbf16> to vector<2x128xf32>
    %cst = arith.constant dense<0xFF800000> : vector<2xf32>
    %2 = vector.multi_reduction <maximumf>, %1, %cst [1] : vector<2x128xf32> to vector<2xf32>
    %3 = vector.shape_cast %2 : vector<2xf32> to vector<2x1xf32>
    %4 = vector.broadcast %3 : vector<2x1xf32> to vector<2x128xf32>
    %5 = arith.subf %1, %4 : vector<2x128xf32>
    %6 = math.exp %5 : vector<2x128xf32>
    %cst_1 = arith.constant dense<0.000000e+00> : vector<2xf32>
    %7 = vector.multi_reduction <add>, %6, %cst_1 [1] : vector<2x128xf32> to vector<2xf32>
    %8 = vector.shape_cast %7 : vector<2xf32> to vector<2x1xf32>
    %9 = tpu.reciprocal %8 : vector<2x1xf32> -> vector<2x1xf32>
    %10 = vector.broadcast %9 : vector<2x1xf32> to vector<2x128xf32>
    %11 = arith.mulf %6, %10 : vector<2x128xf32>
    %c0_2 = arith.constant 0 : index
    %c0_3 = arith.constant 0 : index
    %12 = vector.load %arg2[%c0_2, %c0_3] : memref<2x128xf32, #tpu.memory_space<vmem>>, vector<2x128xf32>
    tpu.vector_store %arg2[%c0_2, %c0_3], %11 {strides = array<i32>} : memref<2x128xf32, #tpu.memory_space<vmem>>, vector<2x128xf32>,
    return
  }
  func.func @transform_0(%arg0: i32) -> (i32, i32) {
    %c0_i32 = arith.constant 0 : i32
    %c0_i32_0 = arith.constant 0 : i32
    return %arg0, %c0_i32 : i32, i32
  }
  func.func @transform_1(%arg0: i32) -> (i32, i32) {
    %c0_i32 = arith.constant 0 : i32
    %c0_i32_0 = arith.constant 0 : i32
    return %arg0, %c0_i32 : i32, i32
  }
}

</mosaic_0001>

<bundles_post_ra>
// kernel: transformer_lm_head_forward.40
= control target key start
LH: loop header
LB: loop body
LE: loop exit
PB: predicated region body
PF: predicated region fallthrough
CT: control target
= control target key end

     0   :  { %vm19_vm0 = vcmask 785408   ;;  %v151_v0 = vmov 0.0   ;;  %vm152_vm1 = vmmov 0   ;;  %vm47_vm2 = vcmask 261120   ;;  %s195_s1 = inlined_call_operand.vmem [shape: bf16[32,96], index: 1, kind: input, shape index: {}]   ;;  %s196_s0 = inlined_call_operand.vmem [shape: bf16[16,32], index: 0, kind: input, shape index: {}]   ;;  %s197_s2 = inlined_call_operand.vmem [shape: f32[1,96], index: 2, kind: input, shape index: {}]   ;;  %s198_s3 = inlined_call_operand.vmem [shape: bf16[16,96], index: 3, kind: output, shape index: {}]  }
   0x1   :  { %138 = vmatprep.subr.bf16.mxu0 %v151_v0  ;;  %v148_v1 = vld [vmem:[%s195_s1] sm:$0xff]   ;;  %142 = vmatprep.mubr.msk.bf16.mxu0 %vm152_vm1, %v151_v0  ;;  %20 = vst.msk [vmem:[#allocation2] sm:$0xff] %vm19_vm0, %v151_v0  ;;  %21 = vst.msk [vmem:[#allocation2 + $0x8] sm:$0xff] %vm19_vm0, %v151_v0  ;;  %v149_v2 = vld [vmem:[%s195_s1 + $0x8] sm:$0xff]   ;;  %vm119_vm3 = vcmask 781312  }
   0x2   :  { %139 = vmatpush3.bf16.msra.mxu0 %v148_v1  ;;  %v150_v3 = vld [vmem:[%s196_s0] sm:$0xff]  }
   0x3   :  { %140 = vmatprep.subr.bf16.mxu0 %v151_v0  ;;  %v130_v12 = vld [vmem:[%s197_s2] ss:$0 sm:$0xff] }
   0x6   :  { %141 = vmatpush3.bf16.msra.mxu0 %v149_v2 }
   0x8   :  { %v22_v4 = vld [vmem:[#allocation2] sm:$0xff]  ;;  %v23_v6 = vld [vmem:[#allocation2 + $0x8] sm:$0xff] }
   0x9   :  { %143 = vmatmul.mubr.msk.bf16.vlgmr.msra.gmra.mrb[0].mxu0 %vm47_vm2, %v150_v3 }
  0xdc   :  { %v85_v5 = vpop.f32.mrb[0].mxu0 }
  0xdd   :  { %v92_v7 = vadd.f32 %v85_v5, %v22_v4  ;;  %v144_v8 = vpop.f32.mrb[1].mxu0 }
  0xde   :  { %v88_v9 = vpop.f32.mrb[2].mxu0 }
  0xdf   :  { %95 = vst.msk [vmem:[#allocation2] sm:$0xff] %vm19_vm0, %v92_v7  ;;  %v93_v10 = vadd.f32 %v88_v9, %v23_v6  ;;  %v145_v11 = vpop.f32.mrb[3].mxu0 }
  0xe1   :  { %96 = vst.msk [vmem:[#allocation2 + $0x8] sm:$0xff] %vm19_vm0, %v93_v10 }
  0xe6   :  { %v100_v13 = vld [vmem:[#allocation2] sm:$0xff] }
  0xe7   :  { %v109_v14 = vadd.f32 %v130_v12, %v100_v13 }
  0xe8   :  { %v101_v15 = vld [vmem:[#allocation2 + $0x8] sm:$0xff] }
  0xe9   :  { %v133_v16 = vpack.c.bf16 %v109_v14, %v109_v14  ;;  %v110_v17 = vadd.f32 %v130_v12, %v101_v15 }
  0xeb   :  { %120 = vst.msk [vmem:[%s198_s3] sm:$0xf] %vm119_vm3, %v133_v16  ;;  %v134_v18 = vpack.c.bf16 %v110_v17, %v110_v17 }
  0xed   :  { %121 = vst.msk [vmem:[%s198_s3 + $0x4] sm:$0xf] %vm119_vm3, %v134_v18 }

// kernel: transformer_lm_head_forward.42
= control target key start
LH: loop header
LB: loop body
LE: loop exit
PB: predicated region body
PF: predicated region fallthrough
CT: control target
= control target key end

     0   :  { %vm28_vm0 = vcmask 261120   ;;  %v220_v0 = vmov 0.0   ;;  %vm221_vm1 = vmmov 0   ;;  %vm178_vm2 = vcmask 257024   ;;  %s293_s1 = inlined_call_operand.vmem [shape: bf16[32,32], index: 1, kind: input, shape index: {}]   ;;  %s294_s0 = inlined_call_operand.vmem [shape: bf16[16,32], index: 0, kind: input, shape index: {}]   ;;  %s295_s3 = inlined_call_operand.vmem [shape: bf16[16,32], index: 3, kind: input, shape index: {}]   ;;  %s296_s2 = inlined_call_operand.vmem [shape: f32[1,32], index: 2, kind: input, shape index: {}]   ;;  %s297_s4 = inlined_call_operand.vmem [shape: f32[1,32], index: 4, kind: input, shape index: {}]   ;;  %s298_s5 = inlined_call_operand.vmem [shape: f32[1,32], index: 5, kind: input, shape index: {}]   ;;  %s299_s6 = inlined_call_operand.vmem [shape: bf16[16,32], index: 6, kind: output, shape index: {}]  }
   0x1   :  { %203 = vmatprep.subr.bf16.mxu0 %v220_v0  ;;  %v213_v1 = vld [vmem:[%s293_s1] sm:$0xff]   ;;  %207 = vmatprep.mubr.msk.bf16.mxu0 %vm221_vm1, %v220_v0  ;;  %29 = vst.msk [vmem:[#allocation2] sm:$0xff] %vm28_vm0, %v220_v0  ;;  %30 = vst.msk [vmem:[#allocation2 + $0x8] sm:$0xff] %vm28_vm0, %v220_v0  ;;  %v214_v2 = vld [vmem:[%s293_s1 + $0x8] sm:$0xff]  }
   0x2   :  { %204 = vmatpush3.bf16.msra.mxu0 %v213_v1  ;;  %v215_v3 = vld [vmem:[%s294_s0] sm:$0xff]  }
   0x3   :  { %205 = vmatprep.subr.bf16.mxu0 %v220_v0  ;;  %v197_v12 = vld [vmem:[%s295_s3] sm:$0xff]  }
   0x4   :  { %v189_v13 = vld [vmem:[%s296_s2] ss:$0 sm:$0xff]  ;;  %v198_v14 = vunpack.c.l.bf16 %v197_v12  ;;  %v199_v17 = vunpack.c.h.bf16 %v197_v12 }
   0x5   :  { %v190_v41 = vld [vmem:[%s297_s4] ss:$0 sm:$0xff] }
   0x6   :  { %206 = vmatpush3.bf16.msra.mxu0 %v214_v2  ;;  %v191_v43 = vld [vmem:[%s298_s5] ss:$0 sm:$0xff] }
   0x8   :  { %v31_v4 = vld [vmem:[#allocation2] sm:$0xff]  ;;  %v32_v6 = vld [vmem:[#allocation2 + $0x8] sm:$0xff] }
   0x9   :  { %208 = vmatmul.mubr.msk.bf16.vlgmr.msra.gmra.mrb[0].mxu0 %vm28_vm0, %v215_v3 }
  0xdc   :  { %v94_v5 = vpop.f32.mrb[0].mxu0 }
  0xdd   :  { %v101_v7 = vadd.f32 %v94_v5, %v31_v4  ;;  %v209_v8 = vpop.f32.mrb[1].mxu0 }
  0xde   :  { %v97_v9 = vpop.f32.mrb[2].mxu0 }
  0xdf   :  { %103 = vst.msk [vmem:[#allocation2] sm:$0xff] %vm28_vm0, %v101_v7  ;;  %v102_v10 = vadd.f32 %v97_v9, %v32_v6  ;;  %v210_v11 = vpop.f32.mrb[3].mxu0 }
  0xe1   :  { %104 = vst.msk [vmem:[#allocation2 + $0x8] sm:$0xff] %vm28_vm0, %v102_v10 }
  0xe6   :  { %v108_v15 = vld [vmem:[#allocation2] sm:$0xff] }
  0xe7   :  { %v117_v16 = vadd.f32 %v189_v13, %v108_v15 }
  0xe8   :  { %v109_v18 = vld [vmem:[#allocation2 + $0x8] sm:$0xff] }
  0xe9   :  { %v123_v19 = vadd.f32 %v198_v14, %v117_v16  ;;  %v118_v20 = vadd.f32 %v189_v13, %v109_v18 }
  0xeb   :  { %v125_v21 = vsel %vm28_vm0, %v123_v19, 0.0  ;;  %v124_v22 = vadd.f32 %v199_v17, %v118_v20 }
  0xec   :  { %126 = vadd.xlane.f32.xlu0 %v125_v21 }
  0xed   :  { %v128_v23 = vsel %vm28_vm0, %v124_v22, 0.0 }
  0xf0   :  { %129 = vadd.xlane.f32.xlu0 %v128_v23 }
 0x179   :  { %v127_v24 = vpop.xlane.xlu0 %126 }
 0x17a   :  { %v132_v25 = vmul.f32 0.03125, %v127_v24 }
 0x17c   :  { %v134_v26 = vsub.f32 %v123_v19, %v132_v25 }
 0x17d   :  { %v130_v27 = vpop.xlane.xlu0 %129 }
 0x17e   :  { %v133_v28 = vmul.f32 0.03125, %v130_v27  ;;  %v136_v29 = vmul.f32 %v134_v26, %v134_v26 }
 0x180   :  { %v135_v30 = vsub.f32 %v124_v22, %v133_v28  ;;  %v138_v31 = vsel %vm28_vm0, %v136_v29, 0.0 }
 0x181   :  { %139 = vadd.xlane.f32.xlu1 %v138_v31 }
 0x182   :  { %v137_v32 = vmul.f32 %v135_v30, %v135_v30 }
 0x184   :  { %v141_v33 = vsel %vm28_vm0, %v137_v32, 0.0 }
 0x185   :  { %142 = vadd.xlane.f32.xlu1 %v141_v33 }
 0x20e   :  { %v140_v34 = vpop.xlane.xlu1 %139 }
 0x20f   :  { %v144_v35 = vmul.f32 0.03125, %v140_v34 }
 0x211   :  { %v146_v36 = vadd.f32 1e-05, %v144_v35 }
 0x212   :  { %v143_v37 = vpop.xlane.xlu1 %142 }
 0x213   :  { %216 = vrsqrt.f32 %v146_v36  ;;  %v145_v38 = vmul.f32 0.03125, %v143_v37 }
 0x215   :  { %v147_v39 = vadd.f32 1e-05, %v145_v38 }
 0x217   :  { %218 = vrsqrt.f32 %v147_v39 }
 0x21d   :  { %v217_v40 = vpop.eup %216 }
 0x21e   :  { %v150_v42 = vmul.f32 %v217_v40, %v134_v26 }
 0x220   :  { %v159_v44 = vmul.f32 %v190_v41, %v150_v42 }
 0x221   :  { %v219_v45 = vpop.eup %218 }
 0x222   :  { %v168_v46 = vadd.f32 %v191_v43, %v159_v44  ;;  %v151_v47 = vmul.f32 %v219_v45, %v135_v30 }
 0x224   :  { %v194_v48 = vpack.c.bf16 %v168_v46, %v168_v46  ;;  %v160_v49 = vmul.f32 %v190_v41, %v151_v47 }
 0x226   :  { %179 = vst.msk [vmem:[%s299_s6] sm:$0xf] %vm178_vm2, %v194_v48  ;;  %v169_v50 = vadd.f32 %v191_v43, %v160_v49 }
 0x228   :  { %v195_v51 = vpack.c.bf16 %v169_v50, %v169_v50 }
 0x22a   :  { %180 = vst.msk [vmem:[%s299_s6 + $0x4] sm:$0xf] %vm178_vm2, %v195_v51 }

// kernel: transformer_lm_head_forward.43
= control target key start
LH: loop header
LB: loop body
LE: loop exit
PB: predicated region body
PF: predicated region fallthrough
CT: control target
= control target key end

     0   :  { %vm19_vm0 = vcmask 261120   ;;  %v150_v0 = vmov 0.0   ;;  %vm151_vm1 = vmmov 0   ;;  %vm118_vm2 = vcmask 257024   ;;  %s195_s1 = inlined_call_operand.vmem [shape: bf16[32,32], index: 1, kind: input, shape index: {}]   ;;  %s196_s0 = inlined_call_operand.vmem [shape: bf16[16,32], index: 0, kind: input, shape index: {}]   ;;  %s197_s2 = inlined_call_operand.vmem [shape: f32[1,32], index: 2, kind: input, shape index: {}]   ;;  %s198_s3 = inlined_call_operand.vmem [shape: bf16[16,32], index: 3, kind: output, shape index: {}]  }
   0x1   :  { %137 = vmatprep.subr.bf16.mxu0 %v150_v0  ;;  %v147_v1 = vld [vmem:[%s195_s1] sm:$0xff]   ;;  %141 = vmatprep.mubr.msk.bf16.mxu0 %vm151_vm1, %v150_v0  ;;  %20 = vst.msk [vmem:[#allocation2] sm:$0xff] %vm19_vm0, %v150_v0  ;;  %21 = vst.msk [vmem:[#allocation2 + $0x8] sm:$0xff] %vm19_vm0, %v150_v0  ;;  %v148_v2 = vld [vmem:[%s195_s1 + $0x8] sm:$0xff]  }
   0x2   :  { %138 = vmatpush3.bf16.msra.mxu0 %v147_v1  ;;  %v149_v3 = vld [vmem:[%s196_s0] sm:$0xff]  }
   0x3   :  { %139 = vmatprep.subr.bf16.mxu0 %v150_v0  ;;  %v129_v12 = vld [vmem:[%s197_s2] ss:$0 sm:$0xff] }
   0x6   :  { %140 = vmatpush3.bf16.msra.mxu0 %v148_v2 }
   0x8   :  { %v22_v4 = vld [vmem:[#allocation2] sm:$0xff]  ;;  %v23_v6 = vld [vmem:[#allocation2 + $0x8] sm:$0xff] }
   0x9   :  { %142 = vmatmul.mubr.msk.bf16.vlgmr.msra.gmra.mrb[0].mxu0 %vm19_vm0, %v149_v3 }
  0xdc   :  { %v85_v5 = vpop.f32.mrb[0].mxu0 }
  0xdd   :  { %v92_v7 = vadd.f32 %v85_v5, %v22_v4  ;;  %v143_v8 = vpop.f32.mrb[1].mxu0 }
  0xde   :  { %v88_v9 = vpop.f32.mrb[2].mxu0 }
  0xdf   :  { %94 = vst.msk [vmem:[#allocation2] sm:$0xff] %vm19_vm0, %v92_v7  ;;  %v93_v10 = vadd.f32 %v88_v9, %v23_v6  ;;  %v144_v11 = vpop.f32.mrb[3].mxu0 }
  0xe1   :  { %95 = vst.msk [vmem:[#allocation2 + $0x8] sm:$0xff] %vm19_vm0, %v93_v10 }
  0xe6   :  { %v99_v13 = vld [vmem:[#allocation2] sm:$0xff] }
  0xe7   :  { %v108_v14 = vadd.f32 %v129_v12, %v99_v13 }
  0xe8   :  { %v100_v15 = vld [vmem:[#allocation2 + $0x8] sm:$0xff] }
  0xe9   :  { %v132_v16 = vpack.c.bf16 %v108_v14, %v108_v14  ;;  %v109_v17 = vadd.f32 %v129_v12, %v100_v15 }
  0xeb   :  { %119 = vst.msk [vmem:[%s198_s3] sm:$0xf] %vm118_vm2, %v132_v16  ;;  %v133_v18 = vpack.c.bf16 %v109_v17, %v109_v17 }
  0xed   :  { %120 = vst.msk [vmem:[%s198_s3 + $0x4] sm:$0xf] %vm118_vm2, %v133_v18 }

// kernel: transformer_lm_head_forward.41
= control target key start
LH: loop header
LB: loop body
LE: loop exit
PB: predicated region body
PF: predicated region fallthrough
CT: control target
= control target key end

     0   :  { %s1383_s15 = smov 0   ;;  %s1385_s16 = smov 0   ;;  %s1591_s0 = inlined_call_operand.vmem [shape: bf16[2,8,32], index: 0, kind: input, shape index: {}]   ;;  %s1592_s1 = inlined_call_operand.vmem [shape: bf16[2,8,32], index: 1, kind: input, shape index: {}]   ;;  %s1593_s2 = inlined_call_operand.vmem [shape: bf16[2,8,32], index: 2, kind: input, shape index: {}]   ;;  %s1594_s3 = inlined_call_operand.vmem [shape: f32[2,1,8], index: 3, kind: input, shape index: {}]   ;;  %s1595_s4 = inlined_call_operand.vmem [shape: bf16[2,8,32], index: 4, kind: output, shape index: {}]  }
   0x1   :  { %s1387_s17 = smov 0  }
   0x2 LB: > { %s33_s18 = sadd.s32 1, %s1341_s16  ;;  %p1159_p0 = scmp.ge.s32.totalorder %s1345_s17, 1  ;;  %s1345_s17 = sphi %s1387_s17, %s14_s17   ;;  %s1341_s16 = sphi %s1385_s16, %s1597_s16   ;;  %s1337_s15 = sphi %s1383_s15, %s1596_s15  }
   0x3   : > { %p35_p1 = scmp.ge.s32.totalorder %s33_s18, 2  ;;  %p228_p2 = scmp.lt.s32.totalorder %s1345_s17, 3 }
   0x5   : > { %s1599_s18 = smov (%p35_p1, %s33_s18), 0  ;;  %p229_p3 = pnand %p1159_p0, %p228_p2 }
   0x6   : > { %p278_p4 = scmp.lt.s32.totalorder (!%p229_p3), %s1337_s15, 1  ;;  %vm368_vm0 = vcmask (!%p229_p3), 64512   ;;  %v1347_v0 = vmov (!%p229_p3), 0.0   ;;  %vm1348_vm1 = vmmov (!%p229_p3), 0   ;;  %vm321_vm2 = vcmask (!%p229_p3), 60416   ;;  %s1352_s29 = smov (!%p229_p3), 120  }
   0x7   : > { %232 = sbr.rel (%p229_p3) target bundleno = 1474 (0x5c2), region = 36  ;;  %1208 = vmatprep.subr.bf16.mxu0 (!%p229_p3), %v1347_v0  ;;  %369 = vst.msk [vmem:[#allocation5] sm:$0xff] (!%p229_p3), %vm368_vm0, %v1347_v0  ;;  %370 = vst.msk [vmem:[#allocation5 + $0x8] sm:$0xff] (!%p229_p3), %vm368_vm0, %v1347_v0  ;;  %1210 = vmatprep.mubr.msk.bf16.mxu0 (!%p229_p3), %vm1348_vm1, %v1347_v0  ;;  %vm359_vm3 = vcmask (!%p229_p3), 7168   ;;  %v1349_v8 = vmov (!%p229_p3), -inf   ;;  %v383_v9 = vlaneseq (!%p229_p3)  ;;  %v1351_v26 = vmov (!%p229_p3), 0  }
   0x8   : > { %371 = vst.msk [vmem:[#allocation5 + $0x10] sm:$0xff] (!%p229_p3), %vm368_vm0, %v1347_v0  ;;  %372 = vst.msk [vmem:[#allocation5 + $0x18] sm:$0xff] (!%p229_p3), %vm368_vm0, %v1347_v0  ;;  %1214 = vmatprep.subr.bf16.mxu1 (!%p229_p3), %v1347_v0  ;;  %1216 = vmatprep.mubr.msk.bf16.mxu1 (!%p229_p3), %vm1348_vm1, %v1347_v0  ;;  %v1350_v17 = vmov (!%p229_p3), -1e+09   ;;  %s1353_s30 = smov (!%p229_p3), 112   ;;  %s1354_s5 = smov (!%p229_p3), 104  }
   0x9   : > { %360 = vst.msk [vmem:[#allocation3] sm:$0xff] (!%p229_p3), %vm359_vm3, %v1349_v8  ;;  %361 = vst.msk [vmem:[#allocation3 + $0x8] sm:$0xff] (!%p229_p3), %vm359_vm3, %v1349_v8  ;;  %v384_v12 = vshrl.u32 (!%p229_p3), %v383_v9, 7  ;;  %v388_v13 = vand.u32 (!%p229_p3), 127, %v383_v9  ;;  %1291 = vset.pattern.permute.xlu0 (!%p229_p3), %v1351_v26  ;;  %1292 = vset.pattern.permute.xlu1 (!%p229_p3), %v1351_v26  ;;  %vm485_vm5 = vcmask (!%p229_p3), 1043456   ;;  %s1355_s12 = smov (!%p229_p3), 8  }
   0xa   : > { %362 = vst.msk [vmem:[#allocation3 + $0x10] sm:$0xff] (!%p229_p3), %vm359_vm3, %v1349_v8  ;;  %363 = vst.msk [vmem:[#allocation3 + $0x18] sm:$0xff] (!%p229_p3), %vm359_vm3, %v1349_v8  ;;  %s1356_s13 = smov (!%p229_p3), 16   ;;  %s1357_s14 = smov (!%p229_p3), 24   ;;  %vm994_vm6 = vcmask (!%p229_p3), 126016   ;;  %vm1014_vm7 = vcmask (!%p229_p3), 191616  }
   0xb   : > { %364 = vst.msk [vmem:[#allocation4] sm:$0xff] (!%p229_p3), %vm359_vm3, %v1347_v0  ;;  %365 = vst.msk [vmem:[#allocation4 + $0x8] sm:$0xff] (!%p229_p3), %vm359_vm3, %v1347_v0  ;;  %v396_v15 = vsub.s32 (!%p229_p3), 0, %v384_v12  ;;  %vm391_vm4 = vcmp.le.s32.totalorder (!%p229_p3), %v388_v13, %v384_v12  ;;  %vm1034_vm8 = vcmask (!%p229_p3), 257216  }
   0xc   : > { %366 = vst.msk [vmem:[#allocation4 + $0x10] sm:$0xff] (!%p229_p3), %vm359_vm3, %v1347_v0  ;;  %367 = vst.msk [vmem:[#allocation4 + $0x18] sm:$0xff] (!%p229_p3), %vm359_vm3, %v1347_v0  ;;  %v392_v18 = vsel (!%p229_p3), %vm391_vm4, 0.0, %v1350_v17 }
   0xe   : > { %s1601_s15 = smov (!%p278_p4, %s1337_s15), 1 }
   0xf   : > { %s1418_s19 = sshll.u32 %s1601_s15, 2  ;;  %s304_s28 = scalar_lea.vmem %s1594_s3, %s1601_s15 }
  0x10   : > { %s1424_s22 = scalar_lea.vmem %s1591_s0, %s1418_s19  ;;  %s1430_s25 = scalar_lea.vmem %s1592_s1, %s1418_s19  ;;  %v380_v10 = vld [vmem:[%s304_s28] sm:$0x1]  ;;  %v1472_v42 = vld [vmem:[#allocation3] sm:$0xff] }
  0x11   : > { %v317_v1 = vld [vmem:[%s1424_s22] sm:$0xf]  ;;  %v381_v11 = vsub.f32 1.0, %v380_v10  ;;  %s1486_s8 = scalar_lea.vmem %s1593_s2, %s1418_s19  ;;  %s1572_s11 = scalar_lea.vmem %s1595_s4, %s1418_s19 }
  0x12   : > { %v400_v2 = vld [vmem:[%s1430_s25] sm:$0xf]  ;;  %v318_v3 = vunpack.c.l.bf16 %v317_v1 }
  0x13   : > { %v408_v4 = vsel %vm368_vm0, %v400_v2, 0  ;;  %v382_v14 = vmul.f32 -1e+09, %v381_v11  ;;  %v323_v27 = vld [vmem:[%s1424_s22] sm:$0xf] }
  0x14   : > { %1209 = vmatpush3.bf16.xpose.msra.mxu0 %v408_v4  ;;  %v319_v5 = vmul.f32 0.35355338, %v318_v3  ;;  %v324_v28 = vunpack.c.l.bf16 %v323_v27  ;;  %v335_v29 = vld [vmem:[%s1424_s22] sm:$0xf] }
  0x15   : > { %1226 = vmatprep.subr.bf16.mxu0 %v1347_v0  ;;  %v397_v16 = vrot.slane %v382_v14, %v396_v15  ;;  %v336_v31 = vunpack.c.l.bf16 %v335_v29  ;;  %v1293_v33 = vld [vmem:[%s1430_s25] ss:$0 sps:$4 sm:$0xff]  }
  0x16   : > { %v320_v6 = vpack.c.bf16 %v319_v5, %v319_v5  ;;  %v325_v30 = vmul.f32 0.35355338, %v324_v28  ;;  %v347_v35 = vld [vmem:[%s1424_s22] sm:$0xf] }
  0x17   : > { %v1456_v19 = vadd.f32 %v397_v16, %v392_v18  ;;  %v337_v34 = vmul.f32 0.35355338, %v336_v31  ;;  %v348_v37 = vunpack.c.l.bf16 %v347_v35  ;;  %v1294_v38 = vld [vmem:[%s1430_s25] ss:$0 sps:$4 sm:$0xff]  }
  0x18   : > { %322 = vst.msk [vmem:[#allocation2] sm:$0xf] %vm321_vm2, %v320_v6  ;;  %v1186_v32 = vpack.c.bf16 %v325_v30, %v325_v30  ;;  %v1295_v41 = vld [vmem:[%s1430_s25] ss:$0 sps:$4 sm:$0xff]  }
  0x19   : > { %v1187_v36 = vpack.c.bf16 %v337_v34, %v337_v34  ;;  %v349_v39 = vmul.f32 0.35355338, %v348_v37  ;;  %v401_v47 = vld [vmem:[%s1486_s8] sm:$0xf] }
  0x1a   : > { %330 = vrot.lane.b32.xlu1 %v1186_v32, %s1352_s29  ;;  %v487_v48 = vsel %vm485_vm5, %v401_v47, 0  ;;  %v1522_v29 = vld [vmem:[#allocation3 + $0x10] sm:$0xff]  ;;  %v874_v32 = vld [vmem:[#allocation3 + $0x18] sm:$0xff] }
  0x1b   : > { %v1188_v40 = vpack.c.bf16 %v349_v39, %v349_v39  ;;  %1215 = vmatpush3.bf16.msra.mxu1 %v487_v48  ;;  %v1297_v37 = vld [vmem:[%s1486_s8] ss:$0 sps:$4 sm:$0xff]  }
  0x1c   : > { %1220 = vmatprep.subr.bf16.mxu1 %v1347_v0 }
  0x1e   : > { %539 = vrot.lane.b32.xlu1 %v1293_v33, %s1352_s29 }
  0x1f   : > { %v402_v7 = vld [vmem:[#allocation2] sm:$0xf] }
  0x20   : > { %1211 = vmatmul.mubr.msk.bf16.vlgmr.msra.gmra.mrb[0].mxu0 %vm368_vm0, %v402_v7 }
  0x21   : > { %1228 = vmatprep.mubr.msk.bf16.mxu0 %vm1348_vm1, %v1347_v0 }
  0x22   : > { %342 = vrot.lane.b32.xlu1 %v1187_v36, %s1353_s30  ;;  %v1296_v36 = vld [vmem:[%s1486_s8] ss:$0 sps:$4 sm:$0xff]  }
  0x26   : > { %682 = vrot.lane.b32.xlu1 %v1294_v38, %s1353_s30  ;;  %v1298_v38 = vld [vmem:[%s1486_s8] ss:$0 sps:$4 sm:$0xff]  }
  0x2a   : > { %354 = vrot.lane.b32.xlu1 %v1188_v40, %s1354_s5 }
  0x2e   : > { %825 = vrot.lane.b32.xlu1 %v1295_v41, %s1354_s5 }
  0x8c   : > { %v331_v46 = vpop.permute.xlu1 %330 }
  0x8d   : > { %334 = vst.msk [vmem:[#allocation2 + $0x4] sm:$0xf] %vm321_vm2, %v331_v46 }
  0x90   : > { %v540_v49 = vpop.permute.xlu1 %539 }
  0x91   : > { %v545_v57 = vsel %vm368_vm0, %v540_v49, 0 }
  0x94   : > { %v343_v50 = vpop.permute.xlu1 %342  ;;  %v535_v60 = vld [vmem:[#allocation2 + $0x4] sm:$0xf] }
  0x95   : > { %346 = vst.msk [vmem:[#allocation2 + $0x8] sm:$0xf] %vm321_vm2, %v343_v50 }
  0x98   : > { %v683_v51 = vpop.permute.xlu1 %682 }
  0x99   : > { %v688_v59 = vsel %vm368_vm0, %v683_v51, 0 }
  0x9c   : > { %v355_v52 = vpop.permute.xlu1 %354  ;;  %v678_v63 = vld [vmem:[#allocation2 + $0x8] sm:$0xf] }
  0x9d   : > { %358 = vst.msk [vmem:[#allocation2 + $0xc] sm:$0xf] %vm321_vm2, %v355_v52 }
  0xa0   : > { %v826_v61 = vpop.permute.xlu1 %825 }
  0xa1   : > { %v831_v62 = vsel %vm368_vm0, %v826_v61, 0 }
  0xa4   : > { %v821_v1 = vld [vmem:[#allocation2 + $0xc] sm:$0xf] }
  0xf3   : > { %v444_v20 = vpop.f32.mrb[0].mxu0 }
  0xf4   : > { %v445_v21 = vadd.f32 %v444_v20, %v1456_v19  ;;  %v1212_v22 = vpop.f32.mrb[1].mxu0 }
  0xf5   : > { %v447_v23 = vpop.f32.mrb[2].mxu0 }
  0xf6   : > { %v1213_v24 = vpop.f32.mrb[3].mxu0  ;;  %v451_v25 = vsel %vm368_vm0, %v445_v21, -inf }
  0xf7   : > { %452 = vmax.xlane.f32.xlu0 %v451_v25  ;;  %v588_v25 = vld [vmem:[#allocation3 + $0x8] sm:$0xff] }
 0x184   : > { %v453_v43 = vpop.xlane.xlu0 %452 }
 0x185   : > { %v1475_v44 = vmax.f32 %v1472_v42, %v453_v43 }
 0x187   : > { %v455_v45 = vsub.f32 %v1472_v42, %v1475_v44  ;;  %531 = vst.msk [vmem:[#allocation3] sm:$0xff] %vm359_vm3, %v1475_v44  ;;  %460 = vperm.xlu0 %1291, %v1475_v44  }
 0x206   : > { %v461_v53 = vpop.permute.xlu0 %460 }
 0x207   : > { %v463_v54 = vsub.f32 %v445_v21, %v461_v53 }
 0x209   : > { %v464_v55 = vmul.f32 1.442695, %v463_v54 }
 0x20b   : > { %1299 = vpow2.f32 %v464_v55 }
 0x215   : > { %v1494_v56 = vpop.eup %1299 }
 0x216   : > { %v481_v58 = vpack.c.bf16 %v1494_v56, %v1494_v56  ;;  %v468_v39 = vsel %vm368_vm0, %v1494_v56, 0.0 }
 0x218   : > { %1217 = vmatmul.mubr.msk.bf16.vlgmr.msra.gmra.mrb[0].mxu1 %vm368_vm0, %v481_v58 }
 0x219   : > { %1221 = vmatpush3.bf16.xpose.msra.mxu1 %v545_v57  ;;  %1222 = vmatprep.mubr.msk.bf16.mxu1 %vm1348_vm1, %v1347_v0 }
 0x21a   : > { %1232 = vmatprep.subr.bf16.mxu1 %v1347_v0 }
 0x220   : > { %1223 = vmatmul.mubr.msk.bf16.vlgmr.msra.gmra.mrb[4].mxu1 %vm368_vm0, %v535_v60 }
 0x221   : > { %1233 = vmatpush3.bf16.xpose.msra.mxu1 %v688_v59  ;;  %1234 = vmatprep.mubr.msk.bf16.mxu1 %vm1348_vm1, %v1347_v0 }
 0x222   : > { %1244 = vmatprep.subr.bf16.mxu1 %v1347_v0 }
 0x228   : > { %1235 = vmatmul.mubr.msk.bf16.vlgmr.msra.gmra.mrb[8].mxu1 %vm368_vm0, %v678_v63 }
 0x229   : > { %1245 = vmatpush3.bf16.xpose.msra.mxu1 %v831_v62  ;;  %1246 = vmatprep.mubr.msk.bf16.mxu1 %vm1348_vm1, %v1347_v0 }
 0x230   : > { %1247 = vmatmul.mubr.msk.bf16.vlgmr.msra.gmra.mrb[12].mxu1 %vm368_vm0, %v821_v1 }
 0x2eb   : > { %v1513_v2 = vpop.f32.mrb[0].mxu1 }
 0x2ec   : > { %v1218_v3 = vpop.f32.mrb[1].mxu1 }
 0x2ed   : > { %v526_v4 = vpop.f32.mrb[2].mxu1 }
 0x2ee   : > { %v1219_v5 = vpop.f32.mrb[3].mxu1 }
 0x2f3   : > { %v581_v6 = vpop.f32.mrb[4].mxu1 }
 0x2f4   : > { %v582_v7 = vadd.f32 %v581_v6, %v1456_v19  ;;  %v1224_v8 = vpop.f32.mrb[5].mxu1 }
 0x2f5   : > { %v584_v9 = vpop.f32.mrb[6].mxu1 }
 0x2f6   : > { %v1225_v10 = vpop.f32.mrb[7].mxu1  ;;  %v589_v11 = vsel %vm368_vm0, %v582_v7, -inf }
 0x2f7   : > { %590 = vmax.xlane.f32.xlu1 %v589_v11 }
 0x2fb   : > { %v724_v12 = vpop.f32.mrb[8].mxu1 }
 0x2fc   : > { %v725_v13 = vadd.f32 %v724_v12, %v1456_v19  ;;  %v1236_v14 = vpop.f32.mrb[9].mxu1  ;;  %v466_v12 = vld [vmem:[#allocation4] sm:$0xff] }
 0x2fd   : > { %v727_v15 = vpop.f32.mrb[10].mxu1 }
 0x2fe   : > { %v1237_v16 = vpop.f32.mrb[11].mxu1  ;;  %v732_v17 = vsel %vm368_vm0, %v725_v13, -inf  ;;  %v605_v15 = vld [vmem:[#allocation4 + $0x8] sm:$0xff] }
 0x2ff   : > { %733 = vmax.xlane.f32.xlu0 %v732_v17 }
 0x303   : > { %v867_v18 = vpop.f32.mrb[12].mxu1 }
 0x304   : > { %v868_v20 = vadd.f32 %v867_v18, %v1456_v19  ;;  %v1248_v21 = vpop.f32.mrb[13].mxu1 }
 0x305   : > { %v870_v22 = vpop.f32.mrb[14].mxu1 }
 0x306   : > { %v1249_v23 = vpop.f32.mrb[15].mxu1  ;;  %v875_v24 = vsel %vm368_vm0, %v868_v20, -inf }
 0x307   : > { %876 = vmax.xlane.f32.xlu1 %v875_v24 }
 0x384   : > { %v591_v26 = vpop.xlane.xlu1 %590 }
 0x385   : > { %v592_v27 = vmax.f32 %v588_v25, %v591_v26 }
 0x387   : > { %v593_v28 = vsub.f32 %v588_v25, %v592_v27  ;;  %674 = vst.msk [vmem:[#allocation3 + $0x8] sm:$0xff] %vm359_vm3, %v592_v27  ;;  %598 = vperm.xlu1 %1292, %v592_v27   ;;  %v891_v25 = vld [vmem:[#allocation4 + $0x18] sm:$0xff] }
 0x389   : > { %v594_v61 = vmul.f32 1.442695, %v593_v28 }
 0x38c   : > { %v734_v30 = vpop.xlane.xlu0 %733 }
 0x38d   : > { %v1525_v19 = vmax.f32 %v1522_v29, %v734_v30 }
 0x38f   : > { %v736_v31 = vsub.f32 %v1522_v29, %v1525_v19  ;;  %817 = vst.msk [vmem:[#allocation3 + $0x10] sm:$0xff] %vm359_vm3, %v1525_v19  ;;  %741 = vperm.xlu0 %1291, %v1525_v19   ;;  %v474_v19 = vld [vmem:[#allocation5] sm:$0xff] }
 0x391   : > { %v737_v9 = vmul.f32 1.442695, %v736_v31 }
 0x394   : > { %v877_v33 = vpop.xlane.xlu1 %876 }
 0x395   : > { %v878_v34 = vmax.f32 %v874_v32, %v877_v33 }
 0x397   : > { %v879_v35 = vsub.f32 %v874_v32, %v878_v34  ;;  %960 = vst.msk [vmem:[#allocation3 + $0x18] sm:$0xff] %vm359_vm3, %v878_v34  ;;  %884 = vperm.xlu1 %1292, %v878_v34  }
 0x399   : > { %v880_v1 = vmul.f32 1.442695, %v879_v35 }
 0x39b   : > { %624 = vrot.lane.b32.xlu1 %v1296_v36, %s1352_s29 }
 0x39f   : > { %767 = vrot.lane.b32.xlu1 %v1297_v37, %s1353_s30 }
 0x3a3   : > { %910 = vrot.lane.b32.xlu1 %v1298_v38, %s1354_s5 }
 0x3c7   : > { %469 = vadd.xlane.f32.xlu1 %v468_v39 }
 0x406   : > { %v599_v40 = vpop.permute.xlu1 %598 }
 0x407   : > { %v601_v41 = vsub.f32 %v582_v7, %v599_v40  ;;  %v456_v7 = vmul.f32 1.442695, %v455_v45 }
 0x409   : > { %v602_v43 = vmul.f32 1.442695, %v601_v41 }
 0x40b   : > { %1301 = vpow2.f32 %v602_v43 }
 0x40e   : > { %v742_v46 = vpop.permute.xlu0 %741 }
 0x40f   : > { %v744_v47 = vsub.f32 %v725_v13, %v742_v46 }
 0x411   : > { %v745_v48 = vmul.f32 1.442695, %v744_v47 }
 0x413   : > { %1303 = vpow2.f32 %v745_v48 }
 0x415   : > { %v1302_v49 = vpop.eup %1301 }
 0x416   : > { %v885_v50 = vpop.permute.xlu1 %884  ;;  %v607_v51 = vsel %vm368_vm0, %v1302_v49, 0.0  ;;  %v620_v57 = vpack.c.bf16 %v1302_v49, %v1302_v49 }
 0x417   : > { %v887_v52 = vsub.f32 %v868_v20, %v885_v50  ;;  %608 = vadd.xlane.f32.xlu0 %v607_v51  ;;  %v748_v20 = vld [vmem:[#allocation4 + $0x10] sm:$0xff] }
 0x419   : > { %v888_v53 = vmul.f32 1.442695, %v887_v52  ;;  %v756_v52 = vld [vmem:[#allocation5 + $0x10] sm:$0xff] }
 0x41a   : > { %v625_v54 = vpop.permute.xlu1 %624 }
 0x41b   : > { %1305 = vpow2.f32 %v888_v53  ;;  %v630_v55 = vsel %vm485_vm5, %v625_v54, 0 }
 0x41c   : > { %1227 = vmatpush3.bf16.msra.mxu0 %v630_v55  ;;  %1307 = vpow2.f32 %v594_v61 }
 0x41d   : > { %v1304_v56 = vpop.eup %1303  ;;  %1238 = vmatprep.subr.bf16.mxu0 %v1347_v0  ;;  %1309 = vpow2.f32 %v880_v1 }
 0x41e   : > { %v750_v58 = vsel %vm368_vm0, %v1304_v56, 0.0  ;;  %v768_v59 = vpop.permute.xlu1 %767  ;;  %v763_v3 = vpack.c.bf16 %v1304_v56, %v1304_v56  ;;  %1311 = vpow2.f32 %v456_v7 }
 0x41f   : > { %1229 = vmatmul.mubr.msk.bf16.vlgmr.msra.gmra.mrb[4].mxu0 %vm368_vm0, %v620_v57  ;;  %751 = vadd.xlane.f32.xlu1 %v750_v58  ;;  %v773_v60 = vsel %vm485_vm5, %v768_v59, 0  ;;  %1313 = vpow2.f32 %v737_v9 }
 0x420   : > { %1239 = vmatpush3.bf16.msra.mxu0 %v773_v60  ;;  %1240 = vmatprep.mubr.msk.bf16.mxu0 %vm1348_vm1, %v1347_v0  ;;  %v899_v60 = vld [vmem:[#allocation5 + $0x18] sm:$0xff] }
 0x421   : > { %1250 = vmatprep.subr.bf16.mxu0 %v1347_v0 }
 0x422   : > { %v911_v62 = vpop.permute.xlu1 %910 }
 0x423   : > { %v916_v4 = vsel %vm485_vm5, %v911_v62, 0 }
 0x425   : > { %v1306_v63 = vpop.eup %1305 }
 0x426   : > { %v893_v5 = vsel %vm368_vm0, %v1306_v63, 0.0  ;;  %v906_v6 = vpack.c.bf16 %v1306_v63, %v1306_v63  ;;  %v1308_v8 = vpop.eup %1307 }
 0x427   : > { %894 = vadd.xlane.f32.xlu0 %v893_v5  ;;  %1241 = vmatmul.mubr.msk.bf16.vlgmr.msra.gmra.mrb[8].mxu0 %vm368_vm0, %v763_v3  ;;  %v1310_v10 = vpop.eup %1309  ;;  %v606_v16 = vmul.f32 %v1308_v8, %v605_v15 }
 0x428   : > { %1251 = vmatpush3.bf16.msra.mxu0 %v916_v4  ;;  %1252 = vmatprep.mubr.msk.bf16.mxu0 %vm1348_vm1, %v1347_v0  ;;  %v1312_v11 = vpop.eup %1311  ;;  %v892_v26 = vmul.f32 %v1310_v10, %v891_v25 }
 0x429   : > { %v1314_v0 = vpop.eup %1313  ;;  %v467_v13 = vmul.f32 %v1312_v11, %v466_v12 }
 0x42a   : > { %v749_v21 = vmul.f32 %v1314_v0, %v748_v20 }
 0x42f   : > { %1253 = vmatmul.mubr.msk.bf16.vlgmr.msra.gmra.mrb[12].mxu0 %vm368_vm0, %v906_v6 }
 0x430   : > { %616 = vperm.xlu1 %1292, %v1308_v8  }
 0x434   : > { %902 = vperm.xlu1 %1292, %v1310_v10  }
 0x43d   : > { %477 = vperm.xlu0 %1291, %v1312_v11  }
 0x441   : > { %759 = vperm.xlu0 %1291, %v1314_v0  }
 0x454   : > { %v470_v42 = vpop.xlane.xlu1 %469 }
 0x455   : > { %v471_v44 = vadd.f32 %v470_v42, %v467_v13 }
 0x457   : > { %473 = vst.msk [vmem:[#allocation4] sm:$0xff] %vm359_vm3, %v471_v44 }
 0x45e   : > { %v965_v45 = vld [vmem:[#allocation4] sm:$0xff] }
 0x45f   : > { %1315 = vrcp.f32 %v965_v45 }
 0x469   : > { %v1316_v14 = vpop.eup %1315 }
 0x46a   : > { %969 = vperm.xlu1 %1292, %v1316_v14  }
 0x4a4   : > { %v609_v17 = vpop.xlane.xlu0 %608 }
 0x4a5   : > { %v610_v18 = vadd.f32 %v609_v17, %v606_v16 }
 0x4a7   : > { %611 = vst.msk [vmem:[#allocation4 + $0x8] sm:$0xff] %vm359_vm3, %v610_v18 }
 0x4ac   : > { %v752_v22 = vpop.xlane.xlu1 %751 }
 0x4ad   : > { %v753_v23 = vadd.f32 %v752_v22, %v749_v21 }
 0x4ae   : > { %v979_v24 = vld [vmem:[#allocation4 + $0x8] sm:$0xff] }
 0x4af   : > { %754 = vst.msk [vmem:[#allocation4 + $0x10] sm:$0xff] %vm359_vm3, %v753_v23  ;;  %1317 = vrcp.f32 %v979_v24 }
 0x4b0   : > { %v617_v37 = vpop.permute.xlu1 %616 }
 0x4b4   : > { %v895_v27 = vpop.xlane.xlu0 %894  ;;  %v903_v38 = vpop.permute.xlu1 %902 }
 0x4b5   : > { %v896_v28 = vadd.f32 %v895_v27, %v892_v26  ;;  %v905_v61 = vmul.f32 %v903_v38, %v899_v60 }
 0x4b6   : > { %v999_v29 = vld [vmem:[#allocation4 + $0x10] sm:$0xff] }
 0x4b7   : > { %897 = vst.msk [vmem:[#allocation4 + $0x18] sm:$0xff] %vm359_vm3, %v896_v28  ;;  %1319 = vrcp.f32 %v999_v29 }
 0x4b9   : > { %v1318_v30 = vpop.eup %1317 }
 0x4ba   : > { %983 = vperm.xlu0 %1291, %v1318_v30  }
 0x4bc   : > { %v478_v31 = vpop.permute.xlu0 %477 }
 0x4bd   : > { %v480_v32 = vmul.f32 %v478_v31, %v474_v19 }
 0x4be   : > { %v1019_v33 = vld [vmem:[#allocation4 + $0x18] sm:$0xff] }
 0x4bf   : > { %v529_v34 = vadd.f32 %v1513_v2, %v480_v32  ;;  %1321 = vrcp.f32 %v1019_v33  ;;  %v613_v2 = vld [vmem:[#allocation5 + $0x8] sm:$0xff] }
 0x4c0   : > { %v619_v46 = vmul.f32 %v617_v37, %v613_v2  ;;  %v760_v53 = vpop.permute.xlu0 %759 }
 0x4c1   : > { %v1320_v35 = vpop.eup %1319  ;;  %530 = vst.msk [vmem:[#allocation5] sm:$0xff] %vm368_vm0, %v529_v34  ;;  %v762_v54 = vmul.f32 %v760_v53, %v756_v52 }
 0x4c2   : > { %1003 = vperm.xlu0 %1291, %v1320_v35  }
 0x4c8   : > { %v964_v39 = vld [vmem:[#allocation5] sm:$0xff] }
 0x4c9   : > { %v1322_v36 = vpop.eup %1321 }
 0x4ca   : > { %1023 = vperm.xlu0 %1291, %v1322_v36  }
 0x4e9   : > { %v970_v40 = vpop.permute.xlu1 %969 }
 0x4ea   : > { %v972_v41 = vmul.f32 %v970_v40, %v964_v39 }
 0x4ec   : > { %v973_v43 = vpack.c.bf16 %v972_v41, %v972_v41 }
 0x4ee   : > { %975 = vst.msk [vmem:[%s1572_s11] sm:$0xf] %vm321_vm2, %v973_v43 }
 0x4f2   : > { %v666_v47 = vpop.f32.mrb[4].mxu0 }
 0x4f3   : > { %v672_v48 = vadd.f32 %v666_v47, %v619_v46  ;;  %v1230_v49 = vpop.f32.mrb[5].mxu0 }
 0x4f4   : > { %v669_v50 = vpop.f32.mrb[6].mxu0 }
 0x4f5   : > { %673 = vst.msk [vmem:[#allocation5 + $0x8] sm:$0xff] %vm368_vm0, %v672_v48  ;;  %v1231_v51 = vpop.f32.mrb[7].mxu0 }
 0x4fa   : > { %v809_v55 = vpop.f32.mrb[8].mxu0 }
 0x4fb   : > { %v815_v56 = vadd.f32 %v809_v55, %v762_v54  ;;  %v1242_v57 = vpop.f32.mrb[9].mxu0 }
 0x4fc   : > { %v812_v58 = vpop.f32.mrb[10].mxu0  ;;  %v977_v6 = vld [vmem:[#allocation5 + $0x8] sm:$0xff] }
 0x4fd   : > { %816 = vst.msk [vmem:[#allocation5 + $0x10] sm:$0xff] %vm368_vm0, %v815_v56  ;;  %v1243_v59 = vpop.f32.mrb[11].mxu0 }
 0x502   : > { %v952_v62 = vpop.f32.mrb[12].mxu0 }
 0x503   : > { %v958_v63 = vadd.f32 %v952_v62, %v905_v61  ;;  %v1254_v1 = vpop.f32.mrb[13].mxu0 }
 0x504   : > { %v955_v3 = vpop.f32.mrb[14].mxu0  ;;  %v997_v10 = vld [vmem:[#allocation5 + $0x10] sm:$0xff] }
 0x505   : > { %959 = vst.msk [vmem:[#allocation5 + $0x18] sm:$0xff] %vm368_vm0, %v958_v63  ;;  %v1255_v4 = vpop.f32.mrb[15].mxu0 }
 0x50c   : > { %v1017_v13 = vld [vmem:[#allocation5 + $0x18] sm:$0xff] }
 0x539   : > { %v984_v5 = vpop.permute.xlu0 %983 }
 0x53a   : > { %v986_v7 = vmul.f32 %v984_v5, %v977_v6 }
 0x53c   : > { %v1189_v8 = vpack.c.bf16 %v986_v7, %v986_v7 }
 0x53e   : > { %991 = vrot.lane.b32.xlu1 %v1189_v8, %s1355_s12 }
 0x541   : > { %v1004_v9 = vpop.permute.xlu0 %1003 }
 0x542   : > { %v1006_v11 = vmul.f32 %v1004_v9, %v997_v10 }
 0x544   : > { %v1190_v0 = vpack.c.bf16 %v1006_v11, %v1006_v11 }
 0x546   : > { %1011 = vrot.lane.b32.xlu1 %v1190_v0, %s1356_s13 }
 0x549   : > { %v1024_v12 = vpop.permute.xlu0 %1023 }
 0x54a   : > { %v1026_v42 = vmul.f32 %v1024_v12, %v1017_v13 }
 0x54c   : > { %v1191_v44 = vpack.c.bf16 %v1026_v42, %v1026_v42 }
 0x54e   : > { %1031 = vrot.lane.b32.xlu1 %v1191_v44, %s1357_s14 }
 0x5b0   : > { %v992_v45 = vpop.permute.xlu1 %991 }
 0x5b1   : > { %995 = vst.msk [vmem:[%s1572_s11] sm:$0xf] %vm994_vm6, %v992_v45 }
 0x5b8   : > { %v1012_v14 = vpop.permute.xlu1 %1011 }
 0x5b9   : > { %1015 = vst.msk [vmem:[%s1572_s11] sm:$0xf] %vm1014_vm7, %v1012_v14 }
 0x5c0   : > { %v1032_v15 = vpop.permute.xlu1 %1031 }
 0x5c1   : > { %1035 = vst.msk [vmem:[%s1572_s11] sm:$0xf] %vm1034_vm8, %v1032_v15 }
 0x5c2 PF: > { %s14_s17 = sadd.s32 1, %s1345_s17   ;;  %s1596_s15 = smov %s1341_s16 }
 0x5c3   : > { %p11_p5 = scmp.ge.s32.totalorder %s14_s17, 4   ;;  %s1597_s16 = smov %s1599_s18 }
 0x5c5   :  { %13 = sbr.rel (!%p11_p5) target bundleno = 2 (0x2), region = 108 }

// kernel: transformer_lm_head_forward.44
= control target key start
LH: loop header
LB: loop body
LE: loop exit
PB: predicated region body
PF: predicated region fallthrough
CT: control target
= control target key end

     0   :  { %vm19_vm0 = vcmask 523264   ;;  %v151_v0 = vmov 0.0   ;;  %vm152_vm1 = vmmov 0   ;;  %vm47_vm2 = vcmask 261120   ;;  %s195_s1 = inlined_call_operand.vmem [shape: bf16[32,64], index: 1, kind: input, shape index: {}]   ;;  %s196_s0 = inlined_call_operand.vmem [shape: bf16[16,32], index: 0, kind: input, shape index: {}]   ;;  %s197_s2 = inlined_call_operand.vmem [shape: f32[1,64], index: 2, kind: input, shape index: {}]   ;;  %s198_s3 = inlined_call_operand.vmem [shape: bf16[16,64], index: 3, kind: output, shape index: {}]  }
   0x1   :  { %138 = vmatprep.subr.bf16.mxu0 %v151_v0  ;;  %v148_v1 = vld [vmem:[%s195_s1] sm:$0xff]   ;;  %142 = vmatprep.mubr.msk.bf16.mxu0 %vm152_vm1, %v151_v0  ;;  %20 = vst.msk [vmem:[#allocation2] sm:$0xff] %vm19_vm0, %v151_v0  ;;  %21 = vst.msk [vmem:[#allocation2 + $0x8] sm:$0xff] %vm19_vm0, %v151_v0  ;;  %v149_v2 = vld [vmem:[%s195_s1 + $0x8] sm:$0xff]   ;;  %vm119_vm3 = vcmask 519168  }
   0x2   :  { %139 = vmatpush3.bf16.msra.mxu0 %v148_v1  ;;  %v150_v3 = vld [vmem:[%s196_s0] sm:$0xff]  }
   0x3   :  { %140 = vmatprep.subr.bf16.mxu0 %v151_v0  ;;  %v130_v12 = vld [vmem:[%s197_s2] ss:$0 sm:$0xff] }
   0x6   :  { %141 = vmatpush3.bf16.msra.mxu0 %v149_v2 }
   0x8   :  { %v22_v4 = vld [vmem:[#allocation2] sm:$0xff]  ;;  %v23_v6 = vld [vmem:[#allocation2 + $0x8] sm:$0xff] }
   0x9   :  { %143 = vmatmul.mubr.msk.bf16.vlgmr.msra.gmra.mrb[0].mxu0 %vm47_vm2, %v150_v3 }
  0xdc   :  { %v85_v5 = vpop.f32.mrb[0].mxu0 }
  0xdd   :  { %v92_v7 = vadd.f32 %v85_v5, %v22_v4  ;;  %v144_v8 = vpop.f32.mrb[1].mxu0 }
  0xde   :  { %v88_v9 = vpop.f32.mrb[2].mxu0 }
  0xdf   :  { %95 = vst.msk [vmem:[#allocation2] sm:$0xff] %vm19_vm0, %v92_v7  ;;  %v93_v10 = vadd.f32 %v88_v9, %v23_v6  ;;  %v145_v11 = vpop.f32.mrb[3].mxu0 }
  0xe1   :  { %96 = vst.msk [vmem:[#allocation2 + $0x8] sm:$0xff] %vm19_vm0, %v93_v10 }
  0xe6   :  { %v100_v13 = vld [vmem:[#allocation2] sm:$0xff] }
  0xe7   :  { %v109_v14 = vadd.f32 %v130_v12, %v100_v13 }
  0xe8   :  { %v101_v15 = vld [vmem:[#allocation2 + $0x8] sm:$0xff] }
  0xe9   :  { %v133_v16 = vpack.c.bf16 %v109_v14, %v109_v14  ;;  %v110_v17 = vadd.f32 %v130_v12, %v101_v15 }
  0xeb   :  { %120 = vst.msk [vmem:[%s198_s3] sm:$0xf] %vm119_vm3, %v133_v16  ;;  %v134_v18 = vpack.c.bf16 %v110_v17, %v110_v17 }
  0xed   :  { %121 = vst.msk [vmem:[%s198_s3 + $0x4] sm:$0xf] %vm119_vm3, %v134_v18 }

// kernel: transformer_lm_head_forward.33
= control target key start
LH: loop header
LB: loop body
LE: loop exit
PB: predicated region body
PF: predicated region fallthrough
CT: control target
= control target key end

     0   :  { %vm19_vm0 = vcmask 523264   ;;  %v173_v0 = vmov 0.0   ;;  %vm174_vm1 = vmmov 0   ;;  %vm47_vm2 = vcmask 261120   ;;  %s217_s1 = inlined_call_operand.vmem [shape: bf16[32,64], index: 1, kind: input, shape index: {}]   ;;  %s218_s0 = inlined_call_operand.vmem [shape: bf16[16,32], index: 0, kind: input, shape index: {}]   ;;  %s219_s2 = inlined_call_operand.vmem [shape: f32[1,64], index: 2, kind: input, shape index: {}]   ;;  %s220_s3 = inlined_call_operand.vmem [shape: bf16[16,64], index: 3, kind: output, shape index: {}]  }
   0x1   :  { %156 = vmatprep.subr.bf16.mxu0 %v173_v0  ;;  %v166_v1 = vld [vmem:[%s217_s1] sm:$0xff]   ;;  %160 = vmatprep.mubr.msk.bf16.mxu0 %vm174_vm1, %v173_v0  ;;  %20 = vst.msk [vmem:[#allocation2] sm:$0xff] %vm19_vm0, %v173_v0  ;;  %21 = vst.msk [vmem:[#allocation2 + $0x8] sm:$0xff] %vm19_vm0, %v173_v0  ;;  %v167_v2 = vld [vmem:[%s217_s1 + $0x8] sm:$0xff]   ;;  %vm137_vm3 = vcmask 519168  }
   0x2   :  { %157 = vmatpush3.bf16.msra.mxu0 %v166_v1  ;;  %v168_v3 = vld [vmem:[%s218_s0] sm:$0xff]  }
   0x3   :  { %158 = vmatprep.subr.bf16.mxu0 %v173_v0  ;;  %v148_v12 = vld [vmem:[%s219_s2] ss:$0 sm:$0xff] }
   0x6   :  { %159 = vmatpush3.bf16.msra.mxu0 %v167_v2 }
   0x8   :  { %v22_v4 = vld [vmem:[#allocation2] sm:$0xff]  ;;  %v23_v6 = vld [vmem:[#allocation2 + $0x8] sm:$0xff] }
   0x9   :  { %161 = vmatmul.mubr.msk.bf16.vlgmr.msra.gmra.mrb[0].mxu0 %vm47_vm2, %v168_v3 }
  0xdc   :  { %v85_v5 = vpop.f32.mrb[0].mxu0 }
  0xdd   :  { %v92_v7 = vadd.f32 %v85_v5, %v22_v4  ;;  %v162_v8 = vpop.f32.mrb[1].mxu0 }
  0xde   :  { %v88_v9 = vpop.f32.mrb[2].mxu0 }
  0xdf   :  { %95 = vst.msk [vmem:[#allocation2] sm:$0xff] %vm19_vm0, %v92_v7  ;;  %v93_v10 = vadd.f32 %v88_v9, %v23_v6  ;;  %v163_v11 = vpop.f32.mrb[3].mxu0 }
  0xe1   :  { %96 = vst.msk [vmem:[#allocation2 + $0x8] sm:$0xff] %vm19_vm0, %v93_v10 }
  0xe6   :  { %v100_v13 = vld [vmem:[#allocation2] sm:$0xff] }
  0xe7   :  { %v109_v14 = vadd.f32 %v148_v12, %v100_v13 }
  0xe8   :  { %v101_v15 = vld [vmem:[#allocation2 + $0x8] sm:$0xff] }
  0xe9   :  { %v111_v16 = vmul.f32 %v109_v14, %v109_v14  ;;  %v110_v17 = vadd.f32 %v148_v12, %v101_v15 }
  0xeb   :  { %v113_v18 = vmul.f32 %v111_v16, %v109_v14  ;;  %v112_v19 = vmul.f32 %v110_v17, %v110_v17 }
  0xed   :  { %v115_v20 = vmul.f32 0.044715, %v113_v18  ;;  %v114_v21 = vmul.f32 %v112_v19, %v110_v17 }
  0xef   :  { %v117_v22 = vadd.f32 %v115_v20, %v109_v14  ;;  %v116_v23 = vmul.f32 0.044715, %v114_v21 }
  0xf1   :  { %v119_v24 = vmul.f32 0.7978846, %v117_v22  ;;  %v118_v25 = vadd.f32 %v116_v23, %v110_v17 }
  0xf3   :  { %169 = vtanh.f32 %v119_v24  ;;  %v120_v26 = vmul.f32 0.7978846, %v118_v25 }
  0xf5   :  { %171 = vtanh.f32 %v120_v26 }
  0xfd   :  { %v170_v27 = vpop.eup %169 }
  0xfe   :  { %v123_v28 = vadd.f32 1.0, %v170_v27 }
  0xff   :  { %v172_v29 = vpop.eup %171 }
 0x100   :  { %v125_v30 = vmul.f32 0.5, %v123_v28  ;;  %v124_v31 = vadd.f32 1.0, %v172_v29 }
 0x102   :  { %v127_v32 = vmul.f32 %v125_v30, %v109_v14  ;;  %v126_v33 = vmul.f32 0.5, %v124_v31 }
 0x104   :  { %v151_v34 = vpack.c.bf16 %v127_v32, %v127_v32  ;;  %v128_v35 = vmul.f32 %v126_v33, %v110_v17 }
 0x106   :  { %138 = vst.msk [vmem:[%s220_s3] sm:$0xf] %vm137_vm3, %v151_v34  ;;  %v152_v36 = vpack.c.bf16 %v128_v35, %v128_v35 }
 0x108   :  { %139 = vst.msk [vmem:[%s220_s3 + $0x4] sm:$0xf] %vm137_vm3, %v152_v36 }

// kernel: transformer_lm_head_forward.34
= control target key start
LH: loop header
LB: loop body
LE: loop exit
PB: predicated region body
PF: predicated region fallthrough
CT: control target
= control target key end

     0   :  { %vm28_vm0 = vcmask 261120   ;;  %v247_v0 = vmov 0.0   ;;  %vm248_vm1 = vmmov 0   ;;  %vm72_vm2 = vcmask 523264   ;;  %s325_s1 = inlined_call_operand.vmem [shape: bf16[64,32], index: 1, kind: input, shape index: {}]   ;;  %s326_s0 = inlined_call_operand.vmem [shape: bf16[16,64], index: 0, kind: input, shape index: {}]   ;;  %s327_s3 = inlined_call_operand.vmem [shape: bf16[16,32], index: 3, kind: input, shape index: {}]   ;;  %s328_s2 = inlined_call_operand.vmem [shape: f32[1,32], index: 2, kind: input, shape index: {}]   ;;  %s329_s4 = inlined_call_operand.vmem [shape: f32[1,32], index: 4, kind: input, shape index: {}]   ;;  %s330_s5 = inlined_call_operand.vmem [shape: f32[1,32], index: 5, kind: input, shape index: {}]   ;;  %s331_s6 = inlined_call_operand.vmem [shape: bf16[16,32], index: 6, kind: output, shape index: {}]  }
   0x1   :  { %224 = vmatprep.subr.bf16.mxu0 %v247_v0  ;;  %v238_v1 = vld [vmem:[%s325_s1] sm:$0xff]   ;;  %232 = vmatprep.mubr.msk.bf16.mxu0 %vm248_vm1, %v247_v0  ;;  %29 = vst.msk [vmem:[#allocation2] sm:$0xff] %vm28_vm0, %v247_v0  ;;  %30 = vst.msk [vmem:[#allocation2 + $0x8] sm:$0xff] %vm28_vm0, %v247_v0  ;;  %v239_v2 = vld [vmem:[%s325_s1 + $0x8] sm:$0xff]   ;;  %vm195_vm3 = vcmask 257024  }
   0x2   :  { %225 = vmatpush3.bf16.msra.mxu0 %v238_v1  ;;  %v240_v3 = vld [vmem:[%s325_s1 + $0x10] sm:$0xff]   ;;  %v241_v4 = vld [vmem:[%s325_s1 + $0x18] sm:$0xff]   ;;  %v242_v5 = vld [vmem:[%s326_s0] sm:$0xff]  }
   0x3   :  { %226 = vmatprep.subr.bf16.mxu0 %v247_v0  ;;  %v216_v14 = vld [vmem:[%s327_s3] sm:$0xff]  }
   0x4   :  { %v208_v15 = vld [vmem:[%s328_s2] ss:$0 sm:$0xff]  ;;  %v217_v16 = vunpack.c.l.bf16 %v216_v14  ;;  %v218_v19 = vunpack.c.h.bf16 %v216_v14 }
   0x5   :  { %v209_v43 = vld [vmem:[%s329_s4] ss:$0 sm:$0xff] }
   0x6   :  { %227 = vmatpush3.bf16.msra.mxu0 %v239_v2  ;;  %v210_v45 = vld [vmem:[%s330_s5] ss:$0 sm:$0xff] }
   0x7   :  { %228 = vmatprep.subr.bf16.mxu0 %v247_v0 }
   0x8   :  { %v31_v6 = vld [vmem:[#allocation2] sm:$0xff]  ;;  %v32_v8 = vld [vmem:[#allocation2 + $0x8] sm:$0xff] }
   0xa   :  { %229 = vmatpush3.bf16.msra.mxu0 %v240_v3 }
   0xb   :  { %230 = vmatprep.subr.bf16.mxu0 %v247_v0 }
   0xe   :  { %231 = vmatpush3.bf16.msra.mxu0 %v241_v4 }
  0x11   :  { %233 = vmatmul.mubr.msk.bf16.vlgmr.msra.gmra.mrb[0].mxu0 %vm72_vm2, %v242_v5 }
  0xe4   :  { %v110_v7 = vpop.f32.mrb[0].mxu0 }
  0xe5   :  { %v117_v9 = vadd.f32 %v110_v7, %v31_v6  ;;  %v234_v10 = vpop.f32.mrb[1].mxu0 }
  0xe6   :  { %v113_v11 = vpop.f32.mrb[2].mxu0 }
  0xe7   :  { %120 = vst.msk [vmem:[#allocation2] sm:$0xff] %vm28_vm0, %v117_v9  ;;  %v118_v12 = vadd.f32 %v113_v11, %v32_v8  ;;  %v235_v13 = vpop.f32.mrb[3].mxu0 }
  0xe9   :  { %121 = vst.msk [vmem:[#allocation2 + $0x8] sm:$0xff] %vm28_vm0, %v118_v12 }
  0xee   :  { %v125_v17 = vld [vmem:[#allocation2] sm:$0xff] }
  0xef   :  { %v134_v18 = vadd.f32 %v208_v15, %v125_v17 }
  0xf0   :  { %v126_v20 = vld [vmem:[#allocation2 + $0x8] sm:$0xff] }
  0xf1   :  { %v140_v21 = vadd.f32 %v217_v16, %v134_v18  ;;  %v135_v22 = vadd.f32 %v208_v15, %v126_v20 }
  0xf3   :  { %v142_v23 = vsel %vm28_vm0, %v140_v21, 0.0  ;;  %v141_v24 = vadd.f32 %v218_v19, %v135_v22 }
  0xf4   :  { %143 = vadd.xlane.f32.xlu0 %v142_v23 }
  0xf5   :  { %v145_v25 = vsel %vm28_vm0, %v141_v24, 0.0 }
  0xf8   :  { %146 = vadd.xlane.f32.xlu0 %v145_v25 }
 0x181   :  { %v144_v26 = vpop.xlane.xlu0 %143 }
 0x182   :  { %v149_v27 = vmul.f32 0.03125, %v144_v26 }
 0x184   :  { %v151_v28 = vsub.f32 %v140_v21, %v149_v27 }
 0x185   :  { %v147_v29 = vpop.xlane.xlu0 %146 }
 0x186   :  { %v150_v30 = vmul.f32 0.03125, %v147_v29  ;;  %v153_v31 = vmul.f32 %v151_v28, %v151_v28 }
 0x188   :  { %v152_v32 = vsub.f32 %v141_v24, %v150_v30  ;;  %v155_v33 = vsel %vm28_vm0, %v153_v31, 0.0 }
 0x189   :  { %156 = vadd.xlane.f32.xlu1 %v155_v33 }
 0x18a   :  { %v154_v34 = vmul.f32 %v152_v32, %v152_v32 }
 0x18c   :  { %v158_v35 = vsel %vm28_vm0, %v154_v34, 0.0 }
 0x18d   :  { %159 = vadd.xlane.f32.xlu1 %v158_v35 }
 0x216   :  { %v157_v36 = vpop.xlane.xlu1 %156 }
 0x217   :  { %v161_v37 = vmul.f32 0.03125, %v157_v36 }
 0x219   :  { %v163_v38 = vadd.f32 1e-05, %v161_v37 }
 0x21a   :  { %v160_v39 = vpop.xlane.xlu1 %159 }
 0x21b   :  { %243 = vrsqrt.f32 %v163_v38  ;;  %v162_v40 = vmul.f32 0.03125, %v160_v39 }
 0x21d   :  { %v164_v41 = vadd.f32 1e-05, %v162_v40 }
 0x21f   :  { %245 = vrsqrt.f32 %v164_v41 }
 0x225   :  { %v244_v42 = vpop.eup %243 }
 0x226   :  { %v167_v44 = vmul.f32 %v244_v42, %v151_v28 }
 0x228   :  { %v176_v46 = vmul.f32 %v209_v43, %v167_v44 }
 0x229   :  { %v246_v47 = vpop.eup %245 }
 0x22a   :  { %v185_v48 = vadd.f32 %v210_v45, %v176_v46  ;;  %v168_v49 = vmul.f32 %v246_v47, %v152_v32 }
 0x22c   :  { %v213_v50 = vpack.c.bf16 %v185_v48, %v185_v48  ;;  %v177_v51 = vmul.f32 %v209_v43, %v168_v49 }
 0x22e   :  { %196 = vst.msk [vmem:[%s331_s6] sm:$0xf] %vm195_vm3, %v213_v50  ;;  %v186_v52 = vadd.f32 %v210_v45, %v177_v51 }
 0x230   :  { %v214_v53 = vpack.c.bf16 %v186_v52, %v186_v52 }
 0x232   :  { %197 = vst.msk [vmem:[%s331_s6 + $0x4] sm:$0xf] %vm195_vm3, %v214_v53 }

// kernel: transformer_lm_head_forward.31
= control target key start
LH: loop header
LB: loop body
LE: loop exit
PB: predicated region body
PF: predicated region fallthrough
CT: control target
= control target key end

     0   :  { %s1357_s15 = smov 0   ;;  %s1359_s16 = smov 0   ;;  %s1565_s0 = inlined_call_operand.vmem [shape: bf16[2,8,32], index: 0, kind: input, shape index: {}]   ;;  %s1566_s1 = inlined_call_operand.vmem [shape: bf16[2,8,32], index: 1, kind: input, shape index: {}]   ;;  %s1567_s2 = inlined_call_operand.vmem [shape: bf16[2,8,32], index: 2, kind: input, shape index: {}]   ;;  %s1568_s3 = inlined_call_operand.vmem [shape: f32[2,1,8], index: 3, kind: input, shape index: {}]   ;;  %s1569_s4 = inlined_call_operand.vmem [shape: bf16[2,8,32], index: 4, kind: output, shape index: {}]  }
   0x1   :  { %s1361_s17 = smov 0  }
   0x2 LB: > { %s33_s18 = sadd.s32 1, %s1316_s16  ;;  %p1135_p0 = scmp.ge.s32.totalorder %s1320_s17, 1  ;;  %s1320_s17 = sphi %s1361_s17, %s14_s17   ;;  %s1316_s16 = sphi %s1359_s16, %s1571_s16   ;;  %s1312_s15 = sphi %s1357_s15, %s1570_s15  }
   0x3   : > { %p35_p1 = scmp.ge.s32.totalorder %s33_s18, 2  ;;  %p228_p2 = scmp.lt.s32.totalorder %s1320_s17, 3 }
   0x5   : > { %s1573_s18 = smov (%p35_p1, %s33_s18), 0  ;;  %p229_p3 = pnand %p1135_p0, %p228_p2 }
   0x6   : > { %p278_p4 = scmp.lt.s32.totalorder (!%p229_p3), %s1312_s15, 1  ;;  %vm368_vm0 = vcmask (!%p229_p3), 64512   ;;  %v1322_v0 = vmov (!%p229_p3), 0.0   ;;  %vm1323_vm1 = vmmov (!%p229_p3), 0   ;;  %vm321_vm2 = vcmask (!%p229_p3), 60416   ;;  %s1326_s29 = smov (!%p229_p3), 120  }
   0x7   : > { %232 = sbr.rel (%p229_p3) target bundleno = 1474 (0x5c2), region = 36  ;;  %1184 = vmatprep.subr.bf16.mxu0 (!%p229_p3), %v1322_v0  ;;  %369 = vst.msk [vmem:[#allocation5] sm:$0xff] (!%p229_p3), %vm368_vm0, %v1322_v0  ;;  %370 = vst.msk [vmem:[#allocation5 + $0x8] sm:$0xff] (!%p229_p3), %vm368_vm0, %v1322_v0  ;;  %1186 = vmatprep.mubr.msk.bf16.mxu0 (!%p229_p3), %vm1323_vm1, %v1322_v0  ;;  %vm359_vm3 = vcmask (!%p229_p3), 7168   ;;  %v1324_v8 = vmov (!%p229_p3), -inf   ;;  %v380_v9 = vlaneseq (!%p229_p3)  ;;  %v1325_v22 = vmov (!%p229_p3), 0  }
   0x8   : > { %371 = vst.msk [vmem:[#allocation5 + $0x10] sm:$0xff] (!%p229_p3), %vm368_vm0, %v1322_v0  ;;  %372 = vst.msk [vmem:[#allocation5 + $0x18] sm:$0xff] (!%p229_p3), %vm368_vm0, %v1322_v0  ;;  %1190 = vmatprep.subr.bf16.mxu1 (!%p229_p3), %v1322_v0  ;;  %1192 = vmatprep.mubr.msk.bf16.mxu1 (!%p229_p3), %vm1323_vm1, %v1322_v0  ;;  %s1327_s30 = smov (!%p229_p3), 112   ;;  %s1328_s5 = smov (!%p229_p3), 104   ;;  %vm467_vm4 = vcmask (!%p229_p3), 1043456   ;;  %vm974_vm5 = vcmask (!%p229_p3), 126016  }
   0x9   : > { %360 = vst.msk [vmem:[#allocation3] sm:$0xff] (!%p229_p3), %vm359_vm3, %v1324_v8  ;;  %361 = vst.msk [vmem:[#allocation3 + $0x8] sm:$0xff] (!%p229_p3), %vm359_vm3, %v1324_v8  ;;  %v381_v12 = vshrl.u32 (!%p229_p3), %v380_v9, 7  ;;  %1266 = vset.pattern.permute.xlu0 (!%p229_p3), %v1325_v22  ;;  %1267 = vset.pattern.permute.xlu1 (!%p229_p3), %v1325_v22  ;;  %s1329_s12 = smov (!%p229_p3), 8   ;;  %s1330_s13 = smov (!%p229_p3), 16   ;;  %vm992_vm6 = vcmask (!%p229_p3), 191616  }
   0xa   : > { %362 = vst.msk [vmem:[#allocation3 + $0x10] sm:$0xff] (!%p229_p3), %vm359_vm3, %v1324_v8  ;;  %363 = vst.msk [vmem:[#allocation3 + $0x18] sm:$0xff] (!%p229_p3), %vm359_vm3, %v1324_v8  ;;  %s1331_s14 = smov (!%p229_p3), 24   ;;  %vm1010_vm7 = vcmask (!%p229_p3), 257216  }
   0xb   : > { %364 = vst.msk [vmem:[#allocation4] sm:$0xff] (!%p229_p3), %vm359_vm3, %v1322_v0  ;;  %365 = vst.msk [vmem:[#allocation4 + $0x8] sm:$0xff] (!%p229_p3), %vm359_vm3, %v1322_v0  ;;  %v382_v14 = vsub.s32 (!%p229_p3), 0, %v381_v12 }
   0xc   : > { %366 = vst.msk [vmem:[#allocation4 + $0x10] sm:$0xff] (!%p229_p3), %vm359_vm3, %v1322_v0  ;;  %367 = vst.msk [vmem:[#allocation4 + $0x18] sm:$0xff] (!%p229_p3), %vm359_vm3, %v1322_v0 }
   0xe   : > { %s1575_s15 = smov (!%p278_p4, %s1312_s15), 1 }
   0xf   : > { %s1392_s19 = sshll.u32 %s1575_s15, 2  ;;  %s304_s28 = scalar_lea.vmem %s1568_s3, %s1575_s15 }
  0x10   : > { %s1398_s22 = scalar_lea.vmem %s1565_s0, %s1392_s19  ;;  %s1404_s25 = scalar_lea.vmem %s1566_s1, %s1392_s19  ;;  %v373_v10 = vld [vmem:[%s304_s28] sm:$0x1]  ;;  %v1446_v38 = vld [vmem:[#allocation3] sm:$0xff] }
  0x11   : > { %v317_v1 = vld [vmem:[%s1398_s22] sm:$0xf]  ;;  %v374_v11 = vsub.f32 1.0, %v373_v10  ;;  %s1460_s8 = scalar_lea.vmem %s1567_s2, %s1392_s19  ;;  %s1546_s11 = scalar_lea.vmem %s1569_s4, %s1392_s19 }
  0x12   : > { %v376_v2 = vld [vmem:[%s1404_s25] sm:$0xf]  ;;  %v318_v3 = vunpack.c.l.bf16 %v317_v1 }
  0x13   : > { %v390_v4 = vsel %vm368_vm0, %v376_v2, 0  ;;  %v375_v13 = vmul.f32 -1e+09, %v374_v11  ;;  %v323_v23 = vld [vmem:[%s1398_s22] sm:$0xf] }
  0x14   : > { %1185 = vmatpush3.bf16.xpose.msra.mxu0 %v390_v4  ;;  %v319_v5 = vmul.f32 0.35355338, %v318_v3  ;;  %v324_v24 = vunpack.c.l.bf16 %v323_v23  ;;  %v335_v25 = vld [vmem:[%s1398_s22] sm:$0xf] }
  0x15   : > { %1202 = vmatprep.subr.bf16.mxu0 %v1322_v0  ;;  %v1430_v15 = vrot.slane %v375_v13, %v382_v14  ;;  %v336_v27 = vunpack.c.l.bf16 %v335_v25  ;;  %v1268_v29 = vld [vmem:[%s1404_s25] ss:$0 sps:$4 sm:$0xff]  }
  0x16   : > { %v320_v6 = vpack.c.bf16 %v319_v5, %v319_v5  ;;  %v325_v26 = vmul.f32 0.35355338, %v324_v24  ;;  %v347_v31 = vld [vmem:[%s1398_s22] sm:$0xf] }
  0x17   : > { %v337_v30 = vmul.f32 0.35355338, %v336_v27  ;;  %v348_v33 = vunpack.c.l.bf16 %v347_v31  ;;  %v1269_v34 = vld [vmem:[%s1404_s25] ss:$0 sps:$4 sm:$0xff]  }
  0x18   : > { %322 = vst.msk [vmem:[#allocation2] sm:$0xf] %vm321_vm2, %v320_v6  ;;  %v1162_v28 = vpack.c.bf16 %v325_v26, %v325_v26  ;;  %v1270_v37 = vld [vmem:[%s1404_s25] ss:$0 sps:$4 sm:$0xff]  }
  0x19   : > { %v1163_v32 = vpack.c.bf16 %v337_v30, %v337_v30  ;;  %v349_v35 = vmul.f32 0.35355338, %v348_v33  ;;  %v377_v43 = vld [vmem:[%s1460_s8] sm:$0xf] }
  0x1a   : > { %330 = vrot.lane.b32.xlu1 %v1162_v28, %s1326_s29  ;;  %v469_v44 = vsel %vm467_vm4, %v377_v43, 0  ;;  %v1496_v25 = vld [vmem:[#allocation3 + $0x10] sm:$0xff]  ;;  %v856_v28 = vld [vmem:[#allocation3 + $0x18] sm:$0xff] }
  0x1b   : > { %v1164_v36 = vpack.c.bf16 %v349_v35, %v349_v35  ;;  %1191 = vmatpush3.bf16.msra.mxu1 %v469_v44  ;;  %v1272_v33 = vld [vmem:[%s1460_s8] ss:$0 sps:$4 sm:$0xff]  }
  0x1c   : > { %1196 = vmatprep.subr.bf16.mxu1 %v1322_v0 }
  0x1e   : > { %521 = vrot.lane.b32.xlu1 %v1268_v29, %s1326_s29 }
  0x1f   : > { %v378_v7 = vld [vmem:[#allocation2] sm:$0xf] }
  0x20   : > { %1187 = vmatmul.mubr.msk.bf16.vlgmr.msra.gmra.mrb[0].mxu0 %vm368_vm0, %v378_v7 }
  0x21   : > { %1204 = vmatprep.mubr.msk.bf16.mxu0 %vm1323_vm1, %v1322_v0 }
  0x22   : > { %342 = vrot.lane.b32.xlu1 %v1163_v32, %s1327_s30  ;;  %v1271_v32 = vld [vmem:[%s1460_s8] ss:$0 sps:$4 sm:$0xff]  }
  0x26   : > { %664 = vrot.lane.b32.xlu1 %v1269_v34, %s1327_s30  ;;  %v1273_v34 = vld [vmem:[%s1460_s8] ss:$0 sps:$4 sm:$0xff]  }
  0x2a   : > { %354 = vrot.lane.b32.xlu1 %v1164_v36, %s1328_s5 }
  0x2e   : > { %807 = vrot.lane.b32.xlu1 %v1270_v37, %s1328_s5 }
  0x8c   : > { %v331_v42 = vpop.permute.xlu1 %330 }
  0x8d   : > { %334 = vst.msk [vmem:[#allocation2 + $0x4] sm:$0xf] %vm321_vm2, %v331_v42 }
  0x90   : > { %v522_v45 = vpop.permute.xlu1 %521 }
  0x91   : > { %v527_v53 = vsel %vm368_vm0, %v522_v45, 0 }
  0x94   : > { %v343_v46 = vpop.permute.xlu1 %342  ;;  %v517_v56 = vld [vmem:[#allocation2 + $0x4] sm:$0xf] }
  0x95   : > { %346 = vst.msk [vmem:[#allocation2 + $0x8] sm:$0xf] %vm321_vm2, %v343_v46 }
  0x98   : > { %v665_v47 = vpop.permute.xlu1 %664 }
  0x99   : > { %v670_v55 = vsel %vm368_vm0, %v665_v47, 0 }
  0x9c   : > { %v355_v48 = vpop.permute.xlu1 %354  ;;  %v660_v59 = vld [vmem:[#allocation2 + $0x8] sm:$0xf] }
  0x9d   : > { %358 = vst.msk [vmem:[#allocation2 + $0xc] sm:$0xf] %vm321_vm2, %v355_v48 }
  0xa0   : > { %v808_v57 = vpop.permute.xlu1 %807 }
  0xa1   : > { %v813_v58 = vsel %vm368_vm0, %v808_v57, 0 }
  0xa4   : > { %v803_v60 = vld [vmem:[#allocation2 + $0xc] sm:$0xf] }
  0xf3   : > { %v426_v16 = vpop.f32.mrb[0].mxu0 }
  0xf4   : > { %v427_v17 = vadd.f32 %v426_v16, %v1430_v15  ;;  %v1188_v18 = vpop.f32.mrb[1].mxu0 }
  0xf5   : > { %v429_v19 = vpop.f32.mrb[2].mxu0 }
  0xf6   : > { %v1189_v20 = vpop.f32.mrb[3].mxu0  ;;  %v433_v21 = vsel %vm368_vm0, %v427_v17, -inf }
  0xf7   : > { %434 = vmax.xlane.f32.xlu0 %v433_v21  ;;  %v570_v21 = vld [vmem:[#allocation3 + $0x8] sm:$0xff] }
 0x184   : > { %v435_v39 = vpop.xlane.xlu0 %434 }
 0x185   : > { %v1449_v40 = vmax.f32 %v1446_v38, %v435_v39 }
 0x187   : > { %v437_v41 = vsub.f32 %v1446_v38, %v1449_v40  ;;  %513 = vst.msk [vmem:[#allocation3] sm:$0xff] %vm359_vm3, %v1449_v40  ;;  %442 = vperm.xlu0 %1266, %v1449_v40  }
 0x206   : > { %v443_v49 = vpop.permute.xlu0 %442 }
 0x207   : > { %v445_v50 = vsub.f32 %v427_v17, %v443_v49 }
 0x209   : > { %v446_v51 = vmul.f32 1.442695, %v445_v50 }
 0x20b   : > { %1274 = vpow2.f32 %v446_v51 }
 0x215   : > { %v1468_v52 = vpop.eup %1274 }
 0x216   : > { %v463_v54 = vpack.c.bf16 %v1468_v52, %v1468_v52  ;;  %v450_v35 = vsel %vm368_vm0, %v1468_v52, 0.0 }
 0x218   : > { %1193 = vmatmul.mubr.msk.bf16.vlgmr.msra.gmra.mrb[0].mxu1 %vm368_vm0, %v463_v54 }
 0x219   : > { %1197 = vmatpush3.bf16.xpose.msra.mxu1 %v527_v53  ;;  %1198 = vmatprep.mubr.msk.bf16.mxu1 %vm1323_vm1, %v1322_v0 }
 0x21a   : > { %1208 = vmatprep.subr.bf16.mxu1 %v1322_v0 }
 0x220   : > { %1199 = vmatmul.mubr.msk.bf16.vlgmr.msra.gmra.mrb[4].mxu1 %vm368_vm0, %v517_v56 }
 0x221   : > { %1209 = vmatpush3.bf16.xpose.msra.mxu1 %v670_v55  ;;  %1210 = vmatprep.mubr.msk.bf16.mxu1 %vm1323_vm1, %v1322_v0 }
 0x222   : > { %1220 = vmatprep.subr.bf16.mxu1 %v1322_v0 }
 0x228   : > { %1211 = vmatmul.mubr.msk.bf16.vlgmr.msra.gmra.mrb[8].mxu1 %vm368_vm0, %v660_v59 }
 0x229   : > { %1221 = vmatpush3.bf16.xpose.msra.mxu1 %v813_v58  ;;  %1222 = vmatprep.mubr.msk.bf16.mxu1 %vm1323_vm1, %v1322_v0 }
 0x230   : > { %1223 = vmatmul.mubr.msk.bf16.vlgmr.msra.gmra.mrb[12].mxu1 %vm368_vm0, %v803_v60 }
 0x2eb   : > { %v1487_v61 = vpop.f32.mrb[0].mxu1 }
 0x2ec   : > { %v1194_v62 = vpop.f32.mrb[1].mxu1 }
 0x2ed   : > { %v508_v63 = vpop.f32.mrb[2].mxu1 }
 0x2ee   : > { %v1195_v1 = vpop.f32.mrb[3].mxu1 }
 0x2f3   : > { %v563_v2 = vpop.f32.mrb[4].mxu1 }
 0x2f4   : > { %v564_v3 = vadd.f32 %v563_v2, %v1430_v15  ;;  %v1200_v4 = vpop.f32.mrb[5].mxu1 }
 0x2f5   : > { %v566_v5 = vpop.f32.mrb[6].mxu1 }
 0x2f6   : > { %v1201_v6 = vpop.f32.mrb[7].mxu1  ;;  %v571_v7 = vsel %vm368_vm0, %v564_v3, -inf }
 0x2f7   : > { %572 = vmax.xlane.f32.xlu1 %v571_v7 }
 0x2fb   : > { %v706_v8 = vpop.f32.mrb[8].mxu1 }
 0x2fc   : > { %v707_v9 = vadd.f32 %v706_v8, %v1430_v15  ;;  %v1212_v10 = vpop.f32.mrb[9].mxu1  ;;  %v448_v8 = vld [vmem:[#allocation4] sm:$0xff] }
 0x2fd   : > { %v709_v11 = vpop.f32.mrb[10].mxu1 }
 0x2fe   : > { %v1213_v12 = vpop.f32.mrb[11].mxu1  ;;  %v714_v13 = vsel %vm368_vm0, %v707_v9, -inf  ;;  %v587_v11 = vld [vmem:[#allocation4 + $0x8] sm:$0xff] }
 0x2ff   : > { %715 = vmax.xlane.f32.xlu0 %v714_v13 }
 0x303   : > { %v849_v14 = vpop.f32.mrb[12].mxu1 }
 0x304   : > { %v850_v16 = vadd.f32 %v849_v14, %v1430_v15  ;;  %v1224_v17 = vpop.f32.mrb[13].mxu1 }
 0x305   : > { %v852_v18 = vpop.f32.mrb[14].mxu1 }
 0x306   : > { %v1225_v19 = vpop.f32.mrb[15].mxu1  ;;  %v857_v20 = vsel %vm368_vm0, %v850_v16, -inf }
 0x307   : > { %858 = vmax.xlane.f32.xlu1 %v857_v20 }
 0x384   : > { %v573_v22 = vpop.xlane.xlu1 %572 }
 0x385   : > { %v574_v23 = vmax.f32 %v570_v21, %v573_v22 }
 0x387   : > { %v575_v24 = vsub.f32 %v570_v21, %v574_v23  ;;  %656 = vst.msk [vmem:[#allocation3 + $0x8] sm:$0xff] %vm359_vm3, %v574_v23  ;;  %580 = vperm.xlu1 %1267, %v574_v23   ;;  %v873_v21 = vld [vmem:[#allocation4 + $0x18] sm:$0xff] }
 0x389   : > { %v576_v57 = vmul.f32 1.442695, %v575_v24 }
 0x38c   : > { %v716_v26 = vpop.xlane.xlu0 %715 }
 0x38d   : > { %v1499_v15 = vmax.f32 %v1496_v25, %v716_v26 }
 0x38f   : > { %v718_v27 = vsub.f32 %v1496_v25, %v1499_v15  ;;  %799 = vst.msk [vmem:[#allocation3 + $0x10] sm:$0xff] %vm359_vm3, %v1499_v15  ;;  %723 = vperm.xlu0 %1266, %v1499_v15   ;;  %v456_v15 = vld [vmem:[#allocation5] sm:$0xff] }
 0x391   : > { %v719_v5 = vmul.f32 1.442695, %v718_v27 }
 0x394   : > { %v859_v29 = vpop.xlane.xlu1 %858 }
 0x395   : > { %v860_v30 = vmax.f32 %v856_v28, %v859_v29 }
 0x397   : > { %v861_v31 = vsub.f32 %v856_v28, %v860_v30  ;;  %942 = vst.msk [vmem:[#allocation3 + $0x18] sm:$0xff] %vm359_vm3, %v860_v30  ;;  %866 = vperm.xlu1 %1267, %v860_v30  }
 0x399   : > { %v862_v60 = vmul.f32 1.442695, %v861_v31 }
 0x39b   : > { %606 = vrot.lane.b32.xlu1 %v1271_v32, %s1326_s29 }
 0x39f   : > { %749 = vrot.lane.b32.xlu1 %v1272_v33, %s1327_s30 }
 0x3a3   : > { %892 = vrot.lane.b32.xlu1 %v1273_v34, %s1328_s5 }
 0x3c7   : > { %451 = vadd.xlane.f32.xlu1 %v450_v35 }
 0x406   : > { %v581_v36 = vpop.permute.xlu1 %580 }
 0x407   : > { %v583_v37 = vsub.f32 %v564_v3, %v581_v36  ;;  %v438_v3 = vmul.f32 1.442695, %v437_v41 }
 0x409   : > { %v584_v39 = vmul.f32 1.442695, %v583_v37 }
 0x40b   : > { %1276 = vpow2.f32 %v584_v39 }
 0x40e   : > { %v724_v42 = vpop.permute.xlu0 %723 }
 0x40f   : > { %v726_v43 = vsub.f32 %v707_v9, %v724_v42 }
 0x411   : > { %v727_v44 = vmul.f32 1.442695, %v726_v43 }
 0x413   : > { %1278 = vpow2.f32 %v727_v44 }
 0x415   : > { %v1277_v45 = vpop.eup %1276 }
 0x416   : > { %v867_v46 = vpop.permute.xlu1 %866  ;;  %v589_v47 = vsel %vm368_vm0, %v1277_v45, 0.0  ;;  %v602_v53 = vpack.c.bf16 %v1277_v45, %v1277_v45 }
 0x417   : > { %v869_v48 = vsub.f32 %v850_v16, %v867_v46  ;;  %590 = vadd.xlane.f32.xlu0 %v589_v47  ;;  %v730_v16 = vld [vmem:[#allocation4 + $0x10] sm:$0xff] }
 0x419   : > { %v870_v49 = vmul.f32 1.442695, %v869_v48  ;;  %v738_v48 = vld [vmem:[#allocation5 + $0x10] sm:$0xff] }
 0x41a   : > { %v607_v50 = vpop.permute.xlu1 %606 }
 0x41b   : > { %1280 = vpow2.f32 %v870_v49  ;;  %v612_v51 = vsel %vm467_vm4, %v607_v50, 0 }
 0x41c   : > { %1203 = vmatpush3.bf16.msra.mxu0 %v612_v51  ;;  %1282 = vpow2.f32 %v576_v57 }
 0x41d   : > { %v1279_v52 = vpop.eup %1278  ;;  %1214 = vmatprep.subr.bf16.mxu0 %v1322_v0  ;;  %1284 = vpow2.f32 %v862_v60 }
 0x41e   : > { %v732_v54 = vsel %vm368_vm0, %v1279_v52, 0.0  ;;  %v750_v55 = vpop.permute.xlu1 %749  ;;  %v745_v62 = vpack.c.bf16 %v1279_v52, %v1279_v52  ;;  %1286 = vpow2.f32 %v438_v3 }
 0x41f   : > { %1205 = vmatmul.mubr.msk.bf16.vlgmr.msra.gmra.mrb[4].mxu0 %vm368_vm0, %v602_v53  ;;  %733 = vadd.xlane.f32.xlu1 %v732_v54  ;;  %v755_v56 = vsel %vm467_vm4, %v750_v55, 0  ;;  %1288 = vpow2.f32 %v719_v5 }
 0x420   : > { %1215 = vmatpush3.bf16.msra.mxu0 %v755_v56  ;;  %1216 = vmatprep.mubr.msk.bf16.mxu0 %vm1323_vm1, %v1322_v0  ;;  %v881_v56 = vld [vmem:[#allocation5 + $0x18] sm:$0xff] }
 0x421   : > { %1226 = vmatprep.subr.bf16.mxu0 %v1322_v0 }
 0x422   : > { %v893_v58 = vpop.permute.xlu1 %892 }
 0x423   : > { %v898_v63 = vsel %vm467_vm4, %v893_v58, 0 }
 0x425   : > { %v1281_v59 = vpop.eup %1280 }
 0x426   : > { %v875_v1 = vsel %vm368_vm0, %v1281_v59, 0.0  ;;  %v888_v2 = vpack.c.bf16 %v1281_v59, %v1281_v59  ;;  %v1283_v4 = vpop.eup %1282 }
 0x427   : > { %876 = vadd.xlane.f32.xlu0 %v875_v1  ;;  %1217 = vmatmul.mubr.msk.bf16.vlgmr.msra.gmra.mrb[8].mxu0 %vm368_vm0, %v745_v62  ;;  %v1285_v6 = vpop.eup %1284  ;;  %v588_v12 = vmul.f32 %v1283_v4, %v587_v11 }
 0x428   : > { %1227 = vmatpush3.bf16.msra.mxu0 %v898_v63  ;;  %1228 = vmatprep.mubr.msk.bf16.mxu0 %vm1323_vm1, %v1322_v0  ;;  %v1287_v7 = vpop.eup %1286  ;;  %v874_v22 = vmul.f32 %v1285_v6, %v873_v21 }
 0x429   : > { %v1289_v0 = vpop.eup %1288  ;;  %v449_v9 = vmul.f32 %v1287_v7, %v448_v8 }
 0x42a   : > { %v731_v17 = vmul.f32 %v1289_v0, %v730_v16 }
 0x42f   : > { %1229 = vmatmul.mubr.msk.bf16.vlgmr.msra.gmra.mrb[12].mxu0 %vm368_vm0, %v888_v2 }
 0x430   : > { %598 = vperm.xlu1 %1267, %v1283_v4  }
 0x434   : > { %884 = vperm.xlu1 %1267, %v1285_v6  }
 0x43d   : > { %459 = vperm.xlu0 %1266, %v1287_v7  }
 0x441   : > { %741 = vperm.xlu0 %1266, %v1289_v0  }
 0x454   : > { %v452_v38 = vpop.xlane.xlu1 %451 }
 0x455   : > { %v453_v40 = vadd.f32 %v452_v38, %v449_v9 }
 0x457   : > { %455 = vst.msk [vmem:[#allocation4] sm:$0xff] %vm359_vm3, %v453_v40 }
 0x45e   : > { %v947_v41 = vld [vmem:[#allocation4] sm:$0xff] }
 0x45f   : > { %1290 = vrcp.f32 %v947_v41 }
 0x469   : > { %v1291_v10 = vpop.eup %1290 }
 0x46a   : > { %951 = vperm.xlu1 %1267, %v1291_v10  }
 0x4a4   : > { %v591_v13 = vpop.xlane.xlu0 %590 }
 0x4a5   : > { %v592_v14 = vadd.f32 %v591_v13, %v588_v12 }
 0x4a7   : > { %593 = vst.msk [vmem:[#allocation4 + $0x8] sm:$0xff] %vm359_vm3, %v592_v14 }
 0x4ac   : > { %v734_v18 = vpop.xlane.xlu1 %733 }
 0x4ad   : > { %v735_v19 = vadd.f32 %v734_v18, %v731_v17 }
 0x4ae   : > { %v959_v20 = vld [vmem:[#allocation4 + $0x8] sm:$0xff] }
 0x4af   : > { %736 = vst.msk [vmem:[#allocation4 + $0x10] sm:$0xff] %vm359_vm3, %v735_v19  ;;  %1292 = vrcp.f32 %v959_v20 }
 0x4b0   : > { %v599_v33 = vpop.permute.xlu1 %598 }
 0x4b4   : > { %v877_v23 = vpop.xlane.xlu0 %876  ;;  %v885_v34 = vpop.permute.xlu1 %884 }
 0x4b5   : > { %v878_v24 = vadd.f32 %v877_v23, %v874_v22  ;;  %v887_v57 = vmul.f32 %v885_v34, %v881_v56 }
 0x4b6   : > { %v977_v25 = vld [vmem:[#allocation4 + $0x10] sm:$0xff] }
 0x4b7   : > { %879 = vst.msk [vmem:[#allocation4 + $0x18] sm:$0xff] %vm359_vm3, %v878_v24  ;;  %1294 = vrcp.f32 %v977_v25 }
 0x4b9   : > { %v1293_v26 = vpop.eup %1292 }
 0x4ba   : > { %963 = vperm.xlu0 %1266, %v1293_v26  }
 0x4bc   : > { %v460_v27 = vpop.permute.xlu0 %459 }
 0x4bd   : > { %v462_v28 = vmul.f32 %v460_v27, %v456_v15 }
 0x4be   : > { %v995_v29 = vld [vmem:[#allocation4 + $0x18] sm:$0xff] }
 0x4bf   : > { %v511_v30 = vadd.f32 %v1487_v61, %v462_v28  ;;  %1296 = vrcp.f32 %v995_v29  ;;  %v595_v61 = vld [vmem:[#allocation5 + $0x8] sm:$0xff] }
 0x4c0   : > { %v601_v42 = vmul.f32 %v599_v33, %v595_v61  ;;  %v742_v49 = vpop.permute.xlu0 %741 }
 0x4c1   : > { %v1295_v31 = vpop.eup %1294  ;;  %512 = vst.msk [vmem:[#allocation5] sm:$0xff] %vm368_vm0, %v511_v30  ;;  %v744_v50 = vmul.f32 %v742_v49, %v738_v48 }
 0x4c2   : > { %981 = vperm.xlu0 %1266, %v1295_v31  }
 0x4c8   : > { %v946_v35 = vld [vmem:[#allocation5] sm:$0xff] }
 0x4c9   : > { %v1297_v32 = vpop.eup %1296 }
 0x4ca   : > { %999 = vperm.xlu0 %1266, %v1297_v32  }
 0x4e9   : > { %v952_v36 = vpop.permute.xlu1 %951 }
 0x4ea   : > { %v954_v37 = vmul.f32 %v952_v36, %v946_v35 }
 0x4ec   : > { %v955_v39 = vpack.c.bf16 %v954_v37, %v954_v37 }
 0x4ee   : > { %957 = vst.msk [vmem:[%s1546_s11] sm:$0xf] %vm321_vm2, %v955_v39 }
 0x4f2   : > { %v648_v43 = vpop.f32.mrb[4].mxu0 }
 0x4f3   : > { %v654_v44 = vadd.f32 %v648_v43, %v601_v42  ;;  %v1206_v45 = vpop.f32.mrb[5].mxu0 }
 0x4f4   : > { %v651_v46 = vpop.f32.mrb[6].mxu0 }
 0x4f5   : > { %655 = vst.msk [vmem:[#allocation5 + $0x8] sm:$0xff] %vm368_vm0, %v654_v44  ;;  %v1207_v47 = vpop.f32.mrb[7].mxu0 }
 0x4fa   : > { %v791_v51 = vpop.f32.mrb[8].mxu0 }
 0x4fb   : > { %v797_v52 = vadd.f32 %v791_v51, %v744_v50  ;;  %v1218_v53 = vpop.f32.mrb[9].mxu0 }
 0x4fc   : > { %v794_v54 = vpop.f32.mrb[10].mxu0  ;;  %v958_v2 = vld [vmem:[#allocation5 + $0x8] sm:$0xff] }
 0x4fd   : > { %798 = vst.msk [vmem:[#allocation5 + $0x10] sm:$0xff] %vm368_vm0, %v797_v52  ;;  %v1219_v55 = vpop.f32.mrb[11].mxu0 }
 0x502   : > { %v934_v58 = vpop.f32.mrb[12].mxu0 }
 0x503   : > { %v940_v59 = vadd.f32 %v934_v58, %v887_v57  ;;  %v1230_v60 = vpop.f32.mrb[13].mxu0 }
 0x504   : > { %v937_v62 = vpop.f32.mrb[14].mxu0  ;;  %v976_v6 = vld [vmem:[#allocation5 + $0x10] sm:$0xff] }
 0x505   : > { %941 = vst.msk [vmem:[#allocation5 + $0x18] sm:$0xff] %vm368_vm0, %v940_v59  ;;  %v1231_v63 = vpop.f32.mrb[15].mxu0 }
 0x50c   : > { %v994_v9 = vld [vmem:[#allocation5 + $0x18] sm:$0xff] }
 0x539   : > { %v964_v1 = vpop.permute.xlu0 %963 }
 0x53a   : > { %v966_v3 = vmul.f32 %v964_v1, %v958_v2 }
 0x53c   : > { %v1165_v4 = vpack.c.bf16 %v966_v3, %v966_v3 }
 0x53e   : > { %971 = vrot.lane.b32.xlu1 %v1165_v4, %s1329_s12 }
 0x541   : > { %v982_v5 = vpop.permute.xlu0 %981 }
 0x542   : > { %v984_v7 = vmul.f32 %v982_v5, %v976_v6 }
 0x544   : > { %v1166_v0 = vpack.c.bf16 %v984_v7, %v984_v7 }
 0x546   : > { %989 = vrot.lane.b32.xlu1 %v1166_v0, %s1330_s13 }
 0x549   : > { %v1000_v8 = vpop.permute.xlu0 %999 }
 0x54a   : > { %v1002_v38 = vmul.f32 %v1000_v8, %v994_v9 }
 0x54c   : > { %v1167_v40 = vpack.c.bf16 %v1002_v38, %v1002_v38 }
 0x54e   : > { %1007 = vrot.lane.b32.xlu1 %v1167_v40, %s1331_s14 }
 0x5b0   : > { %v972_v41 = vpop.permute.xlu1 %971 }
 0x5b1   : > { %975 = vst.msk [vmem:[%s1546_s11] sm:$0xf] %vm974_vm5, %v972_v41 }
 0x5b8   : > { %v990_v10 = vpop.permute.xlu1 %989 }
 0x5b9   : > { %993 = vst.msk [vmem:[%s1546_s11] sm:$0xf] %vm992_vm6, %v990_v10 }
 0x5c0   : > { %v1008_v11 = vpop.permute.xlu1 %1007 }
 0x5c1   : > { %1011 = vst.msk [vmem:[%s1546_s11] sm:$0xf] %vm1010_vm7, %v1008_v11 }
 0x5c2 PF: > { %s14_s17 = sadd.s32 1, %s1320_s17   ;;  %s1570_s15 = smov %s1316_s16 }
 0x5c3   : > { %p11_p5 = scmp.ge.s32.totalorder %s14_s17, 4   ;;  %s1571_s16 = smov %s1573_s18 }
 0x5c5   :  { %13 = sbr.rel (!%p11_p5) target bundleno = 2 (0x2), region = 98 }

// kernel: transformer_lm_head_forward.59
= control target key start
LH: loop header
LB: loop body
LE: loop exit
PB: predicated region body
PF: predicated region fallthrough
CT: control target
= control target key end

     0   :  { %vm11_vm0 = vcmask 1041408   ;;  %s93_s0 = inlined_call_operand.vmem [shape: bf16[2,128], index: 0, kind: input, shape index: {}]   ;;  %s94_s1 = inlined_call_operand.hbm [shape: f32[2,128], index: 1, kind: output, shape index: {}]  }
   0x1   :  { %v9_v0 = vld [vmem:[%s93_s0] sm:$0x1] }
   0x2   :  { %6 = vsyncpa [#allocation3], 0  ;;  %v10_v1 = vunpack.c.l.bf16 %v9_v0  ;;  %s67_s8 = smov [#allocation2]  }
   0x3   :  { %s30_s9 = sshll.u32 %s67_s8, 4  ;;  %s31_s9 = int_to_ptr.vmem [resolvable:$true] %s30_s9 }
   0x4   :  { %v12_v2 = vsel %vm11_vm0, %v10_v1, -inf  ;;  %s43_s0 = scalar_lea.vmem %s31_s9, 32  ;;  %p48_p1 = scmp.lt.s32.totalorder %s31_s9, %s31_s9 }
   0x5   :  { %13 = vmax.xlane.f32.xlu0 %v12_v2  ;;  %p44_p0 = scmp.ne.s32.totalorder %s31_s9, %s43_s0  ;;  %p49_p2 = scmp.lt.s32.totalorder %s43_s0, %s43_s0 }
   0x7   :  { %p50_p3 = por %p49_p2, %p48_p1 }
   0x9   :  { %p51_p4 = pnand %p50_p3, %p44_p0 }
  0x92   :  { %v14_v3 = vpop.xlane.xlu0 %13 }
  0x93   :  { %v15_v4 = vsub.f32 %v10_v1, %v14_v3 }
  0x95   :  { %v16_v5 = vmul.f32 1.442695, %v15_v4 }
  0x97   :  { %39 = vpow2.f32 %v16_v5 }
  0xa1   :  { %v40_v6 = vpop.eup %39 }
  0xa2   :  { %v18_v7 = vsel %vm11_vm0, %v40_v6, 0.0 }
  0xa3   :  { %19 = vadd.xlane.f32.xlu0 %v18_v7 }
 0x130   :  { %v20_v8 = vpop.xlane.xlu0 %19 }
 0x131   :  { %41 = vrcp.f32 %v20_v8 }
 0x13b   :  { %v42_v9 = vpop.eup %41 }
 0x13c   :  { %v22_v10 = vmul.f32 %v42_v9, %v40_v6 }
 0x13e   :  { %23 = vst [vmem:[#allocation2] sm:$0x3] %v22_v10 }
 0x13f   :  { %54 = shalt.err (!%p51_p4)
}
 0x140   :  { %s55_s12 = scalar_lea.hbm %s94_s1, 32 }
 0x141   :  { %p56_p5 = scmp.ne.s32.totalorder %s94_s1, %s55_s12  ;;  %p59_p6 = scmp.lt.u32.totalorder %s55_s12, %s94_s1 }
 0x143   :  { %p61_p7 = pnand %p59_p6, %p56_p5 }
 0x145   :  { %64 = shalt.err (!%p61_p7)
}
 0x146   :  { %33 = dma.vmem_to_hbm [thread:$0]  %s31_s9, 32, %s94_s1, [#allocation3]  }
 0x147   :  { %65 = dma.done.wait [#allocation3], 32  }
 0x148   :  { %66 = vsyncadd [#allocation3], 4294967264 }
 0x149   :  { %37 = vsyncpa [#allocation3], 1 }

// kernel: transformer_lm_head_forward.58
= control target key start
LH: loop header
LB: loop body
LE: loop exit
PB: predicated region body
PF: predicated region fallthrough
CT: control target
= control target key end

     0   :  { %v121_v0 = vmov 0.0   ;;  %vm122_vm0 = vmmov 0   ;;  %vm38_vm1 = vcmask 261120   ;;  %s158_s1 = inlined_call_operand.vmem [shape: bf16[32,128], index: 1, kind: input, shape index: {}]   ;;  %s159_s0 = inlined_call_operand.vmem [shape: bf16[2,32], index: 0, kind: input, shape index: {}]   ;;  %s160_s2 = inlined_call_operand.vmem [shape: f32[1,128], index: 2, kind: input, shape index: {}]   ;;  %s161_s3 = inlined_call_operand.vmem [shape: bf16[2,128], index: 3, kind: output, shape index: {}]  }
   0x1   :  { %109 = vmatprep.subr.bf16.mxu0 %v121_v0  ;;  %19 = vst [vmem:[#allocation2] sm:$0x3] %v121_v0  ;;  %v119_v1 = vld [vmem:[%s158_s1] sm:$0xff]   ;;  %113 = vmatprep.mubr.msk.bf16.mxu0 %vm122_vm0, %v121_v0  ;;  %v120_v2 = vld [vmem:[%s158_s1 + $0x8] sm:$0xff]  }
   0x2   :  { %110 = vmatpush3.bf16.msra.mxu0 %v119_v1  ;;  %v21_v3 = vld [vmem:[%s159_s0] sm:$0x1] }
   0x3   :  { %111 = vmatprep.subr.bf16.mxu0 %v121_v0  ;;  %v105_v10 = vld [vmem:[%s160_s2] ss:$0 sm:$0xff] }
   0x6   :  { %112 = vmatpush3.bf16.msra.mxu0 %v120_v2 }
   0x8   :  { %v20_v4 = vld [vmem:[#allocation2] sm:$0x3] }
   0x9   :  { %114 = vmatmul.mubr.msk.bf16.vlgmr.msra.gmra.mrb[0].mxu0 %vm38_vm1, %v21_v3 }
  0xdc   :  { %v76_v5 = vpop.f32.mrb[0].mxu0 }
  0xdd   :  { %v82_v6 = vadd.f32 %v76_v5, %v20_v4  ;;  %v115_v7 = vpop.f32.mrb[1].mxu0 }
  0xde   :  { %v79_v8 = vpop.f32.mrb[2].mxu0 }
  0xdf   :  { %83 = vst [vmem:[#allocation2] sm:$0x3] %v82_v6  ;;  %v116_v9 = vpop.f32.mrb[3].mxu0 }
  0xe6   :  { %v87_v11 = vld [vmem:[#allocation2] sm:$0x3] }
  0xe7   :  { %v95_v12 = vadd.f32 %v105_v10, %v87_v11 }
  0xe9   :  { %v96_v13 = vpack.c.bf16 %v95_v12, %v95_v12 }
  0xeb   :  { %97 = vst [vmem:[%s161_s3] sm:$0x1] %v96_v13 }

</bundles_post_ra>
